<compile_context>
chip_gen: v6e
topology: v6e:2x2x1
jax: 0.10.0
libtpu: 0.0.40
codegen_flags: <defaults>
</compile_context>

<pallas_src>
import math

import jax
import jax.numpy as jnp
from jax.experimental import pallas as pl
from jax.experimental.pallas import tpu as pltpu

# ----------------------------- model config ---------------------------------
DIM = 32
DEPTH = 2
NUM_CLASSES = 3
NUM_FEATURE_NODE = 8
NUM_FEATURE_EDGE = 4
EDGE_DIM = DIM           # edge_dim defaults to dim
HEADS = 4                # small test config
DIM_HEAD = 16
INNER = HEADS * DIM_HEAD
WITH_FEEDFORWARDS = True


# ----------------------------- fused Pallas kernel ---------------------------
def _fused_forward_kernel(
    # per-graph data (blocked over grid axis b)
    x_ref, ea_ref, adjf_ref, mcol_ref, pmask_ref,
    # constants / rotary tables
    cos_ref, sin_ref, rot_ref,
    # encoders + adjacency embedding
    node_w_ref, node_b_ref, edge_w_ref, edge_b_ref, adj_e0_ref, adj_ed_ref,
    # stacked per-layer transformer params (leading dim = DEPTH)
    ln1_g_ref, ln1_b_ref, wqkv_ref, bqkv_ref, we_ref, be_ref, wo_ref, bo_ref,
    gate1_ref, ln2_g_ref, ln2_b_ref, ffw1_ref, ffb1_ref, ffw2_ref, ffb2_ref,
    gate2_ref,
    # prediction head
    hw1_ref, hb1_ref, hw2_ref, hb2_ref, hw3_ref, hb3_ref,
    # output + scratch
    out_ref, e_scr):
    f32 = jnp.float32
    N = x_ref.shape[1]
    scale = DIM_HEAD ** -0.5
    neg = -1e30

    x = x_ref[0]                 # (N, Fn)
    ea = ea_ref[0]               # (N*N, Fe)   flattened dense edge attrs
    adjf = adjf_ref[0]           # (N*N, 1)    adjacency as float {0,1}
    mcol = mcol_ref[0]           # (N, 1)      node mask
    pmask = pmask_ref[0]         # (N, N)      pair mask
    cosf = cos_ref[...]          # (N, INNER)  rotary cos, tiled over heads
    sinf = sin_ref[...]          # (N, INNER)
    rot_m = rot_ref[...]         # (INNER, INNER) interleaved rotate_half matrix

    def layer_norm(t, g, b):
        mu = jnp.mean(t, axis=-1, keepdims=True)
        tc = t - mu
        var = jnp.mean(tc * tc, axis=-1, keepdims=True)
        return tc * jax.lax.rsqrt(var + 1e-5) * g + b

    def gated_res(t, r, w):      # w: (3, DIM)  == Linear(3*DIM -> 1) on [t,r,t-r]
        logit = jnp.sum(t * w[0:1, :] + r * w[1:2, :] + (t - r) * w[2:3, :],
                        axis=-1, keepdims=True)
        gate = jax.nn.sigmoid(logit)
        return t * gate + r * (1.0 - gate)

    def rope(t):                 # interleaved RoPE: x*cos + rotate_half(x)*sin
        return t * cosf + jnp.dot(t, rot_m, preferred_element_type=f32) * sinf

    # ---- node / edge encoders (masked like to_dense_batch / to_dense_adj) ----
    nodes = (jnp.dot(x, node_w_ref[...], preferred_element_type=f32)
             + node_b_ref[...]) * mcol                                   # (N, DIM)
    ze = (jnp.dot(ea, edge_w_ref[...], preferred_element_type=f32)
          + edge_b_ref[...]) * adjf                                      # (N*N, E)
    # adjacency embedding via lerp (== nn.Embedding(2, E)[adj])
    all_edges = ze + adj_e0_ref[...] + adjf * adj_ed_ref[...]            # (N*N, E)

    keep = pmask > 0.5

    # ---- transformer layers (unrolled; everything stays in VMEM) ----
    for l in range(DEPTH):
        # PreNorm attention
        ln_x = layer_norm(nodes, ln1_g_ref[l], ln1_b_ref[l])
        qkv = (jnp.dot(ln_x, wqkv_ref[l], preferred_element_type=f32)
               + bqkv_ref[l])                                            # (N, 3*INNER)
        q = rope(qkv[:, :INNER])
        k = rope(qkv[:, INNER:2 * INNER])
        v = qkv[:, 2 * INNER:]
        ekv = (jnp.dot(all_edges, we_ref[l], preferred_element_type=f32)
               + be_ref[l])                                              # (N*N, INNER)
        # stage edge kv into a (N, N, INNER) scratch (row-block copies; no reshape)
        for i in range(N):
            e_scr[i] = ekv[i * N:(i + 1) * N, :]

        heads_out = []
        for h in range(HEADS):
            sl = slice(h * DIM_HEAD, (h + 1) * DIM_HEAD)
            qh, kh, vh = q[:, sl], k[:, sl], v[:, sl]                    # (N, Dh)
            e3 = e_scr[:, :, sl]                                         # (N, N, Dh)
            # MXU: q @ k^T ; VPU/XLU: per-head edge bias
            sim = jax.lax.dot_general(qh, kh, (((1,), (1,)), ((), ())),
                                      preferred_element_type=f32)        # (N, N)
            sim = (sim + jnp.sum(qh[:, None, :] * e3, axis=-1)) * scale
            sim = jnp.where(keep, sim, neg)
            sim = sim - jnp.max(sim, axis=-1, keepdims=True)
            p = jnp.exp(sim)
            attnw = p * pl.reciprocal(jnp.sum(p, axis=-1, keepdims=True),
                                      approx=True)
            oh = jnp.dot(attnw, vh, preferred_element_type=f32)          # MXU
            oh = oh + jnp.sum(attnw[:, :, None] * e3, axis=1)            # edge value bias
            heads_out.append(oh)
        attn_out = jnp.concatenate(heads_out, axis=-1)                   # (N, INNER)
        attn_out = (jnp.dot(attn_out, wo_ref[l], preferred_element_type=f32)
                    + bo_ref[l])                                         # (N, DIM)
        nodes = gated_res(attn_out, nodes, gate1_ref[l])

        # PreNorm feedforward (SiLU)
        if WITH_FEEDFORWARDS:
            ln2 = layer_norm(nodes, ln2_g_ref[l], ln2_b_ref[l])
            hdn = (jnp.dot(ln2, ffw1_ref[l], preferred_element_type=f32)
                   + ffb1_ref[l])
            hdn = hdn * jax.nn.sigmoid(hdn)
            ff = (jnp.dot(hdn, ffw2_ref[l], preferred_element_type=f32)
                  + ffb2_ref[l])
            nodes = gated_res(ff, nodes, gate2_ref[l])

    # ---- masked mean pooling (== scatter_mean over valid nodes) + MLP head ----
    den = jnp.sum(mcol, axis=0, keepdims=True)                           # (1, 1)
    pooled = (jnp.sum(nodes * mcol, axis=0, keepdims=True)
              * pl.reciprocal(den, approx=True))                         # (1, DIM)
    h1 = jnp.maximum(jnp.dot(pooled, hw1_ref[...], preferred_element_type=f32)
                     + hb1_ref[...], 0.0)
    h2 = jnp.maximum(jnp.dot(h1, hw2_ref[...], preferred_element_type=f32)
                     + hb2_ref[...], 0.0)
    out_ref[0] = (jnp.dot(h2, hw3_ref[...], preferred_element_type=f32)
                  + hb3_ref[...])                                        # (1, C)


# ----------------------------- rotary tables (host constants) ----------------
def rope_tables(n):
    inv_freq = 1.0 / (10000.0 ** (jnp.arange(0, DIM_HEAD, 2,
                                              dtype=jnp.float32) / DIM_HEAD))
    t = jnp.arange(n, dtype=jnp.float32)
    freqs = jnp.einsum("i,j->ij", t, inv_freq)            # (n, Dh//2)
    freqs = jnp.repeat(freqs, 2, axis=-1)                 # (n, Dh), interleaved
    cos_t = jnp.tile(jnp.cos(freqs), (1, HEADS))          # (n, INNER)
    sin_t = jnp.tile(jnp.sin(freqs), (1, HEADS))
    # rotate_half(x) == x @ R :  even col c -> -x[:, c+1] ; odd col c -> x[:, c-1]
    row = jnp.arange(INNER)[:, None]
    col = jnp.arange(INNER)[None, :]
    even_c = (col % 2) == 0
    rot_m = (jnp.where(even_c & (row == col + 1), -1.0, 0.0)
             + jnp.where((~even_c) & (row == col - 1), 1.0, 0.0)).astype(jnp.float32)
    return cos_t, sin_t, rot_m


# ----------------------------- parameters ------------------------------------
def init_linear(key, fan_in, fan_out):
    k1, k2 = jax.random.split(key)
    bound = 1.0 / math.sqrt(fan_in)
    w = jax.random.uniform(k1, (fan_in, fan_out), jnp.float32, -bound, bound)
    b = jax.random.uniform(k2, (fan_out,), jnp.float32, -bound, bound)
    return w, b


def init_params(key):
    keys = iter(jax.random.split(key, 64))
    p = {}
    p["node_w"], p["node_b"] = init_linear(next(keys), NUM_FEATURE_NODE, DIM)
    p["edge_w"], p["edge_b"] = init_linear(next(keys), NUM_FEATURE_EDGE, EDGE_DIM)
    p["adj_emb"] = 0.02 * jax.random.normal(next(keys), (2, EDGE_DIM), jnp.float32)
    layers = []
    for _ in range(DEPTH):
        lp = {}
        lp["ln1_g"] = jnp.ones((DIM,), jnp.float32)
        lp["ln1_b"] = jnp.zeros((DIM,), jnp.float32)
        lp["wq"], lp["bq"] = init_linear(next(keys), DIM, INNER)
        lp["wkv"], lp["bkv"] = init_linear(next(keys), DIM, 2 * INNER)
        lp["we"], lp["be"] = init_linear(next(keys), EDGE_DIM, INNER)
        lp["wo"], lp["bo"] = init_linear(next(keys), INNER, DIM)
        gb = 1.0 / math.sqrt(3 * DIM)
        lp["gate1"] = jax.random.uniform(next(keys), (3, DIM), jnp.float32, -gb, gb)
        lp["ln2_g"] = jnp.ones((DIM,), jnp.float32)
        lp["ln2_b"] = jnp.zeros((DIM,), jnp.float32)
        lp["ff_w1"], lp["ff_b1"] = init_linear(next(keys), DIM, 4 * DIM)
        lp["ff_w2"], lp["ff_b2"] = init_linear(next(keys), 4 * DIM, DIM)
        lp["gate2"] = jax.random.uniform(next(keys), (3, DIM), jnp.float32, -gb, gb)
        layers.append(lp)
    p["layers"] = layers
    hp = {}
    hp["w1"], hp["b1"] = init_linear(next(keys), DIM, DIM)
    hp["w2"], hp["b2"] = init_linear(next(keys), DIM, DIM)
    hp["w3"], hp["b3"] = init_linear(next(keys), DIM, NUM_CLASSES)
    p["head"] = hp
    return p


# ----------------------------- forward (single pallas_call) ------------------
def _rep_spec(shape):
    zeros = (0,) * len(shape)
    return pl.BlockSpec(shape, lambda b, z=zeros: z)


def _batch_spec(tail):
    zeros = (0,) * len(tail)
    return pl.BlockSpec((1,) + tail, lambda b, z=zeros: (b,) + z)


def forward(params, x, edge_attr_dense, adj, node_mask):
    B, N, _ = x.shape
    mask_f = node_mask.astype(jnp.float32)
    mask_col = mask_f[:, :, None]                             # (B, N, 1)
    pair_mask = mask_f[:, :, None] * mask_f[:, None, :]       # (B, N, N)
    adj_flat = adj.astype(jnp.float32).reshape(B, N * N, 1)
    ea_flat = edge_attr_dense.reshape(B, N * N, NUM_FEATURE_EDGE)
    cos_t, sin_t, rot_m = rope_tables(N)

    Ls = params["layers"]
    stk = lambda name: jnp.stack([lp[name] for lp in Ls])
    stk_row = lambda name: jnp.stack([lp[name] for lp in Ls])[:, None, :]
    wqkv = jnp.stack([jnp.concatenate([lp["wq"], lp["wkv"]], axis=1) for lp in Ls])
    bqkv = jnp.stack([jnp.concatenate([lp["bq"], lp["bkv"]])[None, :] for lp in Ls])

    adj_e0 = params["adj_emb"][0:1, :]
    adj_ed = params["adj_emb"][1:2, :] - params["adj_emb"][0:1, :]
    hp = params["head"]

    inputs = (x, ea_flat, adj_flat, mask_col, pair_mask,
              cos_t, sin_t, rot_m,
              params["node_w"], params["node_b"][None, :],
              params["edge_w"], params["edge_b"][None, :],
              adj_e0, adj_ed,
              stk_row("ln1_g"), stk_row("ln1_b"), wqkv, bqkv,
              stk("we"), stk_row("be"), stk("wo"), stk_row("bo"), stk("gate1"),
              stk_row("ln2_g"), stk_row("ln2_b"),
              stk("ff_w1"), stk_row("ff_b1"), stk("ff_w2"), stk_row("ff_b2"),
              stk("gate2"),
              hp["w1"], hp["b1"][None, :], hp["w2"], hp["b2"][None, :],
              hp["w3"], hp["b3"][None, :])

    in_specs = [_batch_spec((N, NUM_FEATURE_NODE)),
                _batch_spec((N * N, NUM_FEATURE_EDGE)),
                _batch_spec((N * N, 1)),
                _batch_spec((N, 1)),
                _batch_spec((N, N))]
    in_specs += [_rep_spec(tuple(a.shape)) for a in inputs[5:]]

    out = pl.pallas_call(
        _fused_forward_kernel,
        out_shape=jax.ShapeDtypeStruct((B, 1, NUM_CLASSES), jnp.float32),
        grid=(B,),
        in_specs=in_specs,
        out_specs=pl.BlockSpec((1, 1, NUM_CLASSES), lambda b: (b, 0, 0)),
        scratch_shapes=[pltpu.VMEM((N, N, INNER), jnp.float32)],
        compiler_params=pltpu.CompilerParams(
            dimension_semantics=("parallel",)),
    )(*inputs)
    return out[:, 0, :]                                        # (B, NUM_CLASSES)


# ----------------------------- main ------------------------------------------
if __name__ == "__main__":
    key = jax.random.PRNGKey(0)
    kx, ke, ka, kp = jax.random.split(key, 4)

    B, N = 2, 8
    x = jax.random.normal(kx, (B, N, NUM_FEATURE_NODE), jnp.float32)
    # graph 0 has 8 nodes, graph 1 has 6 (padded to N=8)
    node_mask = jnp.array([[True] * 8, [True] * 6 + [False] * 2])
    pair_mask = node_mask[:, :, None] & node_mask[:, None, :]
    adj_raw = jax.random.bernoulli(ka, 0.4, (B, N, N))
    adj = jnp.logical_and(jnp.logical_or(adj_raw, jnp.swapaxes(adj_raw, 1, 2)),
                          pair_mask)
    edge_attr = (jax.random.normal(ke, (B, N, N, NUM_FEATURE_EDGE), jnp.float32)
                 * adj[..., None].astype(jnp.float32))

    params = init_params(kp)

    fwd = jax.jit(forward)
    out = fwd(params, x, edge_attr, adj, node_mask)
    jax.block_until_ready(out)
    assert out.shape == (B, NUM_CLASSES)
    print("KERNEL_OK")
</pallas_src>

<mosaic_0001>
module attributes {stable_mosaic.version = 11 : i64} {
  func.func @_fused_forward_kernel(%arg0: i32, %arg1: memref<1x8x8xf32, #tpu.memory_space<vmem>>, %arg2: memref<1x64x4xf32, #tpu.memory_space<vmem>>, %arg3: memref<1x64x1xf32, #tpu.memory_space<vmem>>, %arg4: memref<1x8x1xf32, #tpu.memory_space<vmem>>, %arg5: memref<1x8x8xf32, #tpu.memory_space<vmem>>, %arg6: memref<8x64xf32, #tpu.memory_space<vmem>>, %arg7: memref<8x64xf32, #tpu.memory_space<vmem>>, %arg8: memref<64x64xf32, #tpu.memory_space<vmem>>, %arg9: memref<8x32xf32, #tpu.memory_space<vmem>>, %arg10: memref<1x32xf32, #tpu.memory_space<vmem>>, %arg11: memref<4x32xf32, #tpu.memory_space<vmem>>, %arg12: memref<1x32xf32, #tpu.memory_space<vmem>>, %arg13: memref<1x32xf32, #tpu.memory_space<vmem>>, %arg14: memref<1x32xf32, #tpu.memory_space<vmem>>, %arg15: memref<2x1x32xf32, #tpu.memory_space<vmem>>, %arg16: memref<2x1x32xf32, #tpu.memory_space<vmem>>, %arg17: memref<2x32x192xf32, #tpu.memory_space<vmem>>, %arg18: memref<2x1x192xf32, #tpu.memory_space<vmem>>, %arg19: memref<2x32x64xf32, #tpu.memory_space<vmem>>, %arg20: memref<2x1x64xf32, #tpu.memory_space<vmem>>, %arg21: memref<2x64x32xf32, #tpu.memory_space<vmem>>, %arg22: memref<2x1x32xf32, #tpu.memory_space<vmem>>, %arg23: memref<2x3x32xf32, #tpu.memory_space<vmem>>, %arg24: memref<2x1x32xf32, #tpu.memory_space<vmem>>, %arg25: memref<2x1x32xf32, #tpu.memory_space<vmem>>, %arg26: memref<2x32x128xf32, #tpu.memory_space<vmem>>, %arg27: memref<2x1x128xf32, #tpu.memory_space<vmem>>, %arg28: memref<2x128x32xf32, #tpu.memory_space<vmem>>, %arg29: memref<2x1x32xf32, #tpu.memory_space<vmem>>, %arg30: memref<2x3x32xf32, #tpu.memory_space<vmem>>, %arg31: memref<32x32xf32, #tpu.memory_space<vmem>>, %arg32: memref<1x32xf32, #tpu.memory_space<vmem>>, %arg33: memref<32x32xf32, #tpu.memory_space<vmem>>, %arg34: memref<1x32xf32, #tpu.memory_space<vmem>>, %arg35: memref<32x3xf32, #tpu.memory_space<vmem>>, %arg36: memref<1x3xf32, #tpu.memory_space<vmem>>, %arg37: memref<1x1x3xf32, #tpu.memory_space<vmem>>, %arg38: memref<8x8x64xf32, #tpu.memory_space<vmem>>) attributes {dimension_semantics = [#tpu.dimension_semantics<parallel>], iteration_bounds = array<i64: 2>, scalar_prefetch = 0 : i64, scratch_operands = 1 : i64, tpu.core_type = #tpu.core_type<tc>, window_params = [{transform_indices = @transform_0, window_bounds = array<i64: 1, 8, 8>}, {transform_indices = @transform_1, window_bounds = array<i64: 1, 64, 4>}, {transform_indices = @transform_2, window_bounds = array<i64: 1, 64, 1>}, {transform_indices = @transform_3, window_bounds = array<i64: 1, 8, 1>}, {transform_indices = @transform_4, window_bounds = array<i64: 1, 8, 8>}, {pipeline_mode = #tpu.pipeline_mode<synchronous>, transform_indices = @transform_5, window_bounds = array<i64: 8, 64>}, {pipeline_mode = #tpu.pipeline_mode<synchronous>, transform_indices = @transform_6, window_bounds = array<i64: 8, 64>}, {pipeline_mode = #tpu.pipeline_mode<synchronous>, transform_indices = @transform_7, window_bounds = array<i64: 64, 64>}, {pipeline_mode = #tpu.pipeline_mode<synchronous>, transform_indices = @transform_8, window_bounds = array<i64: 8, 32>}, {pipeline_mode = #tpu.pipeline_mode<synchronous>, transform_indices = @transform_9, window_bounds = array<i64: 1, 32>}, {pipeline_mode = #tpu.pipeline_mode<synchronous>, transform_indices = @transform_10, window_bounds = array<i64: 4, 32>}, {pipeline_mode = #tpu.pipeline_mode<synchronous>, transform_indices = @transform_11, window_bounds = array<i64: 1, 32>}, {pipeline_mode = #tpu.pipeline_mode<synchronous>, transform_indices = @transform_12, window_bounds = array<i64: 1, 32>}, {pipeline_mode = #tpu.pipeline_mode<synchronous>, transform_indices = @transform_13, window_bounds = array<i64: 1, 32>}, {pipeline_mode = #tpu.pipeline_mode<synchronous>, transform_indices = @transform_14, window_bounds = array<i64: 2, 1, 32>}, {pipeline_mode = #tpu.pipeline_mode<synchronous>, transform_indices = @transform_15, window_bounds = array<i64: 2, 1, 32>}, {pipeline_mode = #tpu.pipeline_mode<synchronous>, transform_indices = @transform_16, window_bounds = array<i64: 2, 32, 192>}, {pipeline_mode = #tpu.pipeline_mode<synchronous>, transform_indices = @transform_17, window_bounds = array<i64: 2, 1, 192>}, {pipeline_mode = #tpu.pipeline_mode<synchronous>, transform_indices = @transform_18, window_bounds = array<i64: 2, 32, 64>}, {pipeline_mode = #tpu.pipeline_mode<synchronous>, transform_indices = @transform_19, window_bounds = array<i64: 2, 1, 64>}, {pipeline_mode = #tpu.pipeline_mode<synchronous>, transform_indices = @transform_20, window_bounds = array<i64: 2, 64, 32>}, {pipeline_mode = #tpu.pipeline_mode<synchronous>, transform_indices = @transform_21, window_bounds = array<i64: 2, 1, 32>}, {pipeline_mode = #tpu.pipeline_mode<synchronous>, transform_indices = @transform_22, window_bounds = array<i64: 2, 3, 32>}, {pipeline_mode = #tpu.pipeline_mode<synchronous>, transform_indices = @transform_23, window_bounds = array<i64: 2, 1, 32>}, {pipeline_mode = #tpu.pipeline_mode<synchronous>, transform_indices = @transform_24, window_bounds = array<i64: 2, 1, 32>}, {pipeline_mode = #tpu.pipeline_mode<synchronous>, transform_indices = @transform_25, window_bounds = array<i64: 2, 32, 128>}, {pipeline_mode = #tpu.pipeline_mode<synchronous>, transform_indices = @transform_26, window_bounds = array<i64: 2, 1, 128>}, {pipeline_mode = #tpu.pipeline_mode<synchronous>, transform_indices = @transform_27, window_bounds = array<i64: 2, 128, 32>}, {pipeline_mode = #tpu.pipeline_mode<synchronous>, transform_indices = @transform_28, window_bounds = array<i64: 2, 1, 32>}, {pipeline_mode = #tpu.pipeline_mode<synchronous>, transform_indices = @transform_29, window_bounds = array<i64: 2, 3, 32>}, {pipeline_mode = #tpu.pipeline_mode<synchronous>, transform_indices = @transform_30, window_bounds = array<i64: 32, 32>}, {pipeline_mode = #tpu.pipeline_mode<synchronous>, transform_indices = @transform_31, window_bounds = array<i64: 1, 32>}, {pipeline_mode = #tpu.pipeline_mode<synchronous>, transform_indices = @transform_32, window_bounds = array<i64: 32, 32>}, {pipeline_mode = #tpu.pipeline_mode<synchronous>, transform_indices = @transform_33, window_bounds = array<i64: 1, 32>}, {pipeline_mode = #tpu.pipeline_mode<synchronous>, transform_indices = @transform_34, window_bounds = array<i64: 32, 3>}, {pipeline_mode = #tpu.pipeline_mode<synchronous>, transform_indices = @transform_35, window_bounds = array<i64: 1, 3>}, {transform_indices = @transform_36, window_bounds = array<i64: 1, 1, 3>}]} {
    %c0 = arith.constant 0 : index
    %c0_0 = arith.constant 0 : index
    %c0_1 = arith.constant 0 : index
    %0 = vector.load %arg1[%c0, %c0_0, %c0_1] : memref<1x8x8xf32, #tpu.memory_space<vmem>>, vector<1x8x8xf32>
    %1 = vector.shape_cast %0 : vector<1x8x8xf32> to vector<8x8xf32>
    %c0_2 = arith.constant 0 : index
    %c0_3 = arith.constant 0 : index
    %c0_4 = arith.constant 0 : index
    %2 = vector.load %arg2[%c0_2, %c0_3, %c0_4] : memref<1x64x4xf32, #tpu.memory_space<vmem>>, vector<1x64x4xf32>
    %3 = vector.shape_cast %2 : vector<1x64x4xf32> to vector<64x4xf32>
    %c0_5 = arith.constant 0 : index
    %c0_6 = arith.constant 0 : index
    %c0_7 = arith.constant 0 : index
    %4 = vector.load %arg3[%c0_5, %c0_6, %c0_7] : memref<1x64x1xf32, #tpu.memory_space<vmem>>, vector<1x64x1xf32>
    %5 = vector.shape_cast %4 : vector<1x64x1xf32> to vector<64x1xf32>
    %c0_8 = arith.constant 0 : index
    %c0_9 = arith.constant 0 : index
    %c0_10 = arith.constant 0 : index
    %6 = vector.load %arg4[%c0_8, %c0_9, %c0_10] : memref<1x8x1xf32, #tpu.memory_space<vmem>>, vector<1x8x1xf32>
    %7 = vector.shape_cast %6 : vector<1x8x1xf32> to vector<8x1xf32>
    %c0_11 = arith.constant 0 : index
    %c0_12 = arith.constant 0 : index
    %c0_13 = arith.constant 0 : index
    %8 = vector.load %arg5[%c0_11, %c0_12, %c0_13] : memref<1x8x8xf32, #tpu.memory_space<vmem>>, vector<1x8x8xf32>
    %9 = vector.shape_cast %8 : vector<1x8x8xf32> to vector<8x8xf32>
    %c0_14 = arith.constant 0 : index
    %c0_15 = arith.constant 0 : index
    %10 = vector.load %arg6[%c0_14, %c0_15] : memref<8x64xf32, #tpu.memory_space<vmem>>, vector<8x64xf32>
    %c0_16 = arith.constant 0 : index
    %c0_17 = arith.constant 0 : index
    %11 = vector.load %arg7[%c0_16, %c0_17] : memref<8x64xf32, #tpu.memory_space<vmem>>, vector<8x64xf32>
    %c0_18 = arith.constant 0 : index
    %c0_19 = arith.constant 0 : index
    %12 = vector.load %arg8[%c0_18, %c0_19] : memref<64x64xf32, #tpu.memory_space<vmem>>, vector<64x64xf32>
    %c0_20 = arith.constant 0 : index
    %c0_21 = arith.constant 0 : index
    %13 = vector.load %arg9[%c0_20, %c0_21] : memref<8x32xf32, #tpu.memory_space<vmem>>, vector<8x32xf32>
    %cst = arith.constant dense<0.000000e+00> : vector<8x32xf32>
    %14 = tpu.matmul %1, %13, %cst {dimension_numbers = #tpu.dot_dimension_numbers<[1], [0], [0], [1], [0, 0, 1, 1], [], []>} : vector<8x8xf32>, vector<8x32xf32>, vector<8x32xf32> -> vector<8x32xf32>
    %c0_22 = arith.constant 0 : index
    %c0_23 = arith.constant 0 : index
    %15 = vector.load %arg10[%c0_22, %c0_23] : memref<1x32xf32, #tpu.memory_space<vmem>>, vector<1x32xf32>
    %16 = vector.broadcast %15 : vector<1x32xf32> to vector<8x32xf32>
    %17 = arith.addf %14, %16 : vector<8x32xf32>
    %18 = vector.broadcast %7 : vector<8x1xf32> to vector<8x32xf32>
    %19 = arith.mulf %17, %18 : vector<8x32xf32>
    %c0_24 = arith.constant 0 : index
    %c0_25 = arith.constant 0 : index
    %20 = vector.load %arg11[%c0_24, %c0_25] : memref<4x32xf32, #tpu.memory_space<vmem>>, vector<4x32xf32>
    %cst_26 = arith.constant dense<0.000000e+00> : vector<64x32xf32>
    %21 = tpu.matmul %3, %20, %cst_26 {dimension_numbers = #tpu.dot_dimension_numbers<[1], [0], [0], [1], [0, 0, 1, 1], [], []>} : vector<64x4xf32>, vector<4x32xf32>, vector<64x32xf32> -> vector<64x32xf32>
    %c0_27 = arith.constant 0 : index
    %c0_28 = arith.constant 0 : index
    %22 = vector.load %arg12[%c0_27, %c0_28] : memref<1x32xf32, #tpu.memory_space<vmem>>, vector<1x32xf32>
    %23 = vector.broadcast %22 : vector<1x32xf32> to vector<64x32xf32>
    %24 = arith.addf %21, %23 : vector<64x32xf32>
    %25 = vector.broadcast %5 : vector<64x1xf32> to vector<64x32xf32>
    %26 = arith.mulf %24, %25 : vector<64x32xf32>
    %c0_29 = arith.constant 0 : index
    %c0_30 = arith.constant 0 : index
    %27 = vector.load %arg13[%c0_29, %c0_30] : memref<1x32xf32, #tpu.memory_space<vmem>>, vector<1x32xf32>
    %28 = vector.broadcast %27 : vector<1x32xf32> to vector<64x32xf32>
    %29 = arith.addf %26, %28 : vector<64x32xf32>
    %c0_31 = arith.constant 0 : index
    %c0_32 = arith.constant 0 : index
    %30 = vector.load %arg14[%c0_31, %c0_32] : memref<1x32xf32, #tpu.memory_space<vmem>>, vector<1x32xf32>
    %31 = vector.broadcast %5 : vector<64x1xf32> to vector<64x32xf32>
    %32 = vector.broadcast %30 : vector<1x32xf32> to vector<64x32xf32>
    %33 = arith.mulf %31, %32 : vector<64x32xf32>
    %34 = arith.addf %29, %33 : vector<64x32xf32>
    %cst_33 = arith.constant 5.000000e-01 : f32
    %35 = vector.broadcast %cst_33 : f32 to vector<8x8xf32>
    %36 = arith.cmpf ogt, %9, %35 : vector<8x8xf32>
    %c0_34 = arith.constant 0 : index
    %c0_35 = arith.constant 0 : index
    %c0_36 = arith.constant 0 : index
    %37 = vector.load %arg15[%c0_34, %c0_35, %c0_36] : memref<2x1x32xf32, #tpu.memory_space<vmem>>, vector<1x1x32xf32>
    %38 = vector.shape_cast %37 : vector<1x1x32xf32> to vector<1x32xf32>
    %c0_37 = arith.constant 0 : index
    %c0_38 = arith.constant 0 : index
    %c0_39 = arith.constant 0 : index
    %39 = vector.load %arg16[%c0_37, %c0_38, %c0_39] : memref<2x1x32xf32, #tpu.memory_space<vmem>>, vector<1x1x32xf32>
    %40 = vector.shape_cast %39 : vector<1x1x32xf32> to vector<1x32xf32>
    %cst_40 = arith.constant dense<0.000000e+00> : vector<8xf32>
    %41 = vector.multi_reduction <add>, %19, %cst_40 [1] : vector<8x32xf32> to vector<8xf32>
    %42 = vector.shape_cast %41 : vector<8xf32> to vector<8x1xf32>
    %cst_41 = arith.constant 3.200000e+01 : f32
    %43 = vector.broadcast %cst_41 : f32 to vector<8x1xf32>
    %44 = arith.divf %42, %43 : vector<8x1xf32>
    %45 = vector.broadcast %44 : vector<8x1xf32> to vector<8x32xf32>
    %46 = arith.subf %19, %45 : vector<8x32xf32>
    %47 = arith.mulf %46, %46 : vector<8x32xf32>
    %cst_42 = arith.constant dense<0.000000e+00> : vector<8xf32>
    %48 = vector.multi_reduction <add>, %47, %cst_42 [1] : vector<8x32xf32> to vector<8xf32>
    %49 = vector.shape_cast %48 : vector<8xf32> to vector<8x1xf32>
    %cst_43 = arith.constant 3.200000e+01 : f32
    %50 = vector.broadcast %cst_43 : f32 to vector<8x1xf32>
    %51 = arith.divf %49, %50 : vector<8x1xf32>
    %cst_44 = arith.constant 9.99999974E-6 : f32
    %52 = vector.broadcast %cst_44 : f32 to vector<8x1xf32>
    %53 = arith.addf %51, %52 : vector<8x1xf32>
    %54 = math.rsqrt %53 : vector<8x1xf32>
    %55 = vector.broadcast %54 : vector<8x1xf32> to vector<8x32xf32>
    %56 = arith.mulf %46, %55 : vector<8x32xf32>
    %57 = vector.broadcast %38 : vector<1x32xf32> to vector<8x32xf32>
    %58 = arith.mulf %56, %57 : vector<8x32xf32>
    %59 = vector.broadcast %40 : vector<1x32xf32> to vector<8x32xf32>
    %60 = arith.addf %58, %59 : vector<8x32xf32>
    %c0_45 = arith.constant 0 : index
    %c0_46 = arith.constant 0 : index
    %c0_47 = arith.constant 0 : index
    %61 = vector.load %arg17[%c0_45, %c0_46, %c0_47] : memref<2x32x192xf32, #tpu.memory_space<vmem>>, vector<1x32x192xf32>
    %62 = vector.shape_cast %61 : vector<1x32x192xf32> to vector<32x192xf32>
    %cst_48 = arith.constant dense<0.000000e+00> : vector<8x192xf32>
    %63 = tpu.matmul %60, %62, %cst_48 {dimension_numbers = #tpu.dot_dimension_numbers<[1], [0], [0], [1], [0, 0, 1, 1], [], []>} : vector<8x32xf32>, vector<32x192xf32>, vector<8x192xf32> -> vector<8x192xf32>
    %c0_49 = arith.constant 0 : index
    %c0_50 = arith.constant 0 : index
    %c0_51 = arith.constant 0 : index
    %64 = vector.load %arg18[%c0_49, %c0_50, %c0_51] : memref<2x1x192xf32, #tpu.memory_space<vmem>>, vector<1x1x192xf32>
    %65 = vector.shape_cast %64 : vector<1x1x192xf32> to vector<1x192xf32>
    %66 = vector.broadcast %65 : vector<1x192xf32> to vector<8x192xf32>
    %67 = arith.addf %63, %66 : vector<8x192xf32>
    %68 = vector.extract_strided_slice %67 {offsets = [0, 0], sizes = [8, 64], strides = [1, 1]} : vector<8x192xf32> to vector<8x64xf32>
    %69 = arith.mulf %68, %10 : vector<8x64xf32>
    %cst_52 = arith.constant dense<0.000000e+00> : vector<8x64xf32>
    %70 = tpu.matmul %68, %12, %cst_52 {dimension_numbers = #tpu.dot_dimension_numbers<[1], [0], [0], [1], [0, 0, 1, 1], [], []>} : vector<8x64xf32>, vector<64x64xf32>, vector<8x64xf32> -> vector<8x64xf32>
    %71 = arith.mulf %70, %11 : vector<8x64xf32>
    %72 = arith.addf %69, %71 : vector<8x64xf32>
    %73 = vector.extract_strided_slice %67 {offsets = [0, 64], sizes = [8, 64], strides = [1, 1]} : vector<8x192xf32> to vector<8x64xf32>
    %74 = arith.mulf %73, %10 : vector<8x64xf32>
    %cst_53 = arith.constant dense<0.000000e+00> : vector<8x64xf32>
    %75 = tpu.matmul %73, %12, %cst_53 {dimension_numbers = #tpu.dot_dimension_numbers<[1], [0], [0], [1], [0, 0, 1, 1], [], []>} : vector<8x64xf32>, vector<64x64xf32>, vector<8x64xf32> -> vector<8x64xf32>
    %76 = arith.mulf %75, %11 : vector<8x64xf32>
    %77 = arith.addf %74, %76 : vector<8x64xf32>
    %78 = vector.extract_strided_slice %67 {offsets = [0, 128], sizes = [8, 64], strides = [1, 1]} : vector<8x192xf32> to vector<8x64xf32>
    %c0_54 = arith.constant 0 : index
    %c0_55 = arith.constant 0 : index
    %c0_56 = arith.constant 0 : index
    %79 = vector.load %arg19[%c0_54, %c0_55, %c0_56] : memref<2x32x64xf32, #tpu.memory_space<vmem>>, vector<1x32x64xf32>
    %80 = vector.shape_cast %79 : vector<1x32x64xf32> to vector<32x64xf32>
    %cst_57 = arith.constant dense<0.000000e+00> : vector<64x64xf32>
    %81 = tpu.matmul %34, %80, %cst_57 {dimension_numbers = #tpu.dot_dimension_numbers<[1], [0], [0], [1], [0, 0, 1, 1], [], []>} : vector<64x32xf32>, vector<32x64xf32>, vector<64x64xf32> -> vector<64x64xf32>
    %c0_58 = arith.constant 0 : index
    %c0_59 = arith.constant 0 : index
    %c0_60 = arith.constant 0 : index
    %82 = vector.load %arg20[%c0_58, %c0_59, %c0_60] : memref<2x1x64xf32, #tpu.memory_space<vmem>>, vector<1x1x64xf32>
    %83 = vector.shape_cast %82 : vector<1x1x64xf32> to vector<1x64xf32>
    %84 = vector.broadcast %83 : vector<1x64xf32> to vector<64x64xf32>
    %85 = arith.addf %81, %84 : vector<64x64xf32>
    %86 = vector.extract_strided_slice %85 {offsets = [0, 0], sizes = [8, 64], strides = [1, 1]} : vector<64x64xf32> to vector<8x64xf32>
    %c0_61 = arith.constant 0 : index
    %c0_62 = arith.constant 0 : index
    %c0_63 = arith.constant 0 : index
    %87 = vector.load %arg38[%c0_61, %c0_62, %c0_63] : memref<8x8x64xf32, #tpu.memory_space<vmem>>, vector<1x8x64xf32>
    %88 = vector.shape_cast %87 : vector<1x8x64xf32> to vector<8x64xf32>
    %89 = vector.shape_cast %86 : vector<8x64xf32> to vector<1x8x64xf32>
    tpu.vector_store %arg38[%c0_61, %c0_62, %c0_63], %89 {strides = array<i32>} : memref<8x8x64xf32, #tpu.memory_space<vmem>>, vector<1x8x64xf32>,
    %90 = vector.extract_strided_slice %85 {offsets = [8, 0], sizes = [8, 64], strides = [1, 1]} : vector<64x64xf32> to vector<8x64xf32>
    %c1 = arith.constant 1 : index
    %c0_64 = arith.constant 0 : index
    %c0_65 = arith.constant 0 : index
    %91 = vector.load %arg38[%c1, %c0_64, %c0_65] : memref<8x8x64xf32, #tpu.memory_space<vmem>>, vector<1x8x64xf32>
    %92 = vector.shape_cast %91 : vector<1x8x64xf32> to vector<8x64xf32>
    %93 = vector.shape_cast %90 : vector<8x64xf32> to vector<1x8x64xf32>
    tpu.vector_store %arg38[%c1, %c0_64, %c0_65], %93 {strides = array<i32>} : memref<8x8x64xf32, #tpu.memory_space<vmem>>, vector<1x8x64xf32>,
    %94 = vector.extract_strided_slice %85 {offsets = [16, 0], sizes = [8, 64], strides = [1, 1]} : vector<64x64xf32> to vector<8x64xf32>
    %c2 = arith.constant 2 : index
    %c0_66 = arith.constant 0 : index
    %c0_67 = arith.constant 0 : index
    %95 = vector.load %arg38[%c2, %c0_66, %c0_67] : memref<8x8x64xf32, #tpu.memory_space<vmem>>, vector<1x8x64xf32>
    %96 = vector.shape_cast %95 : vector<1x8x64xf32> to vector<8x64xf32>
    %97 = vector.shape_cast %94 : vector<8x64xf32> to vector<1x8x64xf32>
    tpu.vector_store %arg38[%c2, %c0_66, %c0_67], %97 {strides = array<i32>} : memref<8x8x64xf32, #tpu.memory_space<vmem>>, vector<1x8x64xf32>,
    %98 = vector.extract_strided_slice %85 {offsets = [24, 0], sizes = [8, 64], strides = [1, 1]} : vector<64x64xf32> to vector<8x64xf32>
    %c3 = arith.constant 3 : index
    %c0_68 = arith.constant 0 : index
    %c0_69 = arith.constant 0 : index
    %99 = vector.load %arg38[%c3, %c0_68, %c0_69] : memref<8x8x64xf32, #tpu.memory_space<vmem>>, vector<1x8x64xf32>
    %100 = vector.shape_cast %99 : vector<1x8x64xf32> to vector<8x64xf32>
    %101 = vector.shape_cast %98 : vector<8x64xf32> to vector<1x8x64xf32>
    tpu.vector_store %arg38[%c3, %c0_68, %c0_69], %101 {strides = array<i32>} : memref<8x8x64xf32, #tpu.memory_space<vmem>>, vector<1x8x64xf32>,
    %102 = vector.extract_strided_slice %85 {offsets = [32, 0], sizes = [8, 64], strides = [1, 1]} : vector<64x64xf32> to vector<8x64xf32>
    %c4 = arith.constant 4 : index
    %c0_70 = arith.constant 0 : index
    %c0_71 = arith.constant 0 : index
    %103 = vector.load %arg38[%c4, %c0_70, %c0_71] : memref<8x8x64xf32, #tpu.memory_space<vmem>>, vector<1x8x64xf32>
    %104 = vector.shape_cast %103 : vector<1x8x64xf32> to vector<8x64xf32>
    %105 = vector.shape_cast %102 : vector<8x64xf32> to vector<1x8x64xf32>
    tpu.vector_store %arg38[%c4, %c0_70, %c0_71], %105 {strides = array<i32>} : memref<8x8x64xf32, #tpu.memory_space<vmem>>, vector<1x8x64xf32>,
    %106 = vector.extract_strided_slice %85 {offsets = [40, 0], sizes = [8, 64], strides = [1, 1]} : vector<64x64xf32> to vector<8x64xf32>
    %c5 = arith.constant 5 : index
    %c0_72 = arith.constant 0 : index
    %c0_73 = arith.constant 0 : index
    %107 = vector.load %arg38[%c5, %c0_72, %c0_73] : memref<8x8x64xf32, #tpu.memory_space<vmem>>, vector<1x8x64xf32>
    %108 = vector.shape_cast %107 : vector<1x8x64xf32> to vector<8x64xf32>
    %109 = vector.shape_cast %106 : vector<8x64xf32> to vector<1x8x64xf32>
    tpu.vector_store %arg38[%c5, %c0_72, %c0_73], %109 {strides = array<i32>} : memref<8x8x64xf32, #tpu.memory_space<vmem>>, vector<1x8x64xf32>,
    %110 = vector.extract_strided_slice %85 {offsets = [48, 0], sizes = [8, 64], strides = [1, 1]} : vector<64x64xf32> to vector<8x64xf32>
    %c6 = arith.constant 6 : index
    %c0_74 = arith.constant 0 : index
    %c0_75 = arith.constant 0 : index
    %111 = vector.load %arg38[%c6, %c0_74, %c0_75] : memref<8x8x64xf32, #tpu.memory_space<vmem>>, vector<1x8x64xf32>
    %112 = vector.shape_cast %111 : vector<1x8x64xf32> to vector<8x64xf32>
    %113 = vector.shape_cast %110 : vector<8x64xf32> to vector<1x8x64xf32>
    tpu.vector_store %arg38[%c6, %c0_74, %c0_75], %113 {strides = array<i32>} : memref<8x8x64xf32, #tpu.memory_space<vmem>>, vector<1x8x64xf32>,
    %114 = vector.extract_strided_slice %85 {offsets = [56, 0], sizes = [8, 64], strides = [1, 1]} : vector<64x64xf32> to vector<8x64xf32>
    %c7 = arith.constant 7 : index
    %c0_76 = arith.constant 0 : index
    %c0_77 = arith.constant 0 : index
    %115 = vector.load %arg38[%c7, %c0_76, %c0_77] : memref<8x8x64xf32, #tpu.memory_space<vmem>>, vector<1x8x64xf32>
    %116 = vector.shape_cast %115 : vector<1x8x64xf32> to vector<8x64xf32>
    %117 = vector.shape_cast %114 : vector<8x64xf32> to vector<1x8x64xf32>
    tpu.vector_store %arg38[%c7, %c0_76, %c0_77], %117 {strides = array<i32>} : memref<8x8x64xf32, #tpu.memory_space<vmem>>, vector<1x8x64xf32>,
    %118 = vector.extract_strided_slice %72 {offsets = [0, 0], sizes = [8, 16], strides = [1, 1]} : vector<8x64xf32> to vector<8x16xf32>
    %119 = vector.extract_strided_slice %77 {offsets = [0, 0], sizes = [8, 16], strides = [1, 1]} : vector<8x64xf32> to vector<8x16xf32>
    %120 = vector.extract_strided_slice %78 {offsets = [0, 0], sizes = [8, 16], strides = [1, 1]} : vector<8x64xf32> to vector<8x16xf32>
    %c0_78 = arith.constant 0 : index
    %c0_79 = arith.constant 0 : index
    %c0_80 = arith.constant 0 : index
    %121 = vector.load %arg38[%c0_78, %c0_79, %c0_80] : memref<8x8x64xf32, #tpu.memory_space<vmem>>, vector<8x8x16xf32>
    %cst_81 = arith.constant dense<0.000000e+00> : vector<8x8xf32>
    %122 = tpu.matmul %118, %119, %cst_81 {dimension_numbers = #tpu.dot_dimension_numbers<[1], [1], [0], [0], [0, 0, 1, 0], [], []>} : vector<8x16xf32>, vector<8x16xf32>, vector<8x8xf32> -> vector<8x8xf32>
    %123 = vector.shape_cast %118 : vector<8x16xf32> to vector<8x1x16xf32>
    %124 = vector.broadcast %123 : vector<8x1x16xf32> to vector<8x8x16xf32>
    %125 = arith.mulf %124, %121 : vector<8x8x16xf32>
    %cst_82 = arith.constant dense<0.000000e+00> : vector<8x8xf32>
    %126 = vector.multi_reduction <add>, %125, %cst_82 [2] : vector<8x8x16xf32> to vector<8x8xf32>
    %127 = arith.addf %122, %126 : vector<8x8xf32>
    %cst_83 = arith.constant 2.500000e-01 : f32
    %128 = vector.broadcast %cst_83 : f32 to vector<8x8xf32>
    %129 = arith.mulf %127, %128 : vector<8x8xf32>
    %cst_84 = arith.constant -1.000000e+30 : f32
    %130 = vector.broadcast %cst_84 : f32 to vector<8x8xf32>
    %131 = arith.select %36, %129, %130 : vector<8x8xi1>, vector<8x8xf32>
    %cst_85 = arith.constant dense<0xFF800000> : vector<8xf32>
    %132 = vector.multi_reduction <maximumf>, %131, %cst_85 [1] : vector<8x8xf32> to vector<8xf32>
    %133 = vector.shape_cast %132 : vector<8xf32> to vector<8x1xf32>
    %134 = vector.broadcast %133 : vector<8x1xf32> to vector<8x8xf32>
    %135 = arith.subf %131, %134 : vector<8x8xf32>
    %136 = math.exp %135 : vector<8x8xf32>
    %cst_86 = arith.constant dense<0.000000e+00> : vector<8xf32>
    %137 = vector.multi_reduction <add>, %136, %cst_86 [1] : vector<8x8xf32> to vector<8xf32>
    %138 = vector.shape_cast %137 : vector<8xf32> to vector<8x1xf32>
    %139 = tpu.reciprocal %138 {approx = true} : vector<8x1xf32> -> vector<8x1xf32>
    %140 = vector.broadcast %139 : vector<8x1xf32> to vector<8x8xf32>
    %141 = arith.mulf %136, %140 : vector<8x8xf32>
    %cst_87 = arith.constant dense<0.000000e+00> : vector<8x16xf32>
    %142 = tpu.matmul %141, %120, %cst_87 {dimension_numbers = #tpu.dot_dimension_numbers<[1], [0], [0], [1], [0, 0, 1, 1], [], []>} : vector<8x8xf32>, vector<8x16xf32>, vector<8x16xf32> -> vector<8x16xf32>
    %143 = vector.shape_cast %141 : vector<8x8xf32> to vector<8x8x1xf32>
    %144 = vector.broadcast %143 : vector<8x8x1xf32> to vector<8x8x16xf32>
    %145 = arith.mulf %144, %121 : vector<8x8x16xf32>
    %cst_88 = arith.constant dense<0.000000e+00> : vector<8x16xf32>
    %146 = vector.multi_reduction <add>, %145, %cst_88 [1] : vector<8x8x16xf32> to vector<8x16xf32>
    %147 = arith.addf %142, %146 : vector<8x16xf32>
    %148 = vector.extract_strided_slice %72 {offsets = [0, 16], sizes = [8, 16], strides = [1, 1]} : vector<8x64xf32> to vector<8x16xf32>
    %149 = vector.extract_strided_slice %77 {offsets = [0, 16], sizes = [8, 16], strides = [1, 1]} : vector<8x64xf32> to vector<8x16xf32>
    %150 = vector.extract_strided_slice %78 {offsets = [0, 16], sizes = [8, 16], strides = [1, 1]} : vector<8x64xf32> to vector<8x16xf32>
    %c0_89 = arith.constant 0 : index
    %c0_90 = arith.constant 0 : index
    %c16 = arith.constant 16 : index
    %151 = vector.load %arg38[%c0_89, %c0_90, %c16] : memref<8x8x64xf32, #tpu.memory_space<vmem>>, vector<8x8x16xf32>
    %cst_91 = arith.constant dense<0.000000e+00> : vector<8x8xf32>
    %152 = tpu.matmul %148, %149, %cst_91 {dimension_numbers = #tpu.dot_dimension_numbers<[1], [1], [0], [0], [0, 0, 1, 0], [], []>} : vector<8x16xf32>, vector<8x16xf32>, vector<8x8xf32> -> vector<8x8xf32>
    %153 = vector.shape_cast %148 : vector<8x16xf32> to vector<8x1x16xf32>
    %154 = vector.broadcast %153 : vector<8x1x16xf32> to vector<8x8x16xf32>
    %155 = arith.mulf %154, %151 : vector<8x8x16xf32>
    %cst_92 = arith.constant dense<0.000000e+00> : vector<8x8xf32>
    %156 = vector.multi_reduction <add>, %155, %cst_92 [2] : vector<8x8x16xf32> to vector<8x8xf32>
    %157 = arith.addf %152, %156 : vector<8x8xf32>
    %cst_93 = arith.constant 2.500000e-01 : f32
    %158 = vector.broadcast %cst_93 : f32 to vector<8x8xf32>
    %159 = arith.mulf %157, %158 : vector<8x8xf32>
    %cst_94 = arith.constant -1.000000e+30 : f32
    %160 = vector.broadcast %cst_94 : f32 to vector<8x8xf32>
    %161 = arith.select %36, %159, %160 : vector<8x8xi1>, vector<8x8xf32>
    %cst_95 = arith.constant dense<0xFF800000> : vector<8xf32>
    %162 = vector.multi_reduction <maximumf>, %161, %cst_95 [1] : vector<8x8xf32> to vector<8xf32>
    %163 = vector.shape_cast %162 : vector<8xf32> to vector<8x1xf32>
    %164 = vector.broadcast %163 : vector<8x1xf32> to vector<8x8xf32>
    %165 = arith.subf %161, %164 : vector<8x8xf32>
    %166 = math.exp %165 : vector<8x8xf32>
    %cst_96 = arith.constant dense<0.000000e+00> : vector<8xf32>
    %167 = vector.multi_reduction <add>, %166, %cst_96 [1] : vector<8x8xf32> to vector<8xf32>
    %168 = vector.shape_cast %167 : vector<8xf32> to vector<8x1xf32>
    %169 = tpu.reciprocal %168 {approx = true} : vector<8x1xf32> -> vector<8x1xf32>
    %170 = vector.broadcast %169 : vector<8x1xf32> to vector<8x8xf32>
    %171 = arith.mulf %166, %170 : vector<8x8xf32>
    %cst_97 = arith.constant dense<0.000000e+00> : vector<8x16xf32>
    %172 = tpu.matmul %171, %150, %cst_97 {dimension_numbers = #tpu.dot_dimension_numbers<[1], [0], [0], [1], [0, 0, 1, 1], [], []>} : vector<8x8xf32>, vector<8x16xf32>, vector<8x16xf32> -> vector<8x16xf32>
    %173 = vector.shape_cast %171 : vector<8x8xf32> to vector<8x8x1xf32>
    %174 = vector.broadcast %173 : vector<8x8x1xf32> to vector<8x8x16xf32>
    %175 = arith.mulf %174, %151 : vector<8x8x16xf32>
    %cst_98 = arith.constant dense<0.000000e+00> : vector<8x16xf32>
    %176 = vector.multi_reduction <add>, %175, %cst_98 [1] : vector<8x8x16xf32> to vector<8x16xf32>
    %177 = arith.addf %172, %176 : vector<8x16xf32>
    %178 = vector.extract_strided_slice %72 {offsets = [0, 32], sizes = [8, 16], strides = [1, 1]} : vector<8x64xf32> to vector<8x16xf32>
    %179 = vector.extract_strided_slice %77 {offsets = [0, 32], sizes = [8, 16], strides = [1, 1]} : vector<8x64xf32> to vector<8x16xf32>
    %180 = vector.extract_strided_slice %78 {offsets = [0, 32], sizes = [8, 16], strides = [1, 1]} : vector<8x64xf32> to vector<8x16xf32>
    %c0_99 = arith.constant 0 : index
    %c0_100 = arith.constant 0 : index
    %c32 = arith.constant 32 : index
    %181 = vector.load %arg38[%c0_99, %c0_100, %c32] : memref<8x8x64xf32, #tpu.memory_space<vmem>>, vector<8x8x16xf32>
    %cst_101 = arith.constant dense<0.000000e+00> : vector<8x8xf32>
    %182 = tpu.matmul %178, %179, %cst_101 {dimension_numbers = #tpu.dot_dimension_numbers<[1], [1], [0], [0], [0, 0, 1, 0], [], []>} : vector<8x16xf32>, vector<8x16xf32>, vector<8x8xf32> -> vector<8x8xf32>
    %183 = vector.shape_cast %178 : vector<8x16xf32> to vector<8x1x16xf32>
    %184 = vector.broadcast %183 : vector<8x1x16xf32> to vector<8x8x16xf32>
    %185 = arith.mulf %184, %181 : vector<8x8x16xf32>
    %cst_102 = arith.constant dense<0.000000e+00> : vector<8x8xf32>
    %186 = vector.multi_reduction <add>, %185, %cst_102 [2] : vector<8x8x16xf32> to vector<8x8xf32>
    %187 = arith.addf %182, %186 : vector<8x8xf32>
    %cst_103 = arith.constant 2.500000e-01 : f32
    %188 = vector.broadcast %cst_103 : f32 to vector<8x8xf32>
    %189 = arith.mulf %187, %188 : vector<8x8xf32>
    %cst_104 = arith.constant -1.000000e+30 : f32
    %190 = vector.broadcast %cst_104 : f32 to vector<8x8xf32>
    %191 = arith.select %36, %189, %190 : vector<8x8xi1>, vector<8x8xf32>
    %cst_105 = arith.constant dense<0xFF800000> : vector<8xf32>
    %192 = vector.multi_reduction <maximumf>, %191, %cst_105 [1] : vector<8x8xf32> to vector<8xf32>
    %193 = vector.shape_cast %192 : vector<8xf32> to vector<8x1xf32>
    %194 = vector.broadcast %193 : vector<8x1xf32> to vector<8x8xf32>
    %195 = arith.subf %191, %194 : vector<8x8xf32>
    %196 = math.exp %195 : vector<8x8xf32>
    %cst_106 = arith.constant dense<0.000000e+00> : vector<8xf32>
    %197 = vector.multi_reduction <add>, %196, %cst_106 [1] : vector<8x8xf32> to vector<8xf32>
    %198 = vector.shape_cast %197 : vector<8xf32> to vector<8x1xf32>
    %199 = tpu.reciprocal %198 {approx = true} : vector<8x1xf32> -> vector<8x1xf32>
    %200 = vector.broadcast %199 : vector<8x1xf32> to vector<8x8xf32>
    %201 = arith.mulf %196, %200 : vector<8x8xf32>
    %cst_107 = arith.constant dense<0.000000e+00> : vector<8x16xf32>
    %202 = tpu.matmul %201, %180, %cst_107 {dimension_numbers = #tpu.dot_dimension_numbers<[1], [0], [0], [1], [0, 0, 1, 1], [], []>} : vector<8x8xf32>, vector<8x16xf32>, vector<8x16xf32> -> vector<8x16xf32>
    %203 = vector.shape_cast %201 : vector<8x8xf32> to vector<8x8x1xf32>
    %204 = vector.broadcast %203 : vector<8x8x1xf32> to vector<8x8x16xf32>
    %205 = arith.mulf %204, %181 : vector<8x8x16xf32>
    %cst_108 = arith.constant dense<0.000000e+00> : vector<8x16xf32>
    %206 = vector.multi_reduction <add>, %205, %cst_108 [1] : vector<8x8x16xf32> to vector<8x16xf32>
    %207 = arith.addf %202, %206 : vector<8x16xf32>
    %208 = vector.extract_strided_slice %72 {offsets = [0, 48], sizes = [8, 16], strides = [1, 1]} : vector<8x64xf32> to vector<8x16xf32>
    %209 = vector.extract_strided_slice %77 {offsets = [0, 48], sizes = [8, 16], strides = [1, 1]} : vector<8x64xf32> to vector<8x16xf32>
    %210 = vector.extract_strided_slice %78 {offsets = [0, 48], sizes = [8, 16], strides = [1, 1]} : vector<8x64xf32> to vector<8x16xf32>
    %c0_109 = arith.constant 0 : index
    %c0_110 = arith.constant 0 : index
    %c48 = arith.constant 48 : index
    %211 = vector.load %arg38[%c0_109, %c0_110, %c48] : memref<8x8x64xf32, #tpu.memory_space<vmem>>, vector<8x8x16xf32>
    %cst_111 = arith.constant dense<0.000000e+00> : vector<8x8xf32>
    %212 = tpu.matmul %208, %209, %cst_111 {dimension_numbers = #tpu.dot_dimension_numbers<[1], [1], [0], [0], [0, 0, 1, 0], [], []>} : vector<8x16xf32>, vector<8x16xf32>, vector<8x8xf32> -> vector<8x8xf32>
    %213 = vector.shape_cast %208 : vector<8x16xf32> to vector<8x1x16xf32>
    %214 = vector.broadcast %213 : vector<8x1x16xf32> to vector<8x8x16xf32>
    %215 = arith.mulf %214, %211 : vector<8x8x16xf32>
    %cst_112 = arith.constant dense<0.000000e+00> : vector<8x8xf32>
    %216 = vector.multi_reduction <add>, %215, %cst_112 [2] : vector<8x8x16xf32> to vector<8x8xf32>
    %217 = arith.addf %212, %216 : vector<8x8xf32>
    %cst_113 = arith.constant 2.500000e-01 : f32
    %218 = vector.broadcast %cst_113 : f32 to vector<8x8xf32>
    %219 = arith.mulf %217, %218 : vector<8x8xf32>
    %cst_114 = arith.constant -1.000000e+30 : f32
    %220 = vector.broadcast %cst_114 : f32 to vector<8x8xf32>
    %221 = arith.select %36, %219, %220 : vector<8x8xi1>, vector<8x8xf32>
    %cst_115 = arith.constant dense<0xFF800000> : vector<8xf32>
    %222 = vector.multi_reduction <maximumf>, %221, %cst_115 [1] : vector<8x8xf32> to vector<8xf32>
    %223 = vector.shape_cast %222 : vector<8xf32> to vector<8x1xf32>
    %224 = vector.broadcast %223 : vector<8x1xf32> to vector<8x8xf32>
    %225 = arith.subf %221, %224 : vector<8x8xf32>
    %226 = math.exp %225 : vector<8x8xf32>
    %cst_116 = arith.constant dense<0.000000e+00> : vector<8xf32>
    %227 = vector.multi_reduction <add>, %226, %cst_116 [1] : vector<8x8xf32> to vector<8xf32>
    %228 = vector.shape_cast %227 : vector<8xf32> to vector<8x1xf32>
    %229 = tpu.reciprocal %228 {approx = true} : vector<8x1xf32> -> vector<8x1xf32>
    %230 = vector.broadcast %229 : vector<8x1xf32> to vector<8x8xf32>
    %231 = arith.mulf %226, %230 : vector<8x8xf32>
    %cst_117 = arith.constant dense<0.000000e+00> : vector<8x16xf32>
    %232 = tpu.matmul %231, %210, %cst_117 {dimension_numbers = #tpu.dot_dimension_numbers<[1], [0], [0], [1], [0, 0, 1, 1], [], []>} : vector<8x8xf32>, vector<8x16xf32>, vector<8x16xf32> -> vector<8x16xf32>
    %233 = vector.shape_cast %231 : vector<8x8xf32> to vector<8x8x1xf32>
    %234 = vector.broadcast %233 : vector<8x8x1xf32> to vector<8x8x16xf32>
    %235 = arith.mulf %234, %211 : vector<8x8x16xf32>
    %cst_118 = arith.constant dense<0.000000e+00> : vector<8x16xf32>
    %236 = vector.multi_reduction <add>, %235, %cst_118 [1] : vector<8x8x16xf32> to vector<8x16xf32>
    %237 = arith.addf %232, %236 : vector<8x16xf32>
    %238 = tpu.concatenate %147, %177, %207, %237 in 1 : vector<8x16xf32>, vector<8x16xf32>, vector<8x16xf32>, vector<8x16xf32> -> vector<8x64xf32>
    %c0_119 = arith.constant 0 : index
    %c0_120 = arith.constant 0 : index
    %c0_121 = arith.constant 0 : index
    %239 = vector.load %arg21[%c0_119, %c0_120, %c0_121] : memref<2x64x32xf32, #tpu.memory_space<vmem>>, vector<1x64x32xf32>
    %240 = vector.shape_cast %239 : vector<1x64x32xf32> to vector<64x32xf32>
    %cst_122 = arith.constant dense<0.000000e+00> : vector<8x32xf32>
    %241 = tpu.matmul %238, %240, %cst_122 {dimension_numbers = #tpu.dot_dimension_numbers<[1], [0], [0], [1], [0, 0, 1, 1], [], []>} : vector<8x64xf32>, vector<64x32xf32>, vector<8x32xf32> -> vector<8x32xf32>
    %c0_123 = arith.constant 0 : index
    %c0_124 = arith.constant 0 : index
    %c0_125 = arith.constant 0 : index
    %242 = vector.load %arg22[%c0_123, %c0_124, %c0_125] : memref<2x1x32xf32, #tpu.memory_space<vmem>>, vector<1x1x32xf32>
    %243 = vector.shape_cast %242 : vector<1x1x32xf32> to vector<1x32xf32>
    %244 = vector.broadcast %243 : vector<1x32xf32> to vector<8x32xf32>
    %245 = arith.addf %241, %244 : vector<8x32xf32>
    %c0_126 = arith.constant 0 : index
    %c0_127 = arith.constant 0 : index
    %c0_128 = arith.constant 0 : index
    %246 = vector.load %arg23[%c0_126, %c0_127, %c0_128] : memref<2x3x32xf32, #tpu.memory_space<vmem>>, vector<1x3x32xf32>
    %247 = vector.shape_cast %246 : vector<1x3x32xf32> to vector<3x32xf32>
    %248 = vector.extract_strided_slice %247 {offsets = [0, 0], sizes = [1, 32], strides = [1, 1]} : vector<3x32xf32> to vector<1x32xf32>
    %249 = vector.broadcast %248 : vector<1x32xf32> to vector<8x32xf32>
    %250 = arith.mulf %245, %249 : vector<8x32xf32>
    %251 = vector.extract_strided_slice %247 {offsets = [1, 0], sizes = [1, 32], strides = [1, 1]} : vector<3x32xf32> to vector<1x32xf32>
    %252 = vector.broadcast %251 : vector<1x32xf32> to vector<8x32xf32>
    %253 = arith.mulf %19, %252 : vector<8x32xf32>
    %254 = arith.addf %250, %253 : vector<8x32xf32>
    %255 = arith.subf %245, %19 : vector<8x32xf32>
    %256 = vector.extract_strided_slice %247 {offsets = [2, 0], sizes = [1, 32], strides = [1, 1]} : vector<3x32xf32> to vector<1x32xf32>
    %257 = vector.broadcast %256 : vector<1x32xf32> to vector<8x32xf32>
    %258 = arith.mulf %255, %257 : vector<8x32xf32>
    %259 = arith.addf %254, %258 : vector<8x32xf32>
    %cst_129 = arith.constant dense<0.000000e+00> : vector<8xf32>
    %260 = vector.multi_reduction <add>, %259, %cst_129 [1] : vector<8x32xf32> to vector<8xf32>
    %261 = vector.shape_cast %260 : vector<8xf32> to vector<8x1xf32>
    %262 = arith.negf %261 : vector<8x1xf32>
    %263 = math.exp %262 : vector<8x1xf32>
    %cst_130 = arith.constant 1.000000e+00 : f32
    %264 = vector.broadcast %cst_130 : f32 to vector<8x1xf32>
    %265 = arith.addf %264, %263 : vector<8x1xf32>
    %266 = arith.divf %264, %265 : vector<8x1xf32>
    %267 = vector.broadcast %266 : vector<8x1xf32> to vector<8x32xf32>
    %268 = arith.mulf %245, %267 : vector<8x32xf32>
    %cst_131 = arith.constant 1.000000e+00 : f32
    %269 = vector.broadcast %cst_131 : f32 to vector<8x1xf32>
    %270 = arith.subf %269, %266 : vector<8x1xf32>
    %271 = vector.broadcast %270 : vector<8x1xf32> to vector<8x32xf32>
    %272 = arith.mulf %19, %271 : vector<8x32xf32>
    %273 = arith.addf %268, %272 : vector<8x32xf32>
    %c0_132 = arith.constant 0 : index
    %c0_133 = arith.constant 0 : index
    %c0_134 = arith.constant 0 : index
    %274 = vector.load %arg24[%c0_132, %c0_133, %c0_134] : memref<2x1x32xf32, #tpu.memory_space<vmem>>, vector<1x1x32xf32>
    %275 = vector.shape_cast %274 : vector<1x1x32xf32> to vector<1x32xf32>
    %c0_135 = arith.constant 0 : index
    %c0_136 = arith.constant 0 : index
    %c0_137 = arith.constant 0 : index
    %276 = vector.load %arg25[%c0_135, %c0_136, %c0_137] : memref<2x1x32xf32, #tpu.memory_space<vmem>>, vector<1x1x32xf32>
    %277 = vector.shape_cast %276 : vector<1x1x32xf32> to vector<1x32xf32>
    %cst_138 = arith.constant dense<0.000000e+00> : vector<8xf32>
    %278 = vector.multi_reduction <add>, %273, %cst_138 [1] : vector<8x32xf32> to vector<8xf32>
    %279 = vector.shape_cast %278 : vector<8xf32> to vector<8x1xf32>
    %cst_139 = arith.constant 3.200000e+01 : f32
    %280 = vector.broadcast %cst_139 : f32 to vector<8x1xf32>
    %281 = arith.divf %279, %280 : vector<8x1xf32>
    %282 = vector.broadcast %281 : vector<8x1xf32> to vector<8x32xf32>
    %283 = arith.subf %273, %282 : vector<8x32xf32>
    %284 = arith.mulf %283, %283 : vector<8x32xf32>
    %cst_140 = arith.constant dense<0.000000e+00> : vector<8xf32>
    %285 = vector.multi_reduction <add>, %284, %cst_140 [1] : vector<8x32xf32> to vector<8xf32>
    %286 = vector.shape_cast %285 : vector<8xf32> to vector<8x1xf32>
    %cst_141 = arith.constant 3.200000e+01 : f32
    %287 = vector.broadcast %cst_141 : f32 to vector<8x1xf32>
    %288 = arith.divf %286, %287 : vector<8x1xf32>
    %cst_142 = arith.constant 9.99999974E-6 : f32
    %289 = vector.broadcast %cst_142 : f32 to vector<8x1xf32>
    %290 = arith.addf %288, %289 : vector<8x1xf32>
    %291 = math.rsqrt %290 : vector<8x1xf32>
    %292 = vector.broadcast %291 : vector<8x1xf32> to vector<8x32xf32>
    %293 = arith.mulf %283, %292 : vector<8x32xf32>
    %294 = vector.broadcast %275 : vector<1x32xf32> to vector<8x32xf32>
    %295 = arith.mulf %293, %294 : vector<8x32xf32>
    %296 = vector.broadcast %277 : vector<1x32xf32> to vector<8x32xf32>
    %297 = arith.addf %295, %296 : vector<8x32xf32>
    %c0_143 = arith.constant 0 : index
    %c0_144 = arith.constant 0 : index
    %c0_145 = arith.constant 0 : index
    %298 = vector.load %arg26[%c0_143, %c0_144, %c0_145] : memref<2x32x128xf32, #tpu.memory_space<vmem>>, vector<1x32x128xf32>
    %299 = vector.shape_cast %298 : vector<1x32x128xf32> to vector<32x128xf32>
    %cst_146 = arith.constant dense<0.000000e+00> : vector<8x128xf32>
    %300 = tpu.matmul %297, %299, %cst_146 {dimension_numbers = #tpu.dot_dimension_numbers<[1], [0], [0], [1], [0, 0, 1, 1], [], []>} : vector<8x32xf32>, vector<32x128xf32>, vector<8x128xf32> -> vector<8x128xf32>
    %c0_147 = arith.constant 0 : index
    %c0_148 = arith.constant 0 : index
    %c0_149 = arith.constant 0 : index
    %301 = vector.load %arg27[%c0_147, %c0_148, %c0_149] : memref<2x1x128xf32, #tpu.memory_space<vmem>>, vector<1x1x128xf32>
    %302 = vector.shape_cast %301 : vector<1x1x128xf32> to vector<1x128xf32>
    %303 = vector.broadcast %302 : vector<1x128xf32> to vector<8x128xf32>
    %304 = arith.addf %300, %303 : vector<8x128xf32>
    %305 = arith.negf %304 : vector<8x128xf32>
    %306 = math.exp %305 : vector<8x128xf32>
    %cst_150 = arith.constant 1.000000e+00 : f32
    %307 = vector.broadcast %cst_150 : f32 to vector<8x128xf32>
    %308 = arith.addf %307, %306 : vector<8x128xf32>
    %309 = arith.divf %307, %308 : vector<8x128xf32>
    %310 = arith.mulf %304, %309 : vector<8x128xf32>
    %c0_151 = arith.constant 0 : index
    %c0_152 = arith.constant 0 : index
    %c0_153 = arith.constant 0 : index
    %311 = vector.load %arg28[%c0_151, %c0_152, %c0_153] : memref<2x128x32xf32, #tpu.memory_space<vmem>>, vector<1x128x32xf32>
    %312 = vector.shape_cast %311 : vector<1x128x32xf32> to vector<128x32xf32>
    %cst_154 = arith.constant dense<0.000000e+00> : vector<8x32xf32>
    %313 = tpu.matmul %310, %312, %cst_154 {dimension_numbers = #tpu.dot_dimension_numbers<[1], [0], [0], [1], [0, 0, 1, 1], [], []>} : vector<8x128xf32>, vector<128x32xf32>, vector<8x32xf32> -> vector<8x32xf32>
    %c0_155 = arith.constant 0 : index
    %c0_156 = arith.constant 0 : index
    %c0_157 = arith.constant 0 : index
    %314 = vector.load %arg29[%c0_155, %c0_156, %c0_157] : memref<2x1x32xf32, #tpu.memory_space<vmem>>, vector<1x1x32xf32>
    %315 = vector.shape_cast %314 : vector<1x1x32xf32> to vector<1x32xf32>
    %316 = vector.broadcast %315 : vector<1x32xf32> to vector<8x32xf32>
    %317 = arith.addf %313, %316 : vector<8x32xf32>
    %c0_158 = arith.constant 0 : index
    %c0_159 = arith.constant 0 : index
    %c0_160 = arith.constant 0 : index
    %318 = vector.load %arg30[%c0_158, %c0_159, %c0_160] : memref<2x3x32xf32, #tpu.memory_space<vmem>>, vector<1x3x32xf32>
    %319 = vector.shape_cast %318 : vector<1x3x32xf32> to vector<3x32xf32>
    %320 = vector.extract_strided_slice %319 {offsets = [0, 0], sizes = [1, 32], strides = [1, 1]} : vector<3x32xf32> to vector<1x32xf32>
    %321 = vector.broadcast %320 : vector<1x32xf32> to vector<8x32xf32>
    %322 = arith.mulf %317, %321 : vector<8x32xf32>
    %323 = vector.extract_strided_slice %319 {offsets = [1, 0], sizes = [1, 32], strides = [1, 1]} : vector<3x32xf32> to vector<1x32xf32>
    %324 = vector.broadcast %323 : vector<1x32xf32> to vector<8x32xf32>
    %325 = arith.mulf %273, %324 : vector<8x32xf32>
    %326 = arith.addf %322, %325 : vector<8x32xf32>
    %327 = arith.subf %317, %273 : vector<8x32xf32>
    %328 = vector.extract_strided_slice %319 {offsets = [2, 0], sizes = [1, 32], strides = [1, 1]} : vector<3x32xf32> to vector<1x32xf32>
    %329 = vector.broadcast %328 : vector<1x32xf32> to vector<8x32xf32>
    %330 = arith.mulf %327, %329 : vector<8x32xf32>
    %331 = arith.addf %326, %330 : vector<8x32xf32>
    %cst_161 = arith.constant dense<0.000000e+00> : vector<8xf32>
    %332 = vector.multi_reduction <add>, %331, %cst_161 [1] : vector<8x32xf32> to vector<8xf32>
    %333 = vector.shape_cast %332 : vector<8xf32> to vector<8x1xf32>
    %334 = arith.negf %333 : vector<8x1xf32>
    %335 = math.exp %334 : vector<8x1xf32>
    %cst_162 = arith.constant 1.000000e+00 : f32
    %336 = vector.broadcast %cst_162 : f32 to vector<8x1xf32>
    %337 = arith.addf %336, %335 : vector<8x1xf32>
    %338 = arith.divf %336, %337 : vector<8x1xf32>
    %339 = vector.broadcast %338 : vector<8x1xf32> to vector<8x32xf32>
    %340 = arith.mulf %317, %339 : vector<8x32xf32>
    %cst_163 = arith.constant 1.000000e+00 : f32
    %341 = vector.broadcast %cst_163 : f32 to vector<8x1xf32>
    %342 = arith.subf %341, %338 : vector<8x1xf32>
    %343 = vector.broadcast %342 : vector<8x1xf32> to vector<8x32xf32>
    %344 = arith.mulf %273, %343 : vector<8x32xf32>
    %345 = arith.addf %340, %344 : vector<8x32xf32>
    %c1_164 = arith.constant 1 : index
    %c0_165 = arith.constant 0 : index
    %c0_166 = arith.constant 0 : index
    %346 = vector.load %arg15[%c1_164, %c0_165, %c0_166] : memref<2x1x32xf32, #tpu.memory_space<vmem>>, vector<1x1x32xf32>
    %347 = vector.shape_cast %346 : vector<1x1x32xf32> to vector<1x32xf32>
    %c1_167 = arith.constant 1 : index
    %c0_168 = arith.constant 0 : index
    %c0_169 = arith.constant 0 : index
    %348 = vector.load %arg16[%c1_167, %c0_168, %c0_169] : memref<2x1x32xf32, #tpu.memory_space<vmem>>, vector<1x1x32xf32>
    %349 = vector.shape_cast %348 : vector<1x1x32xf32> to vector<1x32xf32>
    %cst_170 = arith.constant dense<0.000000e+00> : vector<8xf32>
    %350 = vector.multi_reduction <add>, %345, %cst_170 [1] : vector<8x32xf32> to vector<8xf32>
    %351 = vector.shape_cast %350 : vector<8xf32> to vector<8x1xf32>
    %cst_171 = arith.constant 3.200000e+01 : f32
    %352 = vector.broadcast %cst_171 : f32 to vector<8x1xf32>
    %353 = arith.divf %351, %352 : vector<8x1xf32>
    %354 = vector.broadcast %353 : vector<8x1xf32> to vector<8x32xf32>
    %355 = arith.subf %345, %354 : vector<8x32xf32>
    %356 = arith.mulf %355, %355 : vector<8x32xf32>
    %cst_172 = arith.constant dense<0.000000e+00> : vector<8xf32>
    %357 = vector.multi_reduction <add>, %356, %cst_172 [1] : vector<8x32xf32> to vector<8xf32>
    %358 = vector.shape_cast %357 : vector<8xf32> to vector<8x1xf32>
    %cst_173 = arith.constant 3.200000e+01 : f32
    %359 = vector.broadcast %cst_173 : f32 to vector<8x1xf32>
    %360 = arith.divf %358, %359 : vector<8x1xf32>
    %cst_174 = arith.constant 9.99999974E-6 : f32
    %361 = vector.broadcast %cst_174 : f32 to vector<8x1xf32>
    %362 = arith.addf %360, %361 : vector<8x1xf32>
    %363 = math.rsqrt %362 : vector<8x1xf32>
    %364 = vector.broadcast %363 : vector<8x1xf32> to vector<8x32xf32>
    %365 = arith.mulf %355, %364 : vector<8x32xf32>
    %366 = vector.broadcast %347 : vector<1x32xf32> to vector<8x32xf32>
    %367 = arith.mulf %365, %366 : vector<8x32xf32>
    %368 = vector.broadcast %349 : vector<1x32xf32> to vector<8x32xf32>
    %369 = arith.addf %367, %368 : vector<8x32xf32>
    %c1_175 = arith.constant 1 : index
    %c0_176 = arith.constant 0 : index
    %c0_177 = arith.constant 0 : index
    %370 = vector.load %arg17[%c1_175, %c0_176, %c0_177] : memref<2x32x192xf32, #tpu.memory_space<vmem>>, vector<1x32x192xf32>
    %371 = vector.shape_cast %370 : vector<1x32x192xf32> to vector<32x192xf32>
    %cst_178 = arith.constant dense<0.000000e+00> : vector<8x192xf32>
    %372 = tpu.matmul %369, %371, %cst_178 {dimension_numbers = #tpu.dot_dimension_numbers<[1], [0], [0], [1], [0, 0, 1, 1], [], []>} : vector<8x32xf32>, vector<32x192xf32>, vector<8x192xf32> -> vector<8x192xf32>
    %c1_179 = arith.constant 1 : index
    %c0_180 = arith.constant 0 : index
    %c0_181 = arith.constant 0 : index
    %373 = vector.load %arg18[%c1_179, %c0_180, %c0_181] : memref<2x1x192xf32, #tpu.memory_space<vmem>>, vector<1x1x192xf32>
    %374 = vector.shape_cast %373 : vector<1x1x192xf32> to vector<1x192xf32>
    %375 = vector.broadcast %374 : vector<1x192xf32> to vector<8x192xf32>
    %376 = arith.addf %372, %375 : vector<8x192xf32>
    %377 = vector.extract_strided_slice %376 {offsets = [0, 0], sizes = [8, 64], strides = [1, 1]} : vector<8x192xf32> to vector<8x64xf32>
    %378 = arith.mulf %377, %10 : vector<8x64xf32>
    %cst_182 = arith.constant dense<0.000000e+00> : vector<8x64xf32>
    %379 = tpu.matmul %377, %12, %cst_182 {dimension_numbers = #tpu.dot_dimension_numbers<[1], [0], [0], [1], [0, 0, 1, 1], [], []>} : vector<8x64xf32>, vector<64x64xf32>, vector<8x64xf32> -> vector<8x64xf32>
    %380 = arith.mulf %379, %11 : vector<8x64xf32>
    %381 = arith.addf %378, %380 : vector<8x64xf32>
    %382 = vector.extract_strided_slice %376 {offsets = [0, 64], sizes = [8, 64], strides = [1, 1]} : vector<8x192xf32> to vector<8x64xf32>
    %383 = arith.mulf %382, %10 : vector<8x64xf32>
    %cst_183 = arith.constant dense<0.000000e+00> : vector<8x64xf32>
    %384 = tpu.matmul %382, %12, %cst_183 {dimension_numbers = #tpu.dot_dimension_numbers<[1], [0], [0], [1], [0, 0, 1, 1], [], []>} : vector<8x64xf32>, vector<64x64xf32>, vector<8x64xf32> -> vector<8x64xf32>
    %385 = arith.mulf %384, %11 : vector<8x64xf32>
    %386 = arith.addf %383, %385 : vector<8x64xf32>
    %387 = vector.extract_strided_slice %376 {offsets = [0, 128], sizes = [8, 64], strides = [1, 1]} : vector<8x192xf32> to vector<8x64xf32>
    %c1_184 = arith.constant 1 : index
    %c0_185 = arith.constant 0 : index
    %c0_186 = arith.constant 0 : index
    %388 = vector.load %arg19[%c1_184, %c0_185, %c0_186] : memref<2x32x64xf32, #tpu.memory_space<vmem>>, vector<1x32x64xf32>
    %389 = vector.shape_cast %388 : vector<1x32x64xf32> to vector<32x64xf32>
    %cst_187 = arith.constant dense<0.000000e+00> : vector<64x64xf32>
    %390 = tpu.matmul %34, %389, %cst_187 {dimension_numbers = #tpu.dot_dimension_numbers<[1], [0], [0], [1], [0, 0, 1, 1], [], []>} : vector<64x32xf32>, vector<32x64xf32>, vector<64x64xf32> -> vector<64x64xf32>
    %c1_188 = arith.constant 1 : index
    %c0_189 = arith.constant 0 : index
    %c0_190 = arith.constant 0 : index
    %391 = vector.load %arg20[%c1_188, %c0_189, %c0_190] : memref<2x1x64xf32, #tpu.memory_space<vmem>>, vector<1x1x64xf32>
    %392 = vector.shape_cast %391 : vector<1x1x64xf32> to vector<1x64xf32>
    %393 = vector.broadcast %392 : vector<1x64xf32> to vector<64x64xf32>
    %394 = arith.addf %390, %393 : vector<64x64xf32>
    %395 = vector.extract_strided_slice %394 {offsets = [0, 0], sizes = [8, 64], strides = [1, 1]} : vector<64x64xf32> to vector<8x64xf32>
    %c0_191 = arith.constant 0 : index
    %c0_192 = arith.constant 0 : index
    %c0_193 = arith.constant 0 : index
    %396 = vector.load %arg38[%c0_191, %c0_192, %c0_193] : memref<8x8x64xf32, #tpu.memory_space<vmem>>, vector<1x8x64xf32>
    %397 = vector.shape_cast %396 : vector<1x8x64xf32> to vector<8x64xf32>
    %398 = vector.shape_cast %395 : vector<8x64xf32> to vector<1x8x64xf32>
    tpu.vector_store %arg38[%c0_191, %c0_192, %c0_193], %398 {strides = array<i32>} : memref<8x8x64xf32, #tpu.memory_space<vmem>>, vector<1x8x64xf32>,
    %399 = vector.extract_strided_slice %394 {offsets = [8, 0], sizes = [8, 64], strides = [1, 1]} : vector<64x64xf32> to vector<8x64xf32>
    %c1_194 = arith.constant 1 : index
    %c0_195 = arith.constant 0 : index
    %c0_196 = arith.constant 0 : index
    %400 = vector.load %arg38[%c1_194, %c0_195, %c0_196] : memref<8x8x64xf32, #tpu.memory_space<vmem>>, vector<1x8x64xf32>
    %401 = vector.shape_cast %400 : vector<1x8x64xf32> to vector<8x64xf32>
    %402 = vector.shape_cast %399 : vector<8x64xf32> to vector<1x8x64xf32>
    tpu.vector_store %arg38[%c1_194, %c0_195, %c0_196], %402 {strides = array<i32>} : memref<8x8x64xf32, #tpu.memory_space<vmem>>, vector<1x8x64xf32>,
    %403 = vector.extract_strided_slice %394 {offsets = [16, 0], sizes = [8, 64], strides = [1, 1]} : vector<64x64xf32> to vector<8x64xf32>
    %c2_197 = arith.constant 2 : index
    %c0_198 = arith.constant 0 : index
    %c0_199 = arith.constant 0 : index
    %404 = vector.load %arg38[%c2_197, %c0_198, %c0_199] : memref<8x8x64xf32, #tpu.memory_space<vmem>>, vector<1x8x64xf32>
    %405 = vector.shape_cast %404 : vector<1x8x64xf32> to vector<8x64xf32>
    %406 = vector.shape_cast %403 : vector<8x64xf32> to vector<1x8x64xf32>
    tpu.vector_store %arg38[%c2_197, %c0_198, %c0_199], %406 {strides = array<i32>} : memref<8x8x64xf32, #tpu.memory_space<vmem>>, vector<1x8x64xf32>,
    %407 = vector.extract_strided_slice %394 {offsets = [24, 0], sizes = [8, 64], strides = [1, 1]} : vector<64x64xf32> to vector<8x64xf32>
    %c3_200 = arith.constant 3 : index
    %c0_201 = arith.constant 0 : index
    %c0_202 = arith.constant 0 : index
    %408 = vector.load %arg38[%c3_200, %c0_201, %c0_202] : memref<8x8x64xf32, #tpu.memory_space<vmem>>, vector<1x8x64xf32>
    %409 = vector.shape_cast %408 : vector<1x8x64xf32> to vector<8x64xf32>
    %410 = vector.shape_cast %407 : vector<8x64xf32> to vector<1x8x64xf32>
    tpu.vector_store %arg38[%c3_200, %c0_201, %c0_202], %410 {strides = array<i32>} : memref<8x8x64xf32, #tpu.memory_space<vmem>>, vector<1x8x64xf32>,
    %411 = vector.extract_strided_slice %394 {offsets = [32, 0], sizes = [8, 64], strides = [1, 1]} : vector<64x64xf32> to vector<8x64xf32>
    %c4_203 = arith.constant 4 : index
    %c0_204 = arith.constant 0 : index
    %c0_205 = arith.constant 0 : index
    %412 = vector.load %arg38[%c4_203, %c0_204, %c0_205] : memref<8x8x64xf32, #tpu.memory_space<vmem>>, vector<1x8x64xf32>
    %413 = vector.shape_cast %412 : vector<1x8x64xf32> to vector<8x64xf32>
    %414 = vector.shape_cast %411 : vector<8x64xf32> to vector<1x8x64xf32>
    tpu.vector_store %arg38[%c4_203, %c0_204, %c0_205], %414 {strides = array<i32>} : memref<8x8x64xf32, #tpu.memory_space<vmem>>, vector<1x8x64xf32>,
    %415 = vector.extract_strided_slice %394 {offsets = [40, 0], sizes = [8, 64], strides = [1, 1]} : vector<64x64xf32> to vector<8x64xf32>
    %c5_206 = arith.constant 5 : index
    %c0_207 = arith.constant 0 : index
    %c0_208 = arith.constant 0 : index
    %416 = vector.load %arg38[%c5_206, %c0_207, %c0_208] : memref<8x8x64xf32, #tpu.memory_space<vmem>>, vector<1x8x64xf32>
    %417 = vector.shape_cast %416 : vector<1x8x64xf32> to vector<8x64xf32>
    %418 = vector.shape_cast %415 : vector<8x64xf32> to vector<1x8x64xf32>
    tpu.vector_store %arg38[%c5_206, %c0_207, %c0_208], %418 {strides = array<i32>} : memref<8x8x64xf32, #tpu.memory_space<vmem>>, vector<1x8x64xf32>,
    %419 = vector.extract_strided_slice %394 {offsets = [48, 0], sizes = [8, 64], strides = [1, 1]} : vector<64x64xf32> to vector<8x64xf32>
    %c6_209 = arith.constant 6 : index
    %c0_210 = arith.constant 0 : index
    %c0_211 = arith.constant 0 : index
    %420 = vector.load %arg38[%c6_209, %c0_210, %c0_211] : memref<8x8x64xf32, #tpu.memory_space<vmem>>, vector<1x8x64xf32>
    %421 = vector.shape_cast %420 : vector<1x8x64xf32> to vector<8x64xf32>
    %422 = vector.shape_cast %419 : vector<8x64xf32> to vector<1x8x64xf32>
    tpu.vector_store %arg38[%c6_209, %c0_210, %c0_211], %422 {strides = array<i32>} : memref<8x8x64xf32, #tpu.memory_space<vmem>>, vector<1x8x64xf32>,
    %423 = vector.extract_strided_slice %394 {offsets = [56, 0], sizes = [8, 64], strides = [1, 1]} : vector<64x64xf32> to vector<8x64xf32>
    %c7_212 = arith.constant 7 : index
    %c0_213 = arith.constant 0 : index
    %c0_214 = arith.constant 0 : index
    %424 = vector.load %arg38[%c7_212, %c0_213, %c0_214] : memref<8x8x64xf32, #tpu.memory_space<vmem>>, vector<1x8x64xf32>
    %425 = vector.shape_cast %424 : vector<1x8x64xf32> to vector<8x64xf32>
    %426 = vector.shape_cast %423 : vector<8x64xf32> to vector<1x8x64xf32>
    tpu.vector_store %arg38[%c7_212, %c0_213, %c0_214], %426 {strides = array<i32>} : memref<8x8x64xf32, #tpu.memory_space<vmem>>, vector<1x8x64xf32>,
    %427 = vector.extract_strided_slice %381 {offsets = [0, 0], sizes = [8, 16], strides = [1, 1]} : vector<8x64xf32> to vector<8x16xf32>
    %428 = vector.extract_strided_slice %386 {offsets = [0, 0], sizes = [8, 16], strides = [1, 1]} : vector<8x64xf32> to vector<8x16xf32>
    %429 = vector.extract_strided_slice %387 {offsets = [0, 0], sizes = [8, 16], strides = [1, 1]} : vector<8x64xf32> to vector<8x16xf32>
    %c0_215 = arith.constant 0 : index
    %c0_216 = arith.constant 0 : index
    %c0_217 = arith.constant 0 : index
    %430 = vector.load %arg38[%c0_215, %c0_216, %c0_217] : memref<8x8x64xf32, #tpu.memory_space<vmem>>, vector<8x8x16xf32>
    %cst_218 = arith.constant dense<0.000000e+00> : vector<8x8xf32>
    %431 = tpu.matmul %427, %428, %cst_218 {dimension_numbers = #tpu.dot_dimension_numbers<[1], [1], [0], [0], [0, 0, 1, 0], [], []>} : vector<8x16xf32>, vector<8x16xf32>, vector<8x8xf32> -> vector<8x8xf32>
    %432 = vector.shape_cast %427 : vector<8x16xf32> to vector<8x1x16xf32>
    %433 = vector.broadcast %432 : vector<8x1x16xf32> to vector<8x8x16xf32>
    %434 = arith.mulf %433, %430 : vector<8x8x16xf32>
    %cst_219 = arith.constant dense<0.000000e+00> : vector<8x8xf32>
    %435 = vector.multi_reduction <add>, %434, %cst_219 [2] : vector<8x8x16xf32> to vector<8x8xf32>
    %436 = arith.addf %431, %435 : vector<8x8xf32>
    %cst_220 = arith.constant 2.500000e-01 : f32
    %437 = vector.broadcast %cst_220 : f32 to vector<8x8xf32>
    %438 = arith.mulf %436, %437 : vector<8x8xf32>
    %cst_221 = arith.constant -1.000000e+30 : f32
    %439 = vector.broadcast %cst_221 : f32 to vector<8x8xf32>
    %440 = arith.select %36, %438, %439 : vector<8x8xi1>, vector<8x8xf32>
    %cst_222 = arith.constant dense<0xFF800000> : vector<8xf32>
    %441 = vector.multi_reduction <maximumf>, %440, %cst_222 [1] : vector<8x8xf32> to vector<8xf32>
    %442 = vector.shape_cast %441 : vector<8xf32> to vector<8x1xf32>
    %443 = vector.broadcast %442 : vector<8x1xf32> to vector<8x8xf32>
    %444 = arith.subf %440, %443 : vector<8x8xf32>
    %445 = math.exp %444 : vector<8x8xf32>
    %cst_223 = arith.constant dense<0.000000e+00> : vector<8xf32>
    %446 = vector.multi_reduction <add>, %445, %cst_223 [1] : vector<8x8xf32> to vector<8xf32>
    %447 = vector.shape_cast %446 : vector<8xf32> to vector<8x1xf32>
    %448 = tpu.reciprocal %447 {approx = true} : vector<8x1xf32> -> vector<8x1xf32>
    %449 = vector.broadcast %448 : vector<8x1xf32> to vector<8x8xf32>
    %450 = arith.mulf %445, %449 : vector<8x8xf32>
    %cst_224 = arith.constant dense<0.000000e+00> : vector<8x16xf32>
    %451 = tpu.matmul %450, %429, %cst_224 {dimension_numbers = #tpu.dot_dimension_numbers<[1], [0], [0], [1], [0, 0, 1, 1], [], []>} : vector<8x8xf32>, vector<8x16xf32>, vector<8x16xf32> -> vector<8x16xf32>
    %452 = vector.shape_cast %450 : vector<8x8xf32> to vector<8x8x1xf32>
    %453 = vector.broadcast %452 : vector<8x8x1xf32> to vector<8x8x16xf32>
    %454 = arith.mulf %453, %430 : vector<8x8x16xf32>
    %cst_225 = arith.constant dense<0.000000e+00> : vector<8x16xf32>
    %455 = vector.multi_reduction <add>, %454, %cst_225 [1] : vector<8x8x16xf32> to vector<8x16xf32>
    %456 = arith.addf %451, %455 : vector<8x16xf32>
    %457 = vector.extract_strided_slice %381 {offsets = [0, 16], sizes = [8, 16], strides = [1, 1]} : vector<8x64xf32> to vector<8x16xf32>
    %458 = vector.extract_strided_slice %386 {offsets = [0, 16], sizes = [8, 16], strides = [1, 1]} : vector<8x64xf32> to vector<8x16xf32>
    %459 = vector.extract_strided_slice %387 {offsets = [0, 16], sizes = [8, 16], strides = [1, 1]} : vector<8x64xf32> to vector<8x16xf32>
    %c0_226 = arith.constant 0 : index
    %c0_227 = arith.constant 0 : index
    %c16_228 = arith.constant 16 : index
    %460 = vector.load %arg38[%c0_226, %c0_227, %c16_228] : memref<8x8x64xf32, #tpu.memory_space<vmem>>, vector<8x8x16xf32>
    %cst_229 = arith.constant dense<0.000000e+00> : vector<8x8xf32>
    %461 = tpu.matmul %457, %458, %cst_229 {dimension_numbers = #tpu.dot_dimension_numbers<[1], [1], [0], [0], [0, 0, 1, 0], [], []>} : vector<8x16xf32>, vector<8x16xf32>, vector<8x8xf32> -> vector<8x8xf32>
    %462 = vector.shape_cast %457 : vector<8x16xf32> to vector<8x1x16xf32>
    %463 = vector.broadcast %462 : vector<8x1x16xf32> to vector<8x8x16xf32>
    %464 = arith.mulf %463, %460 : vector<8x8x16xf32>
    %cst_230 = arith.constant dense<0.000000e+00> : vector<8x8xf32>
    %465 = vector.multi_reduction <add>, %464, %cst_230 [2] : vector<8x8x16xf32> to vector<8x8xf32>
    %466 = arith.addf %461, %465 : vector<8x8xf32>
    %cst_231 = arith.constant 2.500000e-01 : f32
    %467 = vector.broadcast %cst_231 : f32 to vector<8x8xf32>
    %468 = arith.mulf %466, %467 : vector<8x8xf32>
    %cst_232 = arith.constant -1.000000e+30 : f32
    %469 = vector.broadcast %cst_232 : f32 to vector<8x8xf32>
    %470 = arith.select %36, %468, %469 : vector<8x8xi1>, vector<8x8xf32>
    %cst_233 = arith.constant dense<0xFF800000> : vector<8xf32>
    %471 = vector.multi_reduction <maximumf>, %470, %cst_233 [1] : vector<8x8xf32> to vector<8xf32>
    %472 = vector.shape_cast %471 : vector<8xf32> to vector<8x1xf32>
    %473 = vector.broadcast %472 : vector<8x1xf32> to vector<8x8xf32>
    %474 = arith.subf %470, %473 : vector<8x8xf32>
    %475 = math.exp %474 : vector<8x8xf32>
    %cst_234 = arith.constant dense<0.000000e+00> : vector<8xf32>
    %476 = vector.multi_reduction <add>, %475, %cst_234 [1] : vector<8x8xf32> to vector<8xf32>
    %477 = vector.shape_cast %476 : vector<8xf32> to vector<8x1xf32>
    %478 = tpu.reciprocal %477 {approx = true} : vector<8x1xf32> -> vector<8x1xf32>
    %479 = vector.broadcast %478 : vector<8x1xf32> to vector<8x8xf32>
    %480 = arith.mulf %475, %479 : vector<8x8xf32>
    %cst_235 = arith.constant dense<0.000000e+00> : vector<8x16xf32>
    %481 = tpu.matmul %480, %459, %cst_235 {dimension_numbers = #tpu.dot_dimension_numbers<[1], [0], [0], [1], [0, 0, 1, 1], [], []>} : vector<8x8xf32>, vector<8x16xf32>, vector<8x16xf32> -> vector<8x16xf32>
    %482 = vector.shape_cast %480 : vector<8x8xf32> to vector<8x8x1xf32>
    %483 = vector.broadcast %482 : vector<8x8x1xf32> to vector<8x8x16xf32>
    %484 = arith.mulf %483, %460 : vector<8x8x16xf32>
    %cst_236 = arith.constant dense<0.000000e+00> : vector<8x16xf32>
    %485 = vector.multi_reduction <add>, %484, %cst_236 [1] : vector<8x8x16xf32> to vector<8x16xf32>
    %486 = arith.addf %481, %485 : vector<8x16xf32>
    %487 = vector.extract_strided_slice %381 {offsets = [0, 32], sizes = [8, 16], strides = [1, 1]} : vector<8x64xf32> to vector<8x16xf32>
    %488 = vector.extract_strided_slice %386 {offsets = [0, 32], sizes = [8, 16], strides = [1, 1]} : vector<8x64xf32> to vector<8x16xf32>
    %489 = vector.extract_strided_slice %387 {offsets = [0, 32], sizes = [8, 16], strides = [1, 1]} : vector<8x64xf32> to vector<8x16xf32>
    %c0_237 = arith.constant 0 : index
    %c0_238 = arith.constant 0 : index
    %c32_239 = arith.constant 32 : index
    %490 = vector.load %arg38[%c0_237, %c0_238, %c32_239] : memref<8x8x64xf32, #tpu.memory_space<vmem>>, vector<8x8x16xf32>
    %cst_240 = arith.constant dense<0.000000e+00> : vector<8x8xf32>
    %491 = tpu.matmul %487, %488, %cst_240 {dimension_numbers = #tpu.dot_dimension_numbers<[1], [1], [0], [0], [0, 0, 1, 0], [], []>} : vector<8x16xf32>, vector<8x16xf32>, vector<8x8xf32> -> vector<8x8xf32>
    %492 = vector.shape_cast %487 : vector<8x16xf32> to vector<8x1x16xf32>
    %493 = vector.broadcast %492 : vector<8x1x16xf32> to vector<8x8x16xf32>
    %494 = arith.mulf %493, %490 : vector<8x8x16xf32>
    %cst_241 = arith.constant dense<0.000000e+00> : vector<8x8xf32>
    %495 = vector.multi_reduction <add>, %494, %cst_241 [2] : vector<8x8x16xf32> to vector<8x8xf32>
    %496 = arith.addf %491, %495 : vector<8x8xf32>
    %cst_242 = arith.constant 2.500000e-01 : f32
    %497 = vector.broadcast %cst_242 : f32 to vector<8x8xf32>
    %498 = arith.mulf %496, %497 : vector<8x8xf32>
    %cst_243 = arith.constant -1.000000e+30 : f32
    %499 = vector.broadcast %cst_243 : f32 to vector<8x8xf32>
    %500 = arith.select %36, %498, %499 : vector<8x8xi1>, vector<8x8xf32>
    %cst_244 = arith.constant dense<0xFF800000> : vector<8xf32>
    %501 = vector.multi_reduction <maximumf>, %500, %cst_244 [1] : vector<8x8xf32> to vector<8xf32>
    %502 = vector.shape_cast %501 : vector<8xf32> to vector<8x1xf32>
    %503 = vector.broadcast %502 : vector<8x1xf32> to vector<8x8xf32>
    %504 = arith.subf %500, %503 : vector<8x8xf32>
    %505 = math.exp %504 : vector<8x8xf32>
    %cst_245 = arith.constant dense<0.000000e+00> : vector<8xf32>
    %506 = vector.multi_reduction <add>, %505, %cst_245 [1] : vector<8x8xf32> to vector<8xf32>
    %507 = vector.shape_cast %506 : vector<8xf32> to vector<8x1xf32>
    %508 = tpu.reciprocal %507 {approx = true} : vector<8x1xf32> -> vector<8x1xf32>
    %509 = vector.broadcast %508 : vector<8x1xf32> to vector<8x8xf32>
    %510 = arith.mulf %505, %509 : vector<8x8xf32>
    %cst_246 = arith.constant dense<0.000000e+00> : vector<8x16xf32>
    %511 = tpu.matmul %510, %489, %cst_246 {dimension_numbers = #tpu.dot_dimension_numbers<[1], [0], [0], [1], [0, 0, 1, 1], [], []>} : vector<8x8xf32>, vector<8x16xf32>, vector<8x16xf32> -> vector<8x16xf32>
    %512 = vector.shape_cast %510 : vector<8x8xf32> to vector<8x8x1xf32>
    %513 = vector.broadcast %512 : vector<8x8x1xf32> to vector<8x8x16xf32>
    %514 = arith.mulf %513, %490 : vector<8x8x16xf32>
    %cst_247 = arith.constant dense<0.000000e+00> : vector<8x16xf32>
    %515 = vector.multi_reduction <add>, %514, %cst_247 [1] : vector<8x8x16xf32> to vector<8x16xf32>
    %516 = arith.addf %511, %515 : vector<8x16xf32>
    %517 = vector.extract_strided_slice %381 {offsets = [0, 48], sizes = [8, 16], strides = [1, 1]} : vector<8x64xf32> to vector<8x16xf32>
    %518 = vector.extract_strided_slice %386 {offsets = [0, 48], sizes = [8, 16], strides = [1, 1]} : vector<8x64xf32> to vector<8x16xf32>
    %519 = vector.extract_strided_slice %387 {offsets = [0, 48], sizes = [8, 16], strides = [1, 1]} : vector<8x64xf32> to vector<8x16xf32>
    %c0_248 = arith.constant 0 : index
    %c0_249 = arith.constant 0 : index
    %c48_250 = arith.constant 48 : index
    %520 = vector.load %arg38[%c0_248, %c0_249, %c48_250] : memref<8x8x64xf32, #tpu.memory_space<vmem>>, vector<8x8x16xf32>
    %cst_251 = arith.constant dense<0.000000e+00> : vector<8x8xf32>
    %521 = tpu.matmul %517, %518, %cst_251 {dimension_numbers = #tpu.dot_dimension_numbers<[1], [1], [0], [0], [0, 0, 1, 0], [], []>} : vector<8x16xf32>, vector<8x16xf32>, vector<8x8xf32> -> vector<8x8xf32>
    %522 = vector.shape_cast %517 : vector<8x16xf32> to vector<8x1x16xf32>
    %523 = vector.broadcast %522 : vector<8x1x16xf32> to vector<8x8x16xf32>
    %524 = arith.mulf %523, %520 : vector<8x8x16xf32>
    %cst_252 = arith.constant dense<0.000000e+00> : vector<8x8xf32>
    %525 = vector.multi_reduction <add>, %524, %cst_252 [2] : vector<8x8x16xf32> to vector<8x8xf32>
    %526 = arith.addf %521, %525 : vector<8x8xf32>
    %cst_253 = arith.constant 2.500000e-01 : f32
    %527 = vector.broadcast %cst_253 : f32 to vector<8x8xf32>
    %528 = arith.mulf %526, %527 : vector<8x8xf32>
    %cst_254 = arith.constant -1.000000e+30 : f32
    %529 = vector.broadcast %cst_254 : f32 to vector<8x8xf32>
    %530 = arith.select %36, %528, %529 : vector<8x8xi1>, vector<8x8xf32>
    %cst_255 = arith.constant dense<0xFF800000> : vector<8xf32>
    %531 = vector.multi_reduction <maximumf>, %530, %cst_255 [1] : vector<8x8xf32> to vector<8xf32>
    %532 = vector.shape_cast %531 : vector<8xf32> to vector<8x1xf32>
    %533 = vector.broadcast %532 : vector<8x1xf32> to vector<8x8xf32>
    %534 = arith.subf %530, %533 : vector<8x8xf32>
    %535 = math.exp %534 : vector<8x8xf32>
    %cst_256 = arith.constant dense<0.000000e+00> : vector<8xf32>
    %536 = vector.multi_reduction <add>, %535, %cst_256 [1] : vector<8x8xf32> to vector<8xf32>
    %537 = vector.shape_cast %536 : vector<8xf32> to vector<8x1xf32>
    %538 = tpu.reciprocal %537 {approx = true} : vector<8x1xf32> -> vector<8x1xf32>
    %539 = vector.broadcast %538 : vector<8x1xf32> to vector<8x8xf32>
    %540 = arith.mulf %535, %539 : vector<8x8xf32>
    %cst_257 = arith.constant dense<0.000000e+00> : vector<8x16xf32>
    %541 = tpu.matmul %540, %519, %cst_257 {dimension_numbers = #tpu.dot_dimension_numbers<[1], [0], [0], [1], [0, 0, 1, 1], [], []>} : vector<8x8xf32>, vector<8x16xf32>, vector<8x16xf32> -> vector<8x16xf32>
    %542 = vector.shape_cast %540 : vector<8x8xf32> to vector<8x8x1xf32>
    %543 = vector.broadcast %542 : vector<8x8x1xf32> to vector<8x8x16xf32>
    %544 = arith.mulf %543, %520 : vector<8x8x16xf32>
    %cst_258 = arith.constant dense<0.000000e+00> : vector<8x16xf32>
    %545 = vector.multi_reduction <add>, %544, %cst_258 [1] : vector<8x8x16xf32> to vector<8x16xf32>
    %546 = arith.addf %541, %545 : vector<8x16xf32>
    %547 = tpu.concatenate %456, %486, %516, %546 in 1 : vector<8x16xf32>, vector<8x16xf32>, vector<8x16xf32>, vector<8x16xf32> -> vector<8x64xf32>
    %c1_259 = arith.constant 1 : index
    %c0_260 = arith.constant 0 : index
    %c0_261 = arith.constant 0 : index
    %548 = vector.load %arg21[%c1_259, %c0_260, %c0_261] : memref<2x64x32xf32, #tpu.memory_space<vmem>>, vector<1x64x32xf32>
    %549 = vector.shape_cast %548 : vector<1x64x32xf32> to vector<64x32xf32>
    %cst_262 = arith.constant dense<0.000000e+00> : vector<8x32xf32>
    %550 = tpu.matmul %547, %549, %cst_262 {dimension_numbers = #tpu.dot_dimension_numbers<[1], [0], [0], [1], [0, 0, 1, 1], [], []>} : vector<8x64xf32>, vector<64x32xf32>, vector<8x32xf32> -> vector<8x32xf32>
    %c1_263 = arith.constant 1 : index
    %c0_264 = arith.constant 0 : index
    %c0_265 = arith.constant 0 : index
    %551 = vector.load %arg22[%c1_263, %c0_264, %c0_265] : memref<2x1x32xf32, #tpu.memory_space<vmem>>, vector<1x1x32xf32>
    %552 = vector.shape_cast %551 : vector<1x1x32xf32> to vector<1x32xf32>
    %553 = vector.broadcast %552 : vector<1x32xf32> to vector<8x32xf32>
    %554 = arith.addf %550, %553 : vector<8x32xf32>
    %c1_266 = arith.constant 1 : index
    %c0_267 = arith.constant 0 : index
    %c0_268 = arith.constant 0 : index
    %555 = vector.load %arg23[%c1_266, %c0_267, %c0_268] : memref<2x3x32xf32, #tpu.memory_space<vmem>>, vector<1x3x32xf32>
    %556 = vector.shape_cast %555 : vector<1x3x32xf32> to vector<3x32xf32>
    %557 = vector.extract_strided_slice %556 {offsets = [0, 0], sizes = [1, 32], strides = [1, 1]} : vector<3x32xf32> to vector<1x32xf32>
    %558 = vector.broadcast %557 : vector<1x32xf32> to vector<8x32xf32>
    %559 = arith.mulf %554, %558 : vector<8x32xf32>
    %560 = vector.extract_strided_slice %556 {offsets = [1, 0], sizes = [1, 32], strides = [1, 1]} : vector<3x32xf32> to vector<1x32xf32>
    %561 = vector.broadcast %560 : vector<1x32xf32> to vector<8x32xf32>
    %562 = arith.mulf %345, %561 : vector<8x32xf32>
    %563 = arith.addf %559, %562 : vector<8x32xf32>
    %564 = arith.subf %554, %345 : vector<8x32xf32>
    %565 = vector.extract_strided_slice %556 {offsets = [2, 0], sizes = [1, 32], strides = [1, 1]} : vector<3x32xf32> to vector<1x32xf32>
    %566 = vector.broadcast %565 : vector<1x32xf32> to vector<8x32xf32>
    %567 = arith.mulf %564, %566 : vector<8x32xf32>
    %568 = arith.addf %563, %567 : vector<8x32xf32>
    %cst_269 = arith.constant dense<0.000000e+00> : vector<8xf32>
    %569 = vector.multi_reduction <add>, %568, %cst_269 [1] : vector<8x32xf32> to vector<8xf32>
    %570 = vector.shape_cast %569 : vector<8xf32> to vector<8x1xf32>
    %571 = arith.negf %570 : vector<8x1xf32>
    %572 = math.exp %571 : vector<8x1xf32>
    %cst_270 = arith.constant 1.000000e+00 : f32
    %573 = vector.broadcast %cst_270 : f32 to vector<8x1xf32>
    %574 = arith.addf %573, %572 : vector<8x1xf32>
    %575 = arith.divf %573, %574 : vector<8x1xf32>
    %576 = vector.broadcast %575 : vector<8x1xf32> to vector<8x32xf32>
    %577 = arith.mulf %554, %576 : vector<8x32xf32>
    %cst_271 = arith.constant 1.000000e+00 : f32
    %578 = vector.broadcast %cst_271 : f32 to vector<8x1xf32>
    %579 = arith.subf %578, %575 : vector<8x1xf32>
    %580 = vector.broadcast %579 : vector<8x1xf32> to vector<8x32xf32>
    %581 = arith.mulf %345, %580 : vector<8x32xf32>
    %582 = arith.addf %577, %581 : vector<8x32xf32>
    %c1_272 = arith.constant 1 : index
    %c0_273 = arith.constant 0 : index
    %c0_274 = arith.constant 0 : index
    %583 = vector.load %arg24[%c1_272, %c0_273, %c0_274] : memref<2x1x32xf32, #tpu.memory_space<vmem>>, vector<1x1x32xf32>
    %584 = vector.shape_cast %583 : vector<1x1x32xf32> to vector<1x32xf32>
    %c1_275 = arith.constant 1 : index
    %c0_276 = arith.constant 0 : index
    %c0_277 = arith.constant 0 : index
    %585 = vector.load %arg25[%c1_275, %c0_276, %c0_277] : memref<2x1x32xf32, #tpu.memory_space<vmem>>, vector<1x1x32xf32>
    %586 = vector.shape_cast %585 : vector<1x1x32xf32> to vector<1x32xf32>
    %cst_278 = arith.constant dense<0.000000e+00> : vector<8xf32>
    %587 = vector.multi_reduction <add>, %582, %cst_278 [1] : vector<8x32xf32> to vector<8xf32>
    %588 = vector.shape_cast %587 : vector<8xf32> to vector<8x1xf32>
    %cst_279 = arith.constant 3.200000e+01 : f32
    %589 = vector.broadcast %cst_279 : f32 to vector<8x1xf32>
    %590 = arith.divf %588, %589 : vector<8x1xf32>
    %591 = vector.broadcast %590 : vector<8x1xf32> to vector<8x32xf32>
    %592 = arith.subf %582, %591 : vector<8x32xf32>
    %593 = arith.mulf %592, %592 : vector<8x32xf32>
    %cst_280 = arith.constant dense<0.000000e+00> : vector<8xf32>
    %594 = vector.multi_reduction <add>, %593, %cst_280 [1] : vector<8x32xf32> to vector<8xf32>
    %595 = vector.shape_cast %594 : vector<8xf32> to vector<8x1xf32>
    %cst_281 = arith.constant 3.200000e+01 : f32
    %596 = vector.broadcast %cst_281 : f32 to vector<8x1xf32>
    %597 = arith.divf %595, %596 : vector<8x1xf32>
    %cst_282 = arith.constant 9.99999974E-6 : f32
    %598 = vector.broadcast %cst_282 : f32 to vector<8x1xf32>
    %599 = arith.addf %597, %598 : vector<8x1xf32>
    %600 = math.rsqrt %599 : vector<8x1xf32>
    %601 = vector.broadcast %600 : vector<8x1xf32> to vector<8x32xf32>
    %602 = arith.mulf %592, %601 : vector<8x32xf32>
    %603 = vector.broadcast %584 : vector<1x32xf32> to vector<8x32xf32>
    %604 = arith.mulf %602, %603 : vector<8x32xf32>
    %605 = vector.broadcast %586 : vector<1x32xf32> to vector<8x32xf32>
    %606 = arith.addf %604, %605 : vector<8x32xf32>
    %c1_283 = arith.constant 1 : index
    %c0_284 = arith.constant 0 : index
    %c0_285 = arith.constant 0 : index
    %607 = vector.load %arg26[%c1_283, %c0_284, %c0_285] : memref<2x32x128xf32, #tpu.memory_space<vmem>>, vector<1x32x128xf32>
    %608 = vector.shape_cast %607 : vector<1x32x128xf32> to vector<32x128xf32>
    %cst_286 = arith.constant dense<0.000000e+00> : vector<8x128xf32>
    %609 = tpu.matmul %606, %608, %cst_286 {dimension_numbers = #tpu.dot_dimension_numbers<[1], [0], [0], [1], [0, 0, 1, 1], [], []>} : vector<8x32xf32>, vector<32x128xf32>, vector<8x128xf32> -> vector<8x128xf32>
    %c1_287 = arith.constant 1 : index
    %c0_288 = arith.constant 0 : index
    %c0_289 = arith.constant 0 : index
    %610 = vector.load %arg27[%c1_287, %c0_288, %c0_289] : memref<2x1x128xf32, #tpu.memory_space<vmem>>, vector<1x1x128xf32>
    %611 = vector.shape_cast %610 : vector<1x1x128xf32> to vector<1x128xf32>
    %612 = vector.broadcast %611 : vector<1x128xf32> to vector<8x128xf32>
    %613 = arith.addf %609, %612 : vector<8x128xf32>
    %614 = arith.negf %613 : vector<8x128xf32>
    %615 = math.exp %614 : vector<8x128xf32>
    %cst_290 = arith.constant 1.000000e+00 : f32
    %616 = vector.broadcast %cst_290 : f32 to vector<8x128xf32>
    %617 = arith.addf %616, %615 : vector<8x128xf32>
    %618 = arith.divf %616, %617 : vector<8x128xf32>
    %619 = arith.mulf %613, %618 : vector<8x128xf32>
    %c1_291 = arith.constant 1 : index
    %c0_292 = arith.constant 0 : index
    %c0_293 = arith.constant 0 : index
    %620 = vector.load %arg28[%c1_291, %c0_292, %c0_293] : memref<2x128x32xf32, #tpu.memory_space<vmem>>, vector<1x128x32xf32>
    %621 = vector.shape_cast %620 : vector<1x128x32xf32> to vector<128x32xf32>
    %cst_294 = arith.constant dense<0.000000e+00> : vector<8x32xf32>
    %622 = tpu.matmul %619, %621, %cst_294 {dimension_numbers = #tpu.dot_dimension_numbers<[1], [0], [0], [1], [0, 0, 1, 1], [], []>} : vector<8x128xf32>, vector<128x32xf32>, vector<8x32xf32> -> vector<8x32xf32>
    %c1_295 = arith.constant 1 : index
    %c0_296 = arith.constant 0 : index
    %c0_297 = arith.constant 0 : index
    %623 = vector.load %arg29[%c1_295, %c0_296, %c0_297] : memref<2x1x32xf32, #tpu.memory_space<vmem>>, vector<1x1x32xf32>
    %624 = vector.shape_cast %623 : vector<1x1x32xf32> to vector<1x32xf32>
    %625 = vector.broadcast %624 : vector<1x32xf32> to vector<8x32xf32>
    %626 = arith.addf %622, %625 : vector<8x32xf32>
    %c1_298 = arith.constant 1 : index
    %c0_299 = arith.constant 0 : index
    %c0_300 = arith.constant 0 : index
    %627 = vector.load %arg30[%c1_298, %c0_299, %c0_300] : memref<2x3x32xf32, #tpu.memory_space<vmem>>, vector<1x3x32xf32>
    %628 = vector.shape_cast %627 : vector<1x3x32xf32> to vector<3x32xf32>
    %629 = vector.extract_strided_slice %628 {offsets = [0, 0], sizes = [1, 32], strides = [1, 1]} : vector<3x32xf32> to vector<1x32xf32>
    %630 = vector.broadcast %629 : vector<1x32xf32> to vector<8x32xf32>
    %631 = arith.mulf %626, %630 : vector<8x32xf32>
    %632 = vector.extract_strided_slice %628 {offsets = [1, 0], sizes = [1, 32], strides = [1, 1]} : vector<3x32xf32> to vector<1x32xf32>
    %633 = vector.broadcast %632 : vector<1x32xf32> to vector<8x32xf32>
    %634 = arith.mulf %582, %633 : vector<8x32xf32>
    %635 = arith.addf %631, %634 : vector<8x32xf32>
    %636 = arith.subf %626, %582 : vector<8x32xf32>
    %637 = vector.extract_strided_slice %628 {offsets = [2, 0], sizes = [1, 32], strides = [1, 1]} : vector<3x32xf32> to vector<1x32xf32>
    %638 = vector.broadcast %637 : vector<1x32xf32> to vector<8x32xf32>
    %639 = arith.mulf %636, %638 : vector<8x32xf32>
    %640 = arith.addf %635, %639 : vector<8x32xf32>
    %cst_301 = arith.constant dense<0.000000e+00> : vector<8xf32>
    %641 = vector.multi_reduction <add>, %640, %cst_301 [1] : vector<8x32xf32> to vector<8xf32>
    %642 = vector.shape_cast %641 : vector<8xf32> to vector<8x1xf32>
    %643 = arith.negf %642 : vector<8x1xf32>
    %644 = math.exp %643 : vector<8x1xf32>
    %cst_302 = arith.constant 1.000000e+00 : f32
    %645 = vector.broadcast %cst_302 : f32 to vector<8x1xf32>
    %646 = arith.addf %645, %644 : vector<8x1xf32>
    %647 = arith.divf %645, %646 : vector<8x1xf32>
    %648 = vector.broadcast %647 : vector<8x1xf32> to vector<8x32xf32>
    %649 = arith.mulf %626, %648 : vector<8x32xf32>
    %cst_303 = arith.constant 1.000000e+00 : f32
    %650 = vector.broadcast %cst_303 : f32 to vector<8x1xf32>
    %651 = arith.subf %650, %647 : vector<8x1xf32>
    %652 = vector.broadcast %651 : vector<8x1xf32> to vector<8x32xf32>
    %653 = arith.mulf %582, %652 : vector<8x32xf32>
    %654 = arith.addf %649, %653 : vector<8x32xf32>
    %cst_304 = arith.constant dense<0.000000e+00> : vector<1xf32>
    %655 = vector.multi_reduction <add>, %7, %cst_304 [0] : vector<8x1xf32> to vector<1xf32>
    %656 = vector.shape_cast %655 : vector<1xf32> to vector<1x1xf32>
    %657 = vector.broadcast %7 : vector<8x1xf32> to vector<8x32xf32>
    %658 = arith.mulf %654, %657 : vector<8x32xf32>
    %cst_305 = arith.constant dense<0.000000e+00> : vector<32xf32>
    %659 = vector.multi_reduction <add>, %658, %cst_305 [0] : vector<8x32xf32> to vector<32xf32>
    %660 = vector.shape_cast %659 : vector<32xf32> to vector<1x32xf32>
    %661 = tpu.reciprocal %656 {approx = true} : vector<1x1xf32> -> vector<1x1xf32>
    %662 = vector.broadcast %661 : vector<1x1xf32> to vector<1x32xf32>
    %663 = arith.mulf %660, %662 : vector<1x32xf32>
    %c0_306 = arith.constant 0 : index
    %c0_307 = arith.constant 0 : index
    %664 = vector.load %arg31[%c0_306, %c0_307] : memref<32x32xf32, #tpu.memory_space<vmem>>, vector<32x32xf32>
    %cst_308 = arith.constant dense<0.000000e+00> : vector<1x32xf32>
    %665 = tpu.matmul %663, %664, %cst_308 {dimension_numbers = #tpu.dot_dimension_numbers<[1], [0], [0], [1], [0, 0, 1, 1], [], []>} : vector<1x32xf32>, vector<32x32xf32>, vector<1x32xf32> -> vector<1x32xf32>
    %c0_309 = arith.constant 0 : index
    %c0_310 = arith.constant 0 : index
    %666 = vector.load %arg32[%c0_309, %c0_310] : memref<1x32xf32, #tpu.memory_space<vmem>>, vector<1x32xf32>
    %667 = arith.addf %665, %666 : vector<1x32xf32>
    %cst_311 = arith.constant 0.000000e+00 : f32
    %668 = vector.broadcast %cst_311 : f32 to vector<1x32xf32>
    %669 = arith.maximumf %667, %668 : vector<1x32xf32>
    %c0_312 = arith.constant 0 : index
    %c0_313 = arith.constant 0 : index
    %670 = vector.load %arg33[%c0_312, %c0_313] : memref<32x32xf32, #tpu.memory_space<vmem>>, vector<32x32xf32>
    %cst_314 = arith.constant dense<0.000000e+00> : vector<1x32xf32>
    %671 = tpu.matmul %669, %670, %cst_314 {dimension_numbers = #tpu.dot_dimension_numbers<[1], [0], [0], [1], [0, 0, 1, 1], [], []>} : vector<1x32xf32>, vector<32x32xf32>, vector<1x32xf32> -> vector<1x32xf32>
    %c0_315 = arith.constant 0 : index
    %c0_316 = arith.constant 0 : index
    %672 = vector.load %arg34[%c0_315, %c0_316] : memref<1x32xf32, #tpu.memory_space<vmem>>, vector<1x32xf32>
    %673 = arith.addf %671, %672 : vector<1x32xf32>
    %cst_317 = arith.constant 0.000000e+00 : f32
    %674 = vector.broadcast %cst_317 : f32 to vector<1x32xf32>
    %675 = arith.maximumf %673, %674 : vector<1x32xf32>
    %c0_318 = arith.constant 0 : index
    %c0_319 = arith.constant 0 : index
    %676 = vector.load %arg35[%c0_318, %c0_319] : memref<32x3xf32, #tpu.memory_space<vmem>>, vector<32x3xf32>
    %cst_320 = arith.constant dense<0.000000e+00> : vector<1x3xf32>
    %677 = tpu.matmul %675, %676, %cst_320 {dimension_numbers = #tpu.dot_dimension_numbers<[1], [0], [0], [1], [0, 0, 1, 1], [], []>} : vector<1x32xf32>, vector<32x3xf32>, vector<1x3xf32> -> vector<1x3xf32>
    %c0_321 = arith.constant 0 : index
    %c0_322 = arith.constant 0 : index
    %678 = vector.load %arg36[%c0_321, %c0_322] : memref<1x3xf32, #tpu.memory_space<vmem>>, vector<1x3xf32>
    %679 = arith.addf %677, %678 : vector<1x3xf32>
    %c0_323 = arith.constant 0 : index
    %c0_324 = arith.constant 0 : index
    %c0_325 = arith.constant 0 : index
    %680 = vector.load %arg37[%c0_323, %c0_324, %c0_325] : memref<1x1x3xf32, #tpu.memory_space<vmem>>, vector<1x1x3xf32>
    %681 = vector.shape_cast %680 : vector<1x1x3xf32> to vector<1x3xf32>
    %682 = vector.shape_cast %679 : vector<1x3xf32> to vector<1x1x3xf32>
    tpu.vector_store %arg37[%c0_323, %c0_324, %c0_325], %682 {strides = array<i32>} : memref<1x1x3xf32, #tpu.memory_space<vmem>>, vector<1x1x3xf32>,
    return
  }
  func.func @transform_0(%arg0: i32) -> (i32, i32, i32) {
    %c0_i32 = arith.constant 0 : i32
    %c0_i32_0 = arith.constant 0 : i32
    %c0_i32_1 = arith.constant 0 : i32
    return %arg0, %c0_i32, %c0_i32_0 : i32, i32, i32
  }
  func.func @transform_1(%arg0: i32) -> (i32, i32, i32) {
    %c0_i32 = arith.constant 0 : i32
    %c0_i32_0 = arith.constant 0 : i32
    %c0_i32_1 = arith.constant 0 : i32
    return %arg0, %c0_i32, %c0_i32_0 : i32, i32, i32
  }
  func.func @transform_2(%arg0: i32) -> (i32, i32, i32) {
    %c0_i32 = arith.constant 0 : i32
    %c0_i32_0 = arith.constant 0 : i32
    %c0_i32_1 = arith.constant 0 : i32
    return %arg0, %c0_i32, %c0_i32_0 : i32, i32, i32
  }
  func.func @transform_3(%arg0: i32) -> (i32, i32, i32) {
    %c0_i32 = arith.constant 0 : i32
    %c0_i32_0 = arith.constant 0 : i32
    %c0_i32_1 = arith.constant 0 : i32
    return %arg0, %c0_i32, %c0_i32_0 : i32, i32, i32
  }
  func.func @transform_4(%arg0: i32) -> (i32, i32, i32) {
    %c0_i32 = arith.constant 0 : i32
    %c0_i32_0 = arith.constant 0 : i32
    %c0_i32_1 = arith.constant 0 : i32
    return %arg0, %c0_i32, %c0_i32_0 : i32, i32, i32
  }
  func.func @transform_5(%arg0: i32) -> (i32, i32) {
    %c0_i32 = arith.constant 0 : i32
    %c0_i32_0 = arith.constant 0 : i32
    %c0_i32_1 = arith.constant 0 : i32
    return %c0_i32, %c0_i32_0 : i32, i32
  }
  func.func @transform_6(%arg0: i32) -> (i32, i32) {
    %c0_i32 = arith.constant 0 : i32
    %c0_i32_0 = arith.constant 0 : i32
    %c0_i32_1 = arith.constant 0 : i32
    return %c0_i32, %c0_i32_0 : i32, i32
  }
  func.func @transform_7(%arg0: i32) -> (i32, i32) {
    %c0_i32 = arith.constant 0 : i32
    %c0_i32_0 = arith.constant 0 : i32
    %c0_i32_1 = arith.constant 0 : i32
    return %c0_i32, %c0_i32_0 : i32, i32
  }
  func.func @transform_8(%arg0: i32) -> (i32, i32) {
    %c0_i32 = arith.constant 0 : i32
    %c0_i32_0 = arith.constant 0 : i32
    %c0_i32_1 = arith.constant 0 : i32
    return %c0_i32, %c0_i32_0 : i32, i32
  }
  func.func @transform_9(%arg0: i32) -> (i32, i32) {
    %c0_i32 = arith.constant 0 : i32
    %c0_i32_0 = arith.constant 0 : i32
    %c0_i32_1 = arith.constant 0 : i32
    return %c0_i32, %c0_i32_0 : i32, i32
  }
  func.func @transform_10(%arg0: i32) -> (i32, i32) {
    %c0_i32 = arith.constant 0 : i32
    %c0_i32_0 = arith.constant 0 : i32
    %c0_i32_1 = arith.constant 0 : i32
    return %c0_i32, %c0_i32_0 : i32, i32
  }
  func.func @transform_11(%arg0: i32) -> (i32, i32) {
    %c0_i32 = arith.constant 0 : i32
    %c0_i32_0 = arith.constant 0 : i32
    %c0_i32_1 = arith.constant 0 : i32
    return %c0_i32, %c0_i32_0 : i32, i32
  }
  func.func @transform_12(%arg0: i32) -> (i32, i32) {
    %c0_i32 = arith.constant 0 : i32
    %c0_i32_0 = arith.constant 0 : i32
    %c0_i32_1 = arith.constant 0 : i32
    return %c0_i32, %c0_i32_0 : i32, i32
  }
  func.func @transform_13(%arg0: i32) -> (i32, i32) {
    %c0_i32 = arith.constant 0 : i32
    %c0_i32_0 = arith.constant 0 : i32
    %c0_i32_1 = arith.constant 0 : i32
    return %c0_i32, %c0_i32_0 : i32, i32
  }
  func.func @transform_14(%arg0: i32) -> (i32, i32, i32) {
    %c0_i32 = arith.constant 0 : i32
    %c0_i32_0 = arith.constant 0 : i32
    %c0_i32_1 = arith.constant 0 : i32
    %c0_i32_2 = arith.constant 0 : i32
    return %c0_i32, %c0_i32_0, %c0_i32_1 : i32, i32, i32
  }
  func.func @transform_15(%arg0: i32) -> (i32, i32, i32) {
    %c0_i32 = arith.constant 0 : i32
    %c0_i32_0 = arith.constant 0 : i32
    %c0_i32_1 = arith.constant 0 : i32
    %c0_i32_2 = arith.constant 0 : i32
    return %c0_i32, %c0_i32_0, %c0_i32_1 : i32, i32, i32
  }
  func.func @transform_16(%arg0: i32) -> (i32, i32, i32) {
    %c0_i32 = arith.constant 0 : i32
    %c0_i32_0 = arith.constant 0 : i32
    %c0_i32_1 = arith.constant 0 : i32
    %c0_i32_2 = arith.constant 0 : i32
    return %c0_i32, %c0_i32_0, %c0_i32_1 : i32, i32, i32
  }
  func.func @transform_17(%arg0: i32) -> (i32, i32, i32) {
    %c0_i32 = arith.constant 0 : i32
    %c0_i32_0 = arith.constant 0 : i32
    %c0_i32_1 = arith.constant 0 : i32
    %c0_i32_2 = arith.constant 0 : i32
    return %c0_i32, %c0_i32_0, %c0_i32_1 : i32, i32, i32
  }
  func.func @transform_18(%arg0: i32) -> (i32, i32, i32) {
    %c0_i32 = arith.constant 0 : i32
    %c0_i32_0 = arith.constant 0 : i32
    %c0_i32_1 = arith.constant 0 : i32
    %c0_i32_2 = arith.constant 0 : i32
    return %c0_i32, %c0_i32_0, %c0_i32_1 : i32, i32, i32
  }
  func.func @transform_19(%arg0: i32) -> (i32, i32, i32) {
    %c0_i32 = arith.constant 0 : i32
    %c0_i32_0 = arith.constant 0 : i32
    %c0_i32_1 = arith.constant 0 : i32
    %c0_i32_2 = arith.constant 0 : i32
    return %c0_i32, %c0_i32_0, %c0_i32_1 : i32, i32, i32
  }
  func.func @transform_20(%arg0: i32) -> (i32, i32, i32) {
    %c0_i32 = arith.constant 0 : i32
    %c0_i32_0 = arith.constant 0 : i32
    %c0_i32_1 = arith.constant 0 : i32
    %c0_i32_2 = arith.constant 0 : i32
    return %c0_i32, %c0_i32_0, %c0_i32_1 : i32, i32, i32
  }
  func.func @transform_21(%arg0: i32) -> (i32, i32, i32) {
    %c0_i32 = arith.constant 0 : i32
    %c0_i32_0 = arith.constant 0 : i32
    %c0_i32_1 = arith.constant 0 : i32
    %c0_i32_2 = arith.constant 0 : i32
    return %c0_i32, %c0_i32_0, %c0_i32_1 : i32, i32, i32
  }
  func.func @transform_22(%arg0: i32) -> (i32, i32, i32) {
    %c0_i32 = arith.constant 0 : i32
    %c0_i32_0 = arith.constant 0 : i32
    %c0_i32_1 = arith.constant 0 : i32
    %c0_i32_2 = arith.constant 0 : i32
    return %c0_i32, %c0_i32_0, %c0_i32_1 : i32, i32, i32
  }
  func.func @transform_23(%arg0: i32) -> (i32, i32, i32) {
    %c0_i32 = arith.constant 0 : i32
    %c0_i32_0 = arith.constant 0 : i32
    %c0_i32_1 = arith.constant 0 : i32
    %c0_i32_2 = arith.constant 0 : i32
    return %c0_i32, %c0_i32_0, %c0_i32_1 : i32, i32, i32
  }
  func.func @transform_24(%arg0: i32) -> (i32, i32, i32) {
    %c0_i32 = arith.constant 0 : i32
    %c0_i32_0 = arith.constant 0 : i32
    %c0_i32_1 = arith.constant 0 : i32
    %c0_i32_2 = arith.constant 0 : i32
    return %c0_i32, %c0_i32_0, %c0_i32_1 : i32, i32, i32
  }
  func.func @transform_25(%arg0: i32) -> (i32, i32, i32) {
    %c0_i32 = arith.constant 0 : i32
    %c0_i32_0 = arith.constant 0 : i32
    %c0_i32_1 = arith.constant 0 : i32
    %c0_i32_2 = arith.constant 0 : i32
    return %c0_i32, %c0_i32_0, %c0_i32_1 : i32, i32, i32
  }
  func.func @transform_26(%arg0: i32) -> (i32, i32, i32) {
    %c0_i32 = arith.constant 0 : i32
    %c0_i32_0 = arith.constant 0 : i32
    %c0_i32_1 = arith.constant 0 : i32
    %c0_i32_2 = arith.constant 0 : i32
    return %c0_i32, %c0_i32_0, %c0_i32_1 : i32, i32, i32
  }
  func.func @transform_27(%arg0: i32) -> (i32, i32, i32) {
    %c0_i32 = arith.constant 0 : i32
    %c0_i32_0 = arith.constant 0 : i32
    %c0_i32_1 = arith.constant 0 : i32
    %c0_i32_2 = arith.constant 0 : i32
    return %c0_i32, %c0_i32_0, %c0_i32_1 : i32, i32, i32
  }
  func.func @transform_28(%arg0: i32) -> (i32, i32, i32) {
    %c0_i32 = arith.constant 0 : i32
    %c0_i32_0 = arith.constant 0 : i32
    %c0_i32_1 = arith.constant 0 : i32
    %c0_i32_2 = arith.constant 0 : i32
    return %c0_i32, %c0_i32_0, %c0_i32_1 : i32, i32, i32
  }
  func.func @transform_29(%arg0: i32) -> (i32, i32, i32) {
    %c0_i32 = arith.constant 0 : i32
    %c0_i32_0 = arith.constant 0 : i32
    %c0_i32_1 = arith.constant 0 : i32
    %c0_i32_2 = arith.constant 0 : i32
    return %c0_i32, %c0_i32_0, %c0_i32_1 : i32, i32, i32
  }
  func.func @transform_30(%arg0: i32) -> (i32, i32) {
    %c0_i32 = arith.constant 0 : i32
    %c0_i32_0 = arith.constant 0 : i32
    %c0_i32_1 = arith.constant 0 : i32
    return %c0_i32, %c0_i32_0 : i32, i32
  }
  func.func @transform_31(%arg0: i32) -> (i32, i32) {
    %c0_i32 = arith.constant 0 : i32
    %c0_i32_0 = arith.constant 0 : i32
    %c0_i32_1 = arith.constant 0 : i32
    return %c0_i32, %c0_i32_0 : i32, i32
  }
  func.func @transform_32(%arg0: i32) -> (i32, i32) {
    %c0_i32 = arith.constant 0 : i32
    %c0_i32_0 = arith.constant 0 : i32
    %c0_i32_1 = arith.constant 0 : i32
    return %c0_i32, %c0_i32_0 : i32, i32
  }
  func.func @transform_33(%arg0: i32) -> (i32, i32) {
    %c0_i32 = arith.constant 0 : i32
    %c0_i32_0 = arith.constant 0 : i32
    %c0_i32_1 = arith.constant 0 : i32
    return %c0_i32, %c0_i32_0 : i32, i32
  }
  func.func @transform_34(%arg0: i32) -> (i32, i32) {
    %c0_i32 = arith.constant 0 : i32
    %c0_i32_0 = arith.constant 0 : i32
    %c0_i32_1 = arith.constant 0 : i32
    return %c0_i32, %c0_i32_0 : i32, i32
  }
  func.func @transform_35(%arg0: i32) -> (i32, i32) {
    %c0_i32 = arith.constant 0 : i32
    %c0_i32_0 = arith.constant 0 : i32
    %c0_i32_1 = arith.constant 0 : i32
    return %c0_i32, %c0_i32_0 : i32, i32
  }
  func.func @transform_36(%arg0: i32) -> (i32, i32, i32) {
    %c0_i32 = arith.constant 0 : i32
    %c0_i32_0 = arith.constant 0 : i32
    %c0_i32_1 = arith.constant 0 : i32
    return %arg0, %c0_i32, %c0_i32_0 : i32, i32, i32
  }
}

</mosaic_0001>

<bundles_post_ra>
// kernel: tile.14
= control target key start
LH: loop header
LB: loop body
LE: loop exit
PB: predicated region body
PF: predicated region fallthrough
CT: control target
= control target key end

     0   :  { %vm43_vm0 = vcmask 1047556   ;;  %vm45_vm1 = vcmask 130048   ;;  %s94_s22 = smov 16   ;;  %s95_s25 = smov 32   ;;  %vm55_vm2 = vcmask 523648   ;;  %vm65_vm3 = vcmask 392448   ;;  %s147_s0 = inlined_call_operand.vmem [shape: f32[8,4,16], index: 0, kind: input, shape index: {}]   ;;  %s148_s1 = inlined_call_operand.vmem [shape: f32[8,64], index: 1, kind: output, shape index: {}]  }
   0x1   :  { %v83_v0 = vld [vmem:[%s147_s0 + $0x1c] sm:$0xf]  ;;  %v84_v1 = vld [vmem:[%s147_s0 + $0x18] sm:$0xf]  ;;  %v85_v2 = vld [vmem:[%s147_s0 + $0x14] sm:$0xf] }
   0x2   :  { %9 = vst [vmem:[#allocation0 + $0x38] sm:$0xf] %v83_v0  ;;  %14 = vst [vmem:[#allocation0 + $0x30] sm:$0xf] %v84_v1  ;;  %v86_v3 = vld [vmem:[%s147_s0 + $0x10] sm:$0xf] }
   0x3   :  { %19 = vst [vmem:[#allocation0 + $0x28] sm:$0xf] %v85_v2  ;;  %v87_v4 = vld [vmem:[%s147_s0 + $0xc] sm:$0xf]  ;;  %v88_v5 = vld [vmem:[%s147_s0 + $0x8] sm:$0xf] }
   0x4   :  { %24 = vst [vmem:[#allocation0 + $0x20] sm:$0xf] %v86_v3  ;;  %29 = vst [vmem:[#allocation0 + $0x18] sm:$0xf] %v87_v4  ;;  %v89_v6 = vld [vmem:[%s147_s0 + $0x4] sm:$0xf] }
   0x5   :  { %34 = vst [vmem:[#allocation0 + $0x10] sm:$0xf] %v88_v5  ;;  %v39_v7 = vld [vmem:[%s147_s0] sm:$0xf]  ;;  %38 = vst [vmem:[#allocation0 + $0x8] sm:$0xf] %v89_v6 }
   0x6   :  { %40 = vst [vmem:[#allocation0] sm:$0xf] %v39_v7  ;;  %s93_s0 = smov 48   ;;  %vm75_vm4 = vcmask 261248  }
   0xb   :  { %v50_v8 = vld [vmem:[#allocation0 + $0x3] ss:$8 sm:$0xf0]   ;;  %v60_v9 = vld [vmem:[#allocation0 + $0x2] ss:$8 sm:$0xf0]  }
   0xc   :  { %v70_v14 = vld [vmem:[#allocation0 + $0x1] ss:$8 sm:$0xf0]   ;;  %v42_v17 = vld [vmem:[#allocation0] ss:$8 sm:$0xf0]  }
   0xd   :  { %v48_v10 = vld [vmem:[#allocation0 + $0x3] ss:$8 sm:$0xf]   ;;  %v58_v11 = vld [vmem:[#allocation0 + $0x2] ss:$8 sm:$0xf]  }
   0xe   :  { %v52_v12 = vsel %vm43_vm0, %v50_v8, %v48_v10  ;;  %v68_v13 = vld [vmem:[#allocation0 + $0x1] ss:$8 sm:$0xf]   ;;  %v41_v16 = vld [vmem:[#allocation0] ss:$8 sm:$0xf]   ;;  %v62_v18 = vsel %vm43_vm0, %v60_v9, %v58_v11 }
   0xf   :  { %53 = vrot.lane.b32.xlu0 %v52_v12, %s93_s0  ;;  %v72_v15 = vsel %vm43_vm0, %v70_v14, %v68_v13  ;;  %v44_v19 = vsel %vm43_vm0, %v42_v17, %v41_v16 }
  0x10   :  { %73 = vrot.lane.b32.xlu1 %v72_v15, %s94_s22  ;;  %46 = vst.msk [vmem:[%s148_s1] sm:$0xff] %vm45_vm1, %v44_v19  }
  0x13   :  { %63 = vrot.lane.b32.xlu0 %v62_v18, %s95_s25 }
  0x81   :  { %v54_v20 = vpop.permute.xlu0 %53  }
  0x82   :  { %56 = vst.msk [vmem:[%s148_s1] sm:$0xff] %vm55_vm2, %v54_v20   ;;  %v74_v21 = vpop.permute.xlu1 %73  }
  0x85   :  { %v64_v22 = vpop.permute.xlu0 %63  }
  0x86   :  { %66 = vst.msk [vmem:[%s148_s1] sm:$0xff] %vm65_vm3, %v64_v22  }
  0x87   :  { %76 = vst.msk [vmem:[%s148_s1] sm:$0xff] %vm75_vm4, %v74_v21  }

// kernel: forward.1
= control target key start
LH: loop header
LB: loop body
LE: loop exit
PB: predicated region body
PF: predicated region fallthrough
CT: control target
= control target key end

     0   :  { %s8025_s6 = smov 1   ;;  %s8026_s10 = smov 2   ;;  %s9815_s0 = inlined_call_operand.smem [shape: u32[37], index: -1, kind: input, shape index: {}] }
   0x1   :  { %s8081_s5 = sld [smem:[%s9815_s0]]   ;;  %s8027_s14 = smov 3  }
   0x2   :  { %s8086_s9 = sld [smem:[%s9815_s0 + %s8025_s6]]   ;;  %s8028_s18 = smov 4  }
   0x3   :  { %s8091_s13 = sld [smem:[%s9815_s0 + %s8026_s10]]   ;;  %s8029_s22 = smov 5  }
   0x4   :  { %s8096_s17 = sld [smem:[%s9815_s0 + %s8027_s14]]   ;;  %s8030_s26 = smov 6  }
   0x5   :  { %s8101_s21 = sld [smem:[%s9815_s0 + %s8028_s18]]   ;;  %s8031_s30 = smov 7  }
   0x6   :  { %s8106_s25 = sld [smem:[%s9815_s0 + %s8029_s22]]   ;;  %s8032_s4 = smov 8  }
   0x7   :  { %9871 = sst [smem:[#allocation6_spill]] %s8081_s5  ;;  %s8033_s10 = smov 9  }
   0x8   :  { %9872 = sst [smem:[#allocation7_spill]] %s8086_s9  ;;  %s8034_s15 = smov 10  }
   0x9   :  { %9873 = sst [smem:[#allocation8_spill]] %s8091_s13  ;;  %s8035_s20 = smov 11  }
   0xa   :  { %9874 = sst [smem:[#allocation9_spill]] %s8096_s17  ;;  %s8037_s1 = smov 13  }
   0xb   :  { %9875 = sst [smem:[#allocation10_spill]] %s8101_s21  ;;  %s8038_s7 = smov 14  }
   0xc   :  { %s8111_s29 = sld [smem:[%s9815_s0 + %s8030_s26]]   ;;  %s8036_s26 = smov 12  }
   0xd   :  { %s8116_s3 = sld [smem:[%s9815_s0 + %s8031_s30]]   ;;  %s8040_s22 = smov 16  }
   0xe   :  { %s8121_s8 = sld [smem:[%s9815_s0 + %s8032_s4]]   ;;  %s8041_s28 = smov 17  }
   0xf   :  { %s8126_s14 = sld [smem:[%s9815_s0 + %s8033_s10]]  }
  0x10   :  { %s8131_s19 = sld [smem:[%s9815_s0 + %s8034_s15]]   ;;  %s8039_s15 = smov 15  }
  0x11   :  { %s8136_s24 = sld [smem:[%s9815_s0 + %s8035_s20]]  }
  0x12   :  { %9876 = sst [smem:[#allocation11_spill]] %s8111_s29 }
  0x13   :  { %9877 = sst [smem:[#allocation12_spill]] %s8116_s3 }
  0x14   :  { %9878 = sst [smem:[#allocation13_spill]] %s8121_s8 }
  0x15   :  { %9879 = sst [smem:[#allocation14_spill]] %s8126_s14 }
  0x16   :  { %9880 = sst [smem:[#allocation15_spill]] %s8131_s19 }
  0x17   :  { %9881 = sst [smem:[#allocation16_spill]] %s8136_s24 }
  0x18   :  { %s8141_s30 = sld [smem:[%s9815_s0 + %s8036_s26]]  }
  0x19   :  { %s8146_s6 = sld [smem:[%s9815_s0 + %s8037_s1]]  }
  0x1a   :  { %s8151_s12 = sld [smem:[%s9815_s0 + %s8038_s7]]   ;;  %s8042_s7 = smov 18  }
  0x1b   :  { %s8156_s20 = sld [smem:[%s9815_s0 + %s8039_s15]]   ;;  %s8043_s15 = smov 19  }
  0x1c   :  { %s8161_s27 = sld [smem:[%s9815_s0 + %s8040_s22]]   ;;  %s8044_s22 = smov 20  }
  0x1d   :  { %s8166_s4 = sld [smem:[%s9815_s0 + %s8041_s28]]   ;;  %s8045_s28 = smov 21  }
  0x1e   :  { %9882 = sst [smem:[#allocation17_spill]] %s8141_s30 }
  0x1f   :  { %9883 = sst [smem:[#allocation18_spill]] %s8146_s6 }
  0x20   :  { %s8171_s21 = sld [smem:[%s9815_s0 + %s8042_s7]]   ;;  %s8046_s7 = smov 22  }
  0x21   :  { %s8176_s29 = sld [smem:[%s9815_s0 + %s8043_s15]]   ;;  %s8047_s15 = smov 23  }
  0x22   :  { %s8181_s30 = sld [smem:[%s9815_s0 + %s8044_s22]]   ;;  %s8048_s22 = smov 24  }
  0x23   :  { %9884 = sst [smem:[#allocation19_spill]] %s8166_s4 }
  0x24   :  { %s8186_s6 = sld [smem:[%s9815_s0 + %s8045_s28]]   ;;  %s8049_s28 = smov 25  }
  0x25   :  { %s8191_s24 = sld [smem:[%s9815_s0 + %s8046_s7]]   ;;  %s8050_s7 = smov 26  }
  0x27   :  { %9885 = sst [smem:[#allocation20_spill]] %s8176_s29 }
  0x28   :  { %9886 = sst [smem:[#allocation21_spill]] %s8181_s30 }
  0x29   :  { %s8196_s29 = sld [smem:[%s9815_s0 + %s8047_s15]]   ;;  %s8051_s15 = smov 27  }
  0x2a   :  { %9887 = sst [smem:[#allocation22_spill]] %s8186_s6 }
  0x2b   :  { %9888 = sst [smem:[#allocation23_spill]] %s8191_s24 }
  0x2c   :  { %s8201_s30 = sld [smem:[%s9815_s0 + %s8048_s22]]   ;;  %s8052_s22 = smov 28  }
  0x2d   :  { %s8206_s6 = sld [smem:[%s9815_s0 + %s8049_s28]]   ;;  %s8053_s28 = smov 29  }
  0x2e   :  { %s8211_s24 = sld [smem:[%s9815_s0 + %s8050_s7]]   ;;  %s8054_s7 = smov 30  }
  0x2f   :  { %9889 = sst [smem:[#allocation24_spill]] %s8196_s29 }
  0x30   :  { %s8216_s29 = sld [smem:[%s9815_s0 + %s8051_s15]]   ;;  %s8055_s15 = smov 31  }
  0x32   :  { %9890 = sst [smem:[#allocation25_spill]] %s8201_s30 }
  0x33   :  { %9891 = sst [smem:[#allocation26_spill]] %s8206_s6 }
  0x34   :  { %9892 = sst [smem:[#allocation27_spill]] %s8211_s24 }
  0x35   :  { %s8221_s30 = sld [smem:[%s9815_s0 + %s8052_s22]]   ;;  %s8056_s22 = smov 32  }
  0x36   :  { %9893 = sst [smem:[#allocation28_spill]] %s8216_s29 }
  0x37   :  { %s8226_s6 = sld [smem:[%s9815_s0 + %s8053_s28]]   ;;  %s8057_s28 = smov 33  }
  0x38   :  { %s8231_s24 = sld [smem:[%s9815_s0 + %s8054_s7]]   ;;  %s8058_s7 = smov 34  }
  0x39   :  { %s8236_s29 = sld [smem:[%s9815_s0 + %s8055_s15]]   ;;  %s8059_s15 = smov 35  }
  0x3b   :  { %9894 = sst [smem:[#allocation29_spill]] %s8221_s30 }
  0x3c   :  { %s8241_s30 = sld [smem:[%s9815_s0 + %s8056_s22]]   ;;  %s8060_s22 = smov 36  }
  0x3d   :  { %9895 = sst [smem:[#allocation30_spill]] %s8226_s6 }
  0x3e   :  { %9896 = sst [smem:[#allocation31_spill]] %s8231_s24 }
  0x3f   :  { %9897 = sst [smem:[#allocation32_spill]] %s8236_s29 }
  0x40   :  { %s8246_s6 = sld [smem:[%s9815_s0 + %s8057_s28]]  }
  0x41   :  { %s8251_s24 = sld [smem:[%s9815_s0 + %s8058_s7]]  }
  0x42   :  { %9898 = sst [smem:[#allocation33_spill]] %s8241_s30 }
  0x43   :  { %s8256_s29 = sld [smem:[%s9815_s0 + %s8059_s15]]  }
  0x44   :  { %s8261_s30 = sld [smem:[%s9815_s0 + %s8060_s22]]  }
  0x46   :  { %9899 = sst [smem:[#allocation34_spill]] %s8246_s6 }
  0x4a   :  { %9900 = sst [smem:[#allocation35_spill]] %s8261_s30 }
  0x4b   :  { %78 = vsyncpa [#allocation4], 0 }
  0x4c   :  { %80 = vsyncpa [#allocation4 + $0x1], 0  ;;  %s8263_s28 = smov 0   ;;  %s8265_s1 = smov 0  }
  0x4d   :  { %s8267_s2 = smov 0   ;;  %s8269_s7 = smov 0  }
  0x4e LB: > { %s9901_s4 = sld [smem:[#allocation19_spill]]  ;;  %s8284_s0 = sadd.s32 4294967295, %s8023_s7   ;;  %s8015_s1 = sphi %s8265_s1, %s9978_s1   ;;  %s8011_s28 = sphi %s8263_s28, %s9977_s28   ;;  %s8023_s7 = sphi %s8269_s7, %s9974_s7   ;;  %s8019_s2 = sphi %s8267_s2, %s9976_s2  }
  0x4f   : > { %s9902_s3 = sld [smem:[#allocation12_spill]]  ;;  %s7068_s10 = sadd.s32 4294967294, %s8023_s7  }
  0x50   : > { %9903 = sst [smem:[#allocation36_spill]] %s8011_s28  ;;  %s8288_s11 = sadd.s32 1, %s8023_s7  }
  0x51   : > { %9904 = sst [smem:[#allocation37_spill]] %s8019_s2  ;;  %s874_s15 = sadd.s32 1, %s8019_s2 }
  0x52   : > { %9905 = sst [smem:[#allocation38_spill]] %s8288_s11  ;;  %s871_s16 = ssub.s32 %s8023_s7, %s8288_s11 }
  0x53   : > { %p884_p0 = scmp.ne.s32.totalorder %s8019_s2, %s8015_s1  ;;  %p872_p1 = scmp.eq.s32.totalorder %s871_s16, 0 }
  0x54   : > { %p885_p2 = scmp.eq.s32.totalorder %s8284_s0, 1  ;;  %p890_p3 = scmp.ne.s32.totalorder %s8015_s1, %s8011_s28 }
  0x55   : > { %p891_p4 = scmp.eq.s32.totalorder %s7068_s10, 1  ;;  %p7071_p7 = scmp.ge.s32.totalorder %s8023_s7, 1 }
  0x56   : > { %s8299_s18 = scalar_select %p872_p1, %s8019_s2, %s874_s15  }
  0x57   : > { %p8301_p5 = por %p885_p2, %p884_p0  ;;  %p8305_p6 = por %p891_p4, %p890_p3 }
  0x58   : > { %9906 = sst [smem:[#allocation39_spill]] %s8299_s18  ;;  %p1039_p8 = scmp.lt.s32.totalorder %s8023_s7, 3 }
  0x59   : > { %s9907_s22 = scalar_select %p8301_p5, 1, 0 }
  0x5a   : > { %s9909_s23 = scalar_select %p8305_p6, 1, 0 }
  0x5b   : > { %9908 = sst [smem:[#allocation40_spill]] %s9907_s22  ;;  %p1040_p9 = pnand %p7071_p7, %p1039_p8 }
  0x5c   : > { %9910 = sst [smem:[#allocation41_spill]] %s9909_s23 }
  0x5d   : > { %1043 = sbr.rel (%p1040_p9) target bundleno = 8017 (0x1f51), region = 164 }
  0x62   : > { %s9911_s8 = sld [smem:[#allocation13_spill]]  ;;  %p1145_p10 = scmp.lt.s32.totalorder %s8284_s0, 1  ;;  %v9838_v1 = vmov 0.0   ;;  %vm8062_vm0 = vmmov 0   ;;  %vm1317_vm1 = vcmask 1043456   ;;  %v8063_v3 = vmov 0  }
  0x63   : > { %s9912_s19 = sld [smem:[#allocation15_spill]]  ;;  %7404 = vmatprep.subr.mxu0 %v9838_v1  ;;  %7406 = vmatprep.mubr.msk.f32.mxu0 %vm8062_vm0, %v9838_v1  ;;  %vm1204_vm2 = vcmask 64512   ;;  %vm1292_vm3 = vcmask 31744   ;;  %vm1515_vm4 = vcmask 261120   ;;  %v1551_v25 = vld [vmem:[%s8161_s27 + $0x38] sm:$0xff]  ;;  %v1550_v26 = vld [vmem:[%s8161_s27 + $0x30] sm:$0xff]  ;;  %v1554_v52 = vlaneseq }
  0x64   : > { %s9913_s5 = sld [smem:[#allocation6_spill]]  ;;  %7868 = vset.pattern.permute.xlu0 %v8063_v3  ;;  %7869 = vset.pattern.permute.xlu1 %v8063_v3  ;;  %v1549_v27 = vld [vmem:[%s8161_s27 + $0x28] sm:$0xff]  ;;  %v1548_v28 = vld [vmem:[%s8161_s27 + $0x20] sm:$0xff]  ;;  %v1547_v29 = vld [vmem:[%s8161_s27 + $0x18] sm:$0xff]  ;;  %vm1639_vm5 = vcmask 523264   ;;  %vm2061_vm6 = vcmask 130048  }
  0x65   : > { %s9914_s9 = sld [smem:[#allocation7_spill]]  ;;  %v1546_v30 = vld [vmem:[%s8161_s27 + $0x10] sm:$0xff]  ;;  %v1545_v31 = vld [vmem:[%s8161_s27 + $0x8] sm:$0xff]  ;;  %v1544_v32 = vld [vmem:[%s8161_s27] sm:$0xff]  ;;  %v8411_v53 = vshrl.u32 %v1554_v52, 7  ;;  %vm2131_vm7 = vcmask 1041409  }
  0x66   : > { %s8318_s26 = scalar_select %p1145_p10, %s8284_s0, 1  ;;  %v1195_v35 = vld [vmem:[%s9902_s3 + $0x38] sm:$0xff]  ;;  %v1194_v36 = vld [vmem:[%s9902_s3 + $0x30] sm:$0xff]  ;;  %v1193_v37 = vld [vmem:[%s9902_s3 + $0x28] sm:$0xff]  ;;  %vm2133_vm8 = vcmask 1042434   ;;  %vm2135_vm9 = vcmask 1043459  }
  0x67   : > { %s9915_s17 = sld [smem:[#allocation9_spill]]  ;;  %v1192_v38 = vld [vmem:[%s9902_s3 + $0x20] sm:$0xff]  ;;  %v1191_v39 = vld [vmem:[%s9902_s3 + $0x18] sm:$0xff]  ;;  %v1190_v40 = vld [vmem:[%s9902_s3 + $0x10] sm:$0xff]  ;;  %v8414_v54 = vsub.s32 0, %v8411_v53  ;;  %vm2137_vm10 = vcmask 1044484  }
  0x68   : > { %v1196_v0 = vld [vmem:[%s9911_s8] sm:$0xff]  ;;  %s8321_s10 = sshll.u32 %s8318_s26, 3  ;;  %s7222_s15 = sshll.u32 %s8318_s26, 6  ;;  %v1189_v50 = vld [vmem:[%s9902_s3 + $0x8] sm:$0xff]  ;;  %v1803_v60 = vld [vmem:[%s8171_s21 + $0x18] sm:$0xff]  ;;  %vm2139_vm11 = vcmask 1045509  }
  0x69   : > { %v1284_v2 = vld [vmem:[%s9912_s19] sm:$0xf]  ;;  %7405 = vmatpush3.msra.mxu0 %v1196_v0  ;;  %s9916_s14 = sld [smem:[#allocation14_spill]]  ;;  %v1802_v61 = vld [vmem:[%s8171_s21 + $0x10] sm:$0xff]  ;;  %v1801_v63 = vld [vmem:[%s8171_s21 + $0x8] sm:$0xff]  ;;  %vm2141_vm12 = vcmask 1046534  }
  0x6a   : > { %7409 = vmatprep.subr.msk.mxu1 %vm1317_vm1, %v1284_v2  ;;  %s1148_s16 = scalar_lea.vmem %s9913_s5, %s8321_s10  ;;  %s9917_s13 = sld [smem:[#allocation8_spill]]  ;;  %1591 = vmatprep.subr.mxu0 %v1551_v25  ;;  %v7093_v45 = vld [vmem:[%s8151_s12] ss:$0 sm:$0xff]  ;;  %vm2143_vm13 = vcmask 1047559   ;;  %vm3144_vm15 = vcmask 392448  }
  0x6b   : > { %7410 = vmatpush3.msk.msra.mxu1 %vm1317_vm1, %v1284_v2  ;;  %s8329_s8 = scalar_lea.vmem %s9914_s9, %s7222_s15  ;;  %v1167_v4 = vld [vmem:[%s1148_s16] sm:$0xff]  ;;  %s9919_s26 = sld [smem:[#allocation16_spill]]  ;;  %vm9856_vm1 = vcmask 523648  }
  0x6c   : > { %7423 = vmatprep.subr.mxu1 %v9838_v1  ;;  %v1168_v5 = vld [vmem:[%s8329_s8] sm:$0xff]  ;;  %v1169_v6 = vld [vmem:[%s8329_s8 + $0x8] sm:$0xff]  ;;  %7407 = vmatmul.mubr.msk.f32.vlgmr.msra.gmra.mxu0 %vm1204_vm2, %v1167_v4  ;;  %v1170_v7 = vld [vmem:[%s8329_s8 + $0x10] sm:$0xff]  ;;  %s9921_s5 = sld [smem:[#allocation17_spill]]  ;;  %s9935_s9 = smov 48  }
  0x6d   : > { %s8337_s19 = scalar_lea.vmem %s9915_s17, %s8321_s10  ;;  %7411 = vmatprep.mubr.msk.f32.mxu1 %vm1292_vm3, %v1168_v5  ;;  %1631 = vmatprep.mubr.f32.mxu0 %v9838_v1  ;;  %v1171_v9 = vld [vmem:[%s8329_s8 + $0x18] sm:$0xff]  ;;  %v1172_v10 = vld [vmem:[%s8329_s8 + $0x20] sm:$0xff]  ;;  %v1173_v11 = vld [vmem:[%s8329_s8 + $0x28] sm:$0xff]  ;;  %s9939_s17 = sld [smem:[#allocation24_spill]] }
  0x6e   : > { %v1184_v8 = vld [vmem:[%s8337_s19] sm:$0xff]  ;;  %7412 = vmatmul.mubr.msk.f32.vlgmr.msra.gmra.mxu1 %vm1292_vm3, %v1169_v6  ;;  %1592 = vmatpush1.msra.mxu0 %v1550_v26  ;;  %v1174_v33 = vld [vmem:[%s8329_s8 + $0x30] sm:$0xff]  ;;  %v1175_v34 = vld [vmem:[%s8329_s8 + $0x38] sm:$0xff]  ;;  %s9830_s8 = smov 64   ;;  %s9940_s18 = sld [smem:[#allocation25_spill]] }
  0x6f   : > { %1280 = vperm.xlu0 %7868, %v1184_v8   ;;  %7414 = vmatprep.mubr.msk.f32.mxu1 %vm1292_vm3, %v1170_v7  ;;  %v7079_v12 = vld [vmem:[%s9916_s14] ss:$0 sm:$0xff]  ;;  %s9938_s14 = sld [smem:[#allocation26_spill]] }
  0x70   : > { %s8362_s16 = scalar_lea.vmem %s9917_s13, %s7222_s15  ;;  %1593 = vmatprep.subr.mxu0 %v1549_v27  ;;  %7424 = vmatpush3.msra.mxu1 %v1195_v35  ;;  %v7094_v47 = vld [vmem:[%s8156_s20] ss:$0 sm:$0xff]  ;;  %s9920_s15 = sld [smem:[#allocation18_spill]] }
  0x71   : > { %v1180_v19 = vld [vmem:[%s8362_s16 + $0x20] sm:$0xff]  ;;  %1594 = vmatpush1.msra.mxu0 %v1548_v28  ;;  %7425 = vmatprep.subr.mxu1 %v9838_v1  ;;  %v1177_v62 = vld [vmem:[%s8362_s16 + $0x8] sm:$0xff]  ;;  %v1178_v2 = vld [vmem:[%s8362_s16 + $0x10] sm:$0xff]  ;;  %s9937_s13 = sld [smem:[#allocation22_spill]] }
  0x72   : > { %7415 = vmatmul.mubr.msk.f32.gmra.mxu1 %vm1292_vm3, %v1171_v9  ;;  %1595 = vmatprep.subr.mxu0 %v1547_v29  ;;  %v1188_v51 = vld [vmem:[%s9902_s3] sm:$0xff]  ;;  %v1179_v3 = vld [vmem:[%s8362_s16 + $0x18] sm:$0xff]  ;;  %v1181_v4 = vld [vmem:[%s8362_s16 + $0x28] sm:$0xff]  ;;  %s9941_s2 = sld [smem:[#allocation28_spill]] }
  0x73   : > { %7417 = vmatprep.mubr.msk.f32.mxu1 %vm1292_vm3, %v1172_v10  ;;  %1596 = vmatpush1.msra.mxu0 %v1546_v30  ;;  %v8417_v55 = vld [vmem:[%s9901_s4] sm:$0x3]  ;;  %v1182_v5 = vld [vmem:[%s8362_s16 + $0x30] sm:$0xff]  ;;  %v1183_v6 = vld [vmem:[%s8362_s16 + $0x38] sm:$0xff]  ;;  %s9947_s28 = sld [smem:[#allocation29_spill]] }
  0x74   : > { %1597 = vmatprep.subr.mxu0 %v1545_v31  ;;  %7426 = vmatpush3.msra.mxu1 %v1194_v36  ;;  %v1557_v56 = vrot.slane %v8417_v55, %v8414_v54  ;;  %v1176_v59 = vld [vmem:[%s8362_s16] sm:$0xff]  ;;  %s9923_s16 = sld [smem:[#allocation20_spill]] }
  0x75   : > { %1598 = vmatpush1.msra.mxu0 %v1544_v32  ;;  %7427 = vmatprep.subr.mxu1 %v9838_v1  ;;  %v1800_v0 = vld [vmem:[%s8171_s21] sm:$0xff]  ;;  %s9969_s6 = sld [smem:[#allocation34_spill]] }
  0x76   : > { %7418 = vmatmul.mubr.msk.f32.gmra.mxu1 %vm1292_vm3, %v1173_v11  ;;  %7442 = vmatprep.subr.mxu0 %v9838_v1  ;;  %v8440_v7 = vld [vmem:[%s8106_s25] sm:$0xff] }
  0x77   : > { %7420 = vmatprep.mubr.msk.f32.mxu1 %vm1292_vm3, %v1174_v33  ;;  %7428 = vmatpush3.msra.mxu1 %v1193_v37 }
  0x78   : > { %7429 = vmatprep.subr.mxu1 %v9838_v1  ;;  %s9942_s11 = smov %s9941_s2 }
  0x79   : > { %7430 = vmatpush3.msra.mxu1 %v1192_v38  ;;  %s9948_s30 = smov %s9947_s28 }
  0x7a   : > { %7421 = vmatmul.mubr.msk.f32.gmra.mxu1 %vm1292_vm3, %v1175_v34  ;;  %7431 = vmatprep.subr.mxu1 %v9838_v1  ;;  %vm2717_vm3 = vcmask 261248  }
  0x7b   : > { %7439 = vmatprep.mubr.msk.f32.mxu1 %vm8062_vm0, %v9838_v1  ;;  %7432 = vmatpush3.msra.mxu1 %v1191_v39 }
  0x7c   : > { %7433 = vmatprep.subr.mxu1 %v9838_v1 }
  0x7d   : > { %7434 = vmatpush3.msra.mxu1 %v1190_v40 }
  0x7e   : > { %7435 = vmatprep.subr.mxu1 %v9838_v1 }
  0x7f   : > { %7436 = vmatpush3.msra.mxu1 %v1189_v50 }
  0x80   : > { %7437 = vmatprep.subr.mxu1 %v9838_v1 }
  0x81   : > { %7438 = vmatpush3.msra.mxu1 %v1188_v51 }
  0x82   : > { %7461 = vmatprep.subr.mxu1 %v1803_v60 }
  0xea   : > { %v8352_v14 = vpop.permute.xlu0 %1280 }
  0xeb   : > { %9918 = vst [vmem:[#allocation42_spill] sm:$0xff] %v8352_v14 }
 0x12c   : > { %v1274_v13 = vpop.f32.mrf.mxu0 }
 0x12d   : > { %v1275_v15 = vadd.f32 %v7079_v12, %v1274_v13  ;;  %v7081_v13 = vld [vmem:[%s9919_s26] ss:$0 sm:$0xff]  ;;  %s9852_s26 = smov 112  }
 0x12e   : > { %v7408_v16 = vpop.f32.mrf.mxu0  ;;  %v7413_v8 = vpop.f32.mrf.mxu1 }
 0x12f   : > { %v8355_v17 = vmul.f32 %v8352_v14, %v1275_v15 }
 0x130   : > { %v1387_v9 = vpop.f32.mrf.mxu1 }
 0x131   : > { %v1516_v18 = vsel %vm1515_vm4, %v8355_v17, 0.0  ;;  %v1388_v15 = vadd.f32 %v7081_v13, %v1387_v9 }
 0x132   : > { %1517 = vadd.xlane.f32.xlu0 %v1516_v18  ;;  %v7416_v11 = vpop.f32.mrf.mxu1  ;;  %v7092_v18 = vld [vmem:[%s9920_s15] ss:$0 sm:$0xff]  ;;  %s9926_s15 = sld [smem:[#allocation10_spill]] }
 0x134   : > { %v1397_v12 = vpop.f32.mrf.mxu1 }
 0x135   : > { %v1398_v27 = vadd.f32 %v7081_v13, %v1397_v12 }
 0x136   : > { %v7419_v16 = vpop.f32.mrf.mxu1 }
 0x148   : > { %1448 = vperm.xlu0 %7868, %v1180_v19  }
 0x1bb   : > { %v1518_v20 = vpop.xlane.xlu0 %1517 }
 0x1bc   : > { %v1520_v21 = vmul.f32 0.03125, %v1518_v20  ;;  %v1393_v20 = vadd.f32 %v7413_v8, %v7081_v13 }
 0x1be   : > { %v1521_v22 = vsub.f32 %v8355_v17, %v1520_v21 }
 0x1c0   : > { %v1522_v23 = vmul.f32 %v1521_v22, %v1521_v22 }
 0x1c2   : > { %v1523_v24 = vsel %vm1515_vm4, %v1522_v23, 0.0  ;;  %v7091_v23 = vld [vmem:[%s9921_s5] ss:$0 sm:$0xff]  ;;  %s9922_s5 = sld [smem:[#allocation11_spill]] }
 0x1c3   : > { %1524 = vadd.xlane.f32.xlu1 %v1523_v24  ;;  %v1407_v24 = vpop.f32.mrf.mxu1  ;;  %v1449_v32 = vpop.permute.xlu0 %1448 }
 0x1c4   : > { %v1408_v31 = vadd.f32 %v7081_v13, %v1407_v24 }
 0x24c   : > { %v1525_v41 = vpop.xlane.xlu1 %1524 }
 0x24d   : > { %v1526_v42 = vmul.f32 0.03125, %v1525_v41 }
 0x24f   : > { %v1527_v43 = vadd.f32 1e-05, %v1526_v42 }
 0x251   : > { %7870 = vrsqrt.f32 %v1527_v43  ;;  %v1413_v43 = vadd.f32 %v7419_v16, %v7081_v13 }
 0x25e   : > { %v7871_v44 = vpop.eup %7870 }
 0x25f   : > { %v1529_v46 = vmul.f32 %v7871_v44, %v1521_v22 }
 0x261   : > { %v1536_v48 = vmul.f32 %v7093_v45, %v1529_v46 }
 0x263   : > { %v1543_v49 = vadd.f32 %v7094_v47, %v1536_v48 }
 0x265   : > { %7095 = vmatmul.mubr.msk.f32.vlgmr.msra.gmra.mxu0 %vm1515_vm4, %v1543_v49 }
 0x266   : > { %7443 = vmatpush3.msra.mxu0 %v1195_v35  ;;  %7458 = vmatprep.mubr.msk.f32.mxu0 %vm8062_vm0, %v9838_v1  ;;  %v1403_v35 = vadd.f32 %v7416_v11, %v7081_v13 }
 0x267   : > { %7444 = vmatprep.subr.mxu0 %v9838_v1 }
 0x268   : > { %7445 = vmatpush3.msra.mxu0 %v1194_v36 }
 0x269   : > { %7446 = vmatprep.subr.mxu0 %v9838_v1 }
 0x26a   : > { %7447 = vmatpush3.msra.mxu0 %v1193_v37 }
 0x26b   : > { %7448 = vmatprep.subr.mxu0 %v9838_v1 }
 0x26c   : > { %7449 = vmatpush3.msra.mxu0 %v1192_v38 }
 0x26d   : > { %7450 = vmatprep.subr.mxu0 %v9838_v1 }
 0x26e   : > { %7451 = vmatpush3.msra.mxu0 %v1191_v39  ;;  %v1470_v39 = vmul.f32 %v1449_v32, %v1408_v31 }
 0x26f   : > { %7452 = vmatprep.subr.mxu0 %v9838_v1 }
 0x270   : > { %7453 = vmatpush3.msra.mxu0 %v1190_v40  ;;  %v7422_v40 = vpop.f32.mrf.mxu1  ;;  %v1485_v47 = vadd.f32 %v7091_v23, %v1470_v39 }
 0x271   : > { %7454 = vmatprep.subr.mxu0 %v9838_v1 }
 0x272   : > { %7455 = vmatpush3.msra.mxu0 %v1189_v50  ;;  %v1417_v48 = vpop.f32.mrf.mxu1  ;;  %v1500_v50 = vmul.f32 %v7092_v18, %v1449_v32 }
 0x273   : > { %7456 = vmatprep.subr.mxu0 %v9838_v1 }
 0x274   : > { %7457 = vmatpush3.msra.mxu0 %v1188_v51 }
 0x275   : > { %7481 = vmatprep.subr.mxu0 %v9838_v1 }
 0x325   : > { %v1633_v57 = vpop.f32.mrf.mxu0 }
 0x326   : > { %v8421_v58 = vadd.f32 %v1633_v57, %v1557_v56 }
 0x327   : > { %v8484_v16 = vpop.f32.mrf.mxu0 }
 0x328   : > { %1720 = vrot.lane.b32.xlu1 %v8421_v58, %s9830_s8  ;;  %7440 = vmatmul.mubr.msk.f32.vlgmr.msra.gmra.mxu1 %vm1639_vm5, %v8421_v58 }
 0x329   : > { %7462 = vmatpush3.msra.mxu1 %v1803_v60  ;;  %v1418_v60 = vadd.f32 %v7081_v13, %v1417_v48 }
 0x32a   : > { %7463 = vmatprep.subr.mxu1 %v1802_v61 }
 0x32b   : > { %7464 = vmatpush3.msra.mxu1 %v1802_v61  ;;  %v8464_v61 = vadd.f32 %v1500_v50, %v1485_v47 }
 0x32c   : > { %1428 = vperm.xlu1 %7869, %v1176_v59   ;;  %7465 = vmatprep.subr.mxu1 %v1801_v63 }
 0x32d   : > { %7466 = vmatpush3.msra.mxu1 %v1801_v63 }
 0x32e   : > { %7467 = vmatprep.subr.mxu1 %v1800_v0 }
 0x32f   : > { %7468 = vmatpush3.msra.mxu1 %v1800_v0 }
 0x330   : > { %1433 = vperm.xlu1 %7869, %v1177_v62   ;;  %7501 = vmatprep.subr.mxu1 %v9838_v1 }
 0x334   : > { %1438 = vperm.xlu1 %7869, %v1178_v2   ;;  %v1423_v2 = vadd.f32 %v7422_v40, %v7081_v13 }
 0x338   : > { %1443 = vperm.xlu1 %7869, %v1179_v3  }
 0x33c   : > { %1453 = vperm.xlu1 %7869, %v1181_v4  }
 0x340   : > { %1458 = vperm.xlu1 %7869, %v1182_v5  }
 0x344   : > { %1463 = vperm.xlu1 %7869, %v1183_v6  }
 0x348   : > { %1716 = vrot.lane.b32.xlu1 %v8440_v7, %s9830_s8 }
 0x39a   : > { %v1721_v10 = vpop.permute.xlu1 %1720 }
 0x39b   : > { %7459 = vmatmul.mubr.msk.f32.vlgmr.msra.gmra.mxu0 %vm1639_vm5, %v1721_v10 }
 0x39c   : > { %7483 = vmatprep.mubr.msk.f32.mxu0 %vm8062_vm0, %v9838_v1 }
 0x3a7   : > { %v1429_v19 = vpop.permute.xlu1 %1428 }
 0x3a8   : > { %v1466_v21 = vmul.f32 %v1429_v19, %v1388_v15  ;;  %v1496_v22 = vmul.f32 %v7092_v18, %v1429_v19  ;;  %v1187_v19 = vld [vmem:[%s9922_s5] sm:$0xff] }
 0x3aa   : > { %v1481_v25 = vadd.f32 %v7091_v23, %v1466_v21 }
 0x3ab   : > { %v1434_v26 = vpop.permute.xlu1 %1433 }
 0x3ac   : > { %v8450_v28 = vadd.f32 %v1496_v22, %v1481_v25  ;;  %v1467_v29 = vmul.f32 %v1434_v26, %v1393_v20  ;;  %v1497_v30 = vmul.f32 %v7092_v18, %v1434_v26  ;;  %v8065_v22 = vmov 1966171168  }
 0x3ad   : > { %v1638_v26 = vmul.f32 %v8421_v58, %v8440_v7 }
 0x3ae   : > { %v1482_v33 = vadd.f32 %v7091_v23, %v1467_v29  ;;  %7469 = vmatprep.mubr.msk.f32.mxu1 %vm1515_vm4, %v8450_v28 }
 0x3af   : > { %v1439_v34 = vpop.permute.xlu1 %1438 }
 0x3b0   : > { %v8454_v36 = vadd.f32 %v1497_v30, %v1482_v33  ;;  %v1468_v37 = vmul.f32 %v1439_v34, %v1398_v27  ;;  %v1498_v38 = vmul.f32 %v7092_v18, %v1439_v34  ;;  %v7098_v30 = vld [vmem:[%s9923_s16] ss:$0 sm:$0xff] }
 0x3b2   : > { %v1483_v41 = vadd.f32 %v7091_v23, %v1468_v37  ;;  %7470 = vmatmul.mubr.msk.f32.vlgmr.msra.gmra.mxu1 %vm1515_vm4, %v8454_v36 }
 0x3b3   : > { %v1444_v42 = vpop.permute.xlu1 %1443 }
 0x3b4   : > { %v8458_v44 = vadd.f32 %v1498_v38, %v1483_v41  ;;  %v1469_v45 = vmul.f32 %v1444_v42, %v1403_v35  ;;  %v1499_v46 = vmul.f32 %v7092_v18, %v1444_v42 }
 0x3b6   : > { %v1484_v49 = vadd.f32 %v7091_v23, %v1469_v45  ;;  %7472 = vmatprep.mubr.msk.f32.mxu1 %vm1515_vm4, %v8458_v44 }
 0x3b7   : > { %v1454_v51 = vpop.permute.xlu1 %1453 }
 0x3b8   : > { %v8462_v56 = vadd.f32 %v1499_v46, %v1484_v49  ;;  %v1471_v57 = vmul.f32 %v1454_v51, %v1413_v43  ;;  %v1501_v59 = vmul.f32 %v7092_v18, %v1454_v51 }
 0x3ba   : > { %v1486_v62 = vadd.f32 %v7091_v23, %v1471_v57  ;;  %7473 = vmatmul.mubr.msk.f32.gmra.mxu1 %vm1515_vm4, %v8462_v56 }
 0x3bb   : > { %v1459_v63 = vpop.permute.xlu1 %1458  ;;  %7475 = vmatprep.mubr.msk.f32.mxu1 %vm1515_vm4, %v8464_v61 }
 0x3bc   : > { %v8470_v0 = vadd.f32 %v1501_v59, %v1486_v62  ;;  %v1502_v3 = vmul.f32 %v7092_v18, %v1459_v63  ;;  %v1472_v4 = vmul.f32 %v1459_v63, %v1418_v60 }
 0x3be   : > { %v1487_v5 = vadd.f32 %v7091_v23, %v1472_v4  ;;  %7476 = vmatmul.mubr.msk.f32.gmra.mxu1 %vm1515_vm4, %v8470_v0 }
 0x3bf   : > { %v1464_v6 = vpop.permute.xlu1 %1463 }
 0x3c0   : > { %v8474_v8 = vadd.f32 %v1502_v3, %v1487_v5  ;;  %v1473_v9 = vmul.f32 %v1464_v6, %v1423_v2  ;;  %v1503_v10 = vmul.f32 %v7092_v18, %v1464_v6 }
 0x3c2   : > { %v1488_v11 = vadd.f32 %v7091_v23, %v1473_v9  ;;  %7478 = vmatprep.mubr.msk.f32.mxu1 %vm1515_vm4, %v8474_v8  ;;  %v1966_v23 = vunpack.c.l.s4 %v8065_v22 }
 0x3c4   : > { %v8478_v12 = vadd.f32 %v1503_v10, %v1488_v11  ;;  %v1967_v25 = vunpack.c.0.s8 %v1966_v23 }
 0x3c6   : > { %7479 = vmatmul.mubr.msk.f32.gmra.mxu1 %vm1515_vm4, %v8478_v12  ;;  %v8493_v29 = vsub.s32 %v1967_v25, %v8411_v53  ;;  %v8546_v25 = vpop.permute.xlu1 %1716 }
 0x3c7   : > { %7503 = vmatprep.mubr.msk.f32.mxu1 %vm8062_vm0, %v9838_v1  ;;  %9924 = vst [vmem:[#allocation43_spill] sm:$0xff] %v8546_v25 }
 0x3e8   : > { %v1709_v13 = vpop.f32.mrf.mxu1 }
 0x3e9   : > { %v1713_v24 = vmul.f32 %v1709_v13, %v1187_v19 }
 0x3ea   : > { %v7441_v15 = vpop.f32.mrf.mxu1 }
 0x3eb   : > { %v8490_v27 = vadd.f32 %v1713_v24, %v1638_v26  ;;  %v1719_v26 = vmul.f32 %v8546_v25, %v8421_v58 }
 0x3ed   : > { %v1971_v33 = vrot.slane %v8490_v27, %v8493_v29  ;;  %v1964_v7 = vcombine.high %v8490_v27, %v8490_v27 }
 0x3ef   : > { %v1979_v37 = vcombine.high %v1971_v33, %v1971_v33  ;;  %v1987_v38 = vrot.slane %v1971_v33, %v8493_v29  ;;  %v1978_v42 = vrot.slane %v1964_v7, %v8493_v29 }
 0x3f1   : > { %v2001_v41 = vrot.slane %v1979_v37, %v8493_v29  ;;  %v2016_v46 = vrot.slane %v1987_v38, %v8414_v54  ;;  %v1980_v57 = vcombine.high %v1978_v42, %v1978_v42  ;;  %v1994_v58 = vrot.slane %v1978_v42, %v8493_v29 }
 0x3f3   : > { %v2011_v51 = vcombine.high %v2001_v41, %v2001_v41  ;;  %v2008_v2 = vrot.slane %v1980_v57, %v8493_v29  ;;  %v2020_v33 = vrot.slane %v2001_v41, %v8414_v54  ;;  %v2010_v41 = vcombine.high %v1994_v58, %v1994_v58 }
 0x3f5   : > { %v2028_v63 = vrot.slane %v2011_v51, %v8414_v54  ;;  %v2036_v10 = vrot.slane %v2008_v2, %v8414_v54 }
 0x45b   : > { %v1790_v20 = vpop.f32.mrf.mxu0 }
 0x45c   : > { %v1794_v18 = vmul.f32 %v1790_v20, %v1187_v19 }
 0x45d   : > { %v7460_v21 = vpop.f32.mrf.mxu0 }
 0x45e   : > { %1796 = vrot.lane.b32.xlu1 %v1794_v18, %s9830_s8  ;;  %v2012_v18 = vcombine.high %v2008_v2, %v2008_v2 }
 0x460   : > { %v2044_v21 = vrot.slane %v2012_v18, %v8414_v54 }
 0x472   : > { %v7471_v31 = vpop.f32.mrf.mxu1 }
 0x473   : > { %v1907_v32 = vadd.f32 %v7471_v31, %v7098_v30 }
 0x474   : > { %v1901_v34 = vpop.f32.mrf.mxu1 }
 0x475   : > { %1942 = vst.msk [vmem:[#allocation2 + $0x8] sm:$0xff] %vm1639_vm5, %v1907_v32  ;;  %v1902_v35 = vadd.f32 %v7098_v30, %v1901_v34  ;;  %v2009_v34 = vcombine.high %v1987_v38, %v1987_v38  ;;  %v2032_v38 = vrot.slane %v1994_v58, %v8414_v54 }
 0x477   : > { %1940 = vst.msk [vmem:[#allocation2] sm:$0xff] %vm1639_vm5, %v1902_v35  ;;  %v2024_v7 = vrot.slane %v2009_v34, %v8414_v54 }
 0x47a   : > { %v7474_v39 = vpop.f32.mrf.mxu1 }
 0x47b   : > { %v1917_v40 = vadd.f32 %v7474_v39, %v7098_v30 }
 0x47c   : > { %v1911_v43 = vpop.f32.mrf.mxu1  ;;  %v8554_v32 = vld [vmem:[#allocation2 + $0x8] sm:$0xff] }
 0x47d   : > { %1946 = vst.msk [vmem:[#allocation2 + $0x18] sm:$0xff] %vm1639_vm5, %v1917_v40  ;;  %v1912_v45 = vadd.f32 %v7098_v30, %v1911_v43  ;;  %v8558_v35 = vmul.f32 %v2020_v33, %v8554_v32 }
 0x47e   : > { %v7477_v47 = vpop.f32.mrf.mxu1  ;;  %v8507_v48 = vld [vmem:[#allocation2] sm:$0xff] }
 0x47f   : > { %1944 = vst.msk [vmem:[#allocation2 + $0x10] sm:$0xff] %vm1639_vm5, %v1912_v45  ;;  %v1927_v49 = vadd.f32 %v7477_v47, %v7098_v30  ;;  %v8511_v50 = vmul.f32 %v2016_v46, %v8507_v48  ;;  %v2065_v39 = vsel %vm2061_vm6, %v8558_v35, 0.0  ;;  %v2040_v47 = vrot.slane %v2010_v41, %v8414_v54 }
 0x480   : > { %v1921_v59 = vpop.f32.mrf.mxu1 }
 0x481   : > { %1950 = vst.msk [vmem:[#allocation2 + $0x28] sm:$0xff] %vm1639_vm5, %v1927_v49  ;;  %v1922_v60 = vadd.f32 %v7098_v30, %v1921_v59  ;;  %v2062_v62 = vsel %vm2061_vm6, %v8511_v50, 0.0  ;;  %v8588_v59 = vsub.s32 1, %v8411_v53 }
 0x482   : > { %2063 = vadd.xlane.f32.xlu1 %v2062_v62 }
 0x483   : > { %1948 = vst.msk [vmem:[#allocation2 + $0x20] sm:$0xff] %vm1639_vm5, %v1922_v60  ;;  %v1561_v60 = vrot.slane %v8417_v55, %v8588_v59  ;;  %v2098_v55 = vand.u32 127, %v1554_v52 }
 0x484   : > { %v8519_v3 = vld [vmem:[#allocation2 + $0x18] sm:$0xff] }
 0x485   : > { %v8522_v4 = vmul.f32 %v2028_v63, %v8519_v3  ;;  %v8595_v63 = vadd.f32 %v8484_v16, %v1561_v60 }
 0x486   : > { %v7480_v5 = vpop.f32.mrf.mxu1  ;;  %v8560_v37 = vld [vmem:[#allocation2 + $0x10] sm:$0xff] }
 0x487   : > { %v1937_v6 = vadd.f32 %v7480_v5, %v7098_v30  ;;  %v2071_v9 = vsel %vm2061_vm6, %v8522_v4, 0.0  ;;  %v8567_v40 = vmul.f32 %v2024_v7, %v8560_v37 }
 0x488   : > { %v1931_v11 = vpop.f32.mrf.mxu1  ;;  %2072 = vadd.xlane.f32.xlu1 %v2071_v9  ;;  %v8527_v13 = vld [vmem:[#allocation2 + $0x28] sm:$0xff]  ;;  %v8605_v9 = vsub.s32 %v2098_v55, %v8411_v53 }
 0x489   : > { %1954 = vst.msk [vmem:[#allocation2 + $0x38] sm:$0xff] %vm1639_vm5, %v1937_v6  ;;  %v1932_v15 = vadd.f32 %v7098_v30, %v1931_v11  ;;  %v8531_v19 = vmul.f32 %v2036_v10, %v8527_v13  ;;  %v2068_v45 = vsel %vm2061_vm6, %v8567_v40, 0.0 }
 0x48a   : > { %v8569_v43 = vld [vmem:[#allocation2 + $0x20] sm:$0xff]  ;;  %9925 = vst [vmem:[#allocation44_spill] sm:$0xff] %v8605_v9 }
 0x48b   : > { %1952 = vst.msk [vmem:[#allocation2 + $0x30] sm:$0xff] %vm1639_vm5, %v1932_v15  ;;  %v2077_v20 = vsel %vm2061_vm6, %v8531_v19, 0.0  ;;  %v8575_v46 = vmul.f32 %v2032_v38, %v8569_v43 }
 0x48c   : > { %2078 = vadd.xlane.f32.xlu1 %v2077_v20 }
 0x48d   : > { %v2074_v49 = vsel %vm2061_vm6, %v8575_v46, 0.0 }
 0x490   : > { %v8537_v22 = vld [vmem:[#allocation2 + $0x38] sm:$0xff] }
 0x491   : > { %v8540_v23 = vmul.f32 %v2044_v21, %v8537_v22 }
 0x492   : > { %v8577_v42 = vld [vmem:[#allocation2 + $0x30] sm:$0xff] }
 0x493   : > { %v2083_v24 = vsel %vm2061_vm6, %v8540_v23, 0.0  ;;  %v8583_v51 = vmul.f32 %v2040_v47, %v8577_v42 }
 0x494   : > { %2084 = vadd.xlane.f32.xlu1 %v2083_v24 }
 0x495   : > { %v2080_v57 = vsel %vm2061_vm6, %v8583_v51, 0.0 }
 0x4a5   : > { %2514 = vrot.lane.b32.xlu1 %v8490_v27, %s9852_s26 }
 0x4d0   : > { %v1797_v30 = vpop.permute.xlu1 %1796 }
 0x4d1   : > { %v8550_v31 = vadd.f32 %v1797_v30, %v1719_v26 }
 0x4d3   : > { %2087 = vrot.lane.b32.xlu0 %v8550_v31, %s9830_s8  ;;  %s1166_s8 = scalar_lea.vmem %s9926_s15, %s8321_s10  ;;  %s9832_s10 = smov 48  }
 0x4d4   : > { %v8623_v47 = vld [vmem:[%s1166_s8] sm:$0xff]  ;;  %s9850_s8 = smov 96   ;;  %s9834_s15 = smov 80  }
 0x4d5   : > { %9927 = vst [vmem:[#allocation45_spill] sm:$0xff] %v8623_v47  ;;  %vm1512_vm14 = vcmp.gt.f32.partialorder %v8623_v47, 0.5 }
 0x4f2   : > { %2066 = vadd.xlane.f32.xlu0 %v2065_v39 }
 0x4f6   : > { %2069 = vadd.xlane.f32.xlu0 %v2068_v45 }
 0x4fa   : > { %2075 = vadd.xlane.f32.xlu0 %v2074_v49 }
 0x4fe   : > { %2081 = vadd.xlane.f32.xlu0 %v2080_v57 }
 0x50b   : > { %v2064_v6 = vpop.xlane.xlu1 %2063 }
 0x50c   : > { %v2102_v20 = vrot.slane %v2064_v6, %v8605_v9 }
 0x511   : > { %v2073_v11 = vpop.xlane.xlu1 %2072 }
 0x512   : > { %v2114_v24 = vrot.slane %v2073_v11, %v8605_v9 }
 0x515   : > { %v2079_v30 = vpop.xlane.xlu1 %2078 }
 0x516   : > { %v2122_v58 = vrot.slane %v2079_v30, %v8605_v9 }
 0x51d   : > { %v2085_v39 = vpop.xlane.xlu1 %2084 }
 0x51e   : > { %v2130_v45 = vrot.slane %v2085_v39, %v8605_v9 }
 0x545   : > { %v2088_v62 = vpop.permute.xlu0 %2087 }
 0x546   : > { %7482 = vmatpush3.xpose.msk.msra.mxu0 %vm2061_vm6, %v2088_v62 }
 0x547   : > { %7486 = vmatprep.subr.mxu0 %v9838_v1 }
 0x549   : > { %7484 = vmatmul.mubr.msk.f32.vlgmr.msra.gmra.mxu0 %vm2061_vm6, %v8490_v27 }
 0x54a   : > { %7487 = vmatpush3.msra.mxu0 %v8595_v63  ;;  %7488 = vmatprep.mubr.msk.f32.mxu0 %vm8062_vm0, %v9838_v1 }
 0x54b   : > { %7491 = vmatprep.subr.mxu0 %v9838_v1 }
 0x57b   : > { %v2067_v2 = vpop.xlane.xlu0 %2066 }
 0x57c   : > { %v2106_v16 = vrot.slane %v2067_v2, %v8605_v9 }
 0x57e   : > { %v2132_v18 = vsel %vm2131_vm7, %v2106_v16, %v2102_v20 }
 0x57f   : > { %v2070_v5 = vpop.xlane.xlu0 %2069 }
 0x580   : > { %v2110_v15 = vrot.slane %v2070_v5, %v8605_v9 }
 0x582   : > { %v2134_v52 = vsel %vm2133_vm8, %v2110_v15, %v2132_v18 }
 0x583   : > { %v2076_v10 = vpop.xlane.xlu0 %2075  ;;  %v2136_v33 = vsel %vm2135_vm9, %v2114_v24, %v2134_v52 }
 0x584   : > { %v2118_v21 = vrot.slane %v2076_v10, %v8605_v9 }
 0x586   : > { %v2138_v34 = vsel %vm2137_vm10, %v2118_v21, %v2136_v33 }
 0x587   : > { %v2082_v26 = vpop.xlane.xlu0 %2081  ;;  %v2140_v38 = vsel %vm2139_vm11, %v2122_v58, %v2138_v34 }
 0x588   : > { %v2126_v7 = vrot.slane %v2082_v26, %v8605_v9 }
 0x58a   : > { %v2142_v41 = vsel %vm2141_vm12, %v2126_v7, %v2140_v38 }
 0x58b   : > { %v2144_v49 = vsel %vm2143_vm13, %v2130_v45, %v2142_v41 }
 0x609   : > { %v2216_v57 = vpop.f32.mrf.mxu0 }
 0x60a   : > { %v2217_v60 = vadd.f32 %v2216_v57, %v2144_v49 }
 0x60b   : > { %v7485_v62 = vpop.f32.mrf.mxu0 }
 0x60c   : > { %v2220_v2 = vmul.f32 0.25, %v2217_v60 }
 0x60e   : > { %v2221_v55 = vsel %vm1512_vm14, %v2220_v2, -1e+30 }
 0x60f   : > { %v2222_v5 = vsel %vm1204_vm2, %v2221_v55, -inf }
 0x610   : > { %2223 = vmax.xlane.f32.xlu0 %v2222_v5 }
 0x626   : > { %2516 = vrot.lane.b32.xlu0 %v8550_v31, %s9832_s10  ;;  %s9854_s10 = smov 32  }
 0x62a   : > { %2941 = vrot.lane.b32.xlu0 %v8490_v27, %s9850_s8 }
 0x62e   : > { %3367 = vrot.lane.b32.xlu0 %v8490_v27, %s9834_s15 }
 0x632   : > { %2468 = vrot.lane.b32.xlu0 %v8558_v35, %s9852_s26 }
 0x636   : > { %2472 = vrot.lane.b32.xlu0 %v8522_v4, %s9852_s26 }
 0x63a   : > { %2476 = vrot.lane.b32.xlu0 %v8531_v19, %s9852_s26 }
 0x63e   : > { %2895 = vrot.lane.b32.xlu0 %v8558_v35, %s9850_s8 }
 0x642   : > { %2897 = vrot.lane.b32.xlu0 %v8567_v40, %s9850_s8 }
 0x646   : > { %2899 = vrot.lane.b32.xlu0 %v8522_v4, %s9850_s8 }
 0x64a   : > { %2903 = vrot.lane.b32.xlu0 %v8531_v19, %s9850_s8 }
 0x64e   : > { %3321 = vrot.lane.b32.xlu0 %v8558_v35, %s9834_s15 }
 0x652   : > { %3323 = vrot.lane.b32.xlu0 %v8567_v40, %s9834_s15 }
 0x656   : > { %3325 = vrot.lane.b32.xlu0 %v8522_v4, %s9834_s15 }
 0x65a   : > { %3329 = vrot.lane.b32.xlu0 %v8531_v19, %s9834_s15 }
 0x65e   : > { %3333 = vrot.lane.b32.xlu0 %v8540_v23, %s9834_s15  ;;  %s9836_s15 = smov 16  }
 0x699   : > { %v2224_v27 = vpop.xlane.xlu0 %2223 }
 0x69a   : > { %v2225_v6 = vsub.f32 %v2221_v55, %v2224_v27 }
 0x69c   : > { %v2226_v16 = vmul.f32 1.442695, %v2225_v6 }
 0x69d   : > { %v2517_v10 = vpop.permute.xlu0 %2516 }
 0x69e   : > { %7872 = vpow2.f32 %v2226_v16 }
 0x6a1   : > { %v2942_v11 = vpop.permute.xlu0 %2941 }
 0x6a5   : > { %v3368_v15 = vpop.permute.xlu0 %3367 }
 0x6a9   : > { %v2469_v35 = vpop.permute.xlu0 %2468 }
 0x6aa   : > { %v2493_v20 = vsel %vm2061_vm6, %v2469_v35, 0.0 }
 0x6ab   : > { %v7873_v18 = vpop.eup %7872  ;;  %2494 = vadd.xlane.f32.xlu0 %v2493_v20 }
 0x6ac   : > { %v2228_v4 = vsel %vm1204_vm2, %v7873_v18, 0.0 }
 0x6ad   : > { %2229 = vadd.xlane.f32.xlu1 %v2228_v4  ;;  %v2473_v19 = vpop.permute.xlu0 %2472 }
 0x6ae   : > { %v2499_v34 = vsel %vm2061_vm6, %v2473_v19, 0.0 }
 0x6be   : > { %2943 = vrot.lane.b32.xlu1 %v8550_v31, %s9854_s10 }
 0x6c2   : > { %3369 = vrot.lane.b32.xlu1 %v8550_v31, %s9836_s15  ;;  %s9928_s15 = smov 80   ;;  %v2515_v31 = vpop.permute.xlu1 %2514 }
 0x6c6   : > { %2466 = vrot.lane.b32.xlu1 %v8511_v50, %s9852_s26 }
 0x6ca   : > { %2470 = vrot.lane.b32.xlu1 %v8567_v40, %s9852_s26  ;;  %v2477_v40 = vpop.permute.xlu0 %2476 }
 0x6cb   : > { %v2505_v38 = vsel %vm2061_vm6, %v2477_v40, 0.0 }
 0x6ce   : > { %2474 = vrot.lane.b32.xlu1 %v8575_v46, %s9852_s26 }
 0x6d2   : > { %2893 = vrot.lane.b32.xlu1 %v8511_v50, %s9850_s8 }
 0x6d6   : > { %2478 = vrot.lane.b32.xlu1 %v8583_v51, %s9852_s26 }
 0x6da   : > { %2480 = vrot.lane.b32.xlu1 %v8540_v23, %s9852_s26 }
 0x6de   : > { %2901 = vrot.lane.b32.xlu1 %v8575_v46, %s9850_s8 }
 0x6e2   : > { %3319 = vrot.lane.b32.xlu1 %v8511_v50, %s9928_s15  ;;  %v2896_v50 = vpop.permute.xlu0 %2895 }
 0x6e3   : > { %v2920_v57 = vsel %vm2061_vm6, %v2896_v50, 0.0 }
 0x6e6   : > { %2905 = vrot.lane.b32.xlu1 %v8583_v51, %s9850_s8 }
 0x6ea   : > { %2907 = vrot.lane.b32.xlu1 %v8540_v23, %s9850_s8 }
 0x6ee   : > { %3327 = vrot.lane.b32.xlu1 %v8575_v46, %s9928_s15  ;;  %v2898_v46 = vpop.permute.xlu0 %2897 }
 0x6ef   : > { %v2923_v2 = vsel %vm2061_vm6, %v2898_v46, 0.0 }
 0x6f2   : > { %3331 = vrot.lane.b32.xlu1 %v8583_v51, %s9928_s15  ;;  %v2900_v58 = vpop.permute.xlu0 %2899 }
 0x6f3   : > { %v2926_v6 = vsel %vm2061_vm6, %v2900_v58, 0.0 }
 0x6f6   : > { %v2904_v45 = vpop.permute.xlu0 %2903 }
 0x6fa   : > { %v3322_v5 = vpop.permute.xlu0 %3321 }
 0x736   : > { %v2230_v52 = vpop.xlane.xlu1 %2229 }
 0x737   : > { %7874 = vrcp.f32 %v2230_v52 }
 0x73a   : > { %v2944_v21 = vpop.permute.xlu1 %2943 }
 0x73b   : > { %7502 = vmatpush3.xpose.msk.msra.mxu1 %vm2061_vm6, %v2944_v21 }
 0x73c   : > { %7511 = vmatprep.subr.mxu1 %v9838_v1 }
 0x73e   : > { %7504 = vmatmul.mubr.msk.f32.vlgmr.msra.gmra.mxu1 %vm2061_vm6, %v2942_v11  ;;  %v3370_v23 = vpop.permute.xlu1 %3369 }
 0x73f   : > { %7512 = vmatpush3.xpose.msk.msra.mxu1 %vm2061_vm6, %v3370_v23  ;;  %7513 = vmatprep.mubr.msk.f32.mxu1 %vm8062_vm0, %v9838_v1 }
 0x740   : > { %7521 = vmatprep.subr.mxu1 %v9838_v1 }
 0x742   : > { %7514 = vmatmul.mubr.msk.f32.vlgmr.msra.gmra.mxu1 %vm2061_vm6, %v3368_v15  ;;  %v2467_v51 = vpop.permute.xlu1 %2466  ;;  %v2932_v15 = vsel %vm2061_vm6, %v2904_v45, 0.0 }
 0x743   : > { %v2490_v24 = vsel %vm2061_vm6, %v2467_v51, 0.0  ;;  %7537 = vmatprep.mubr.msk.f32.mxu1 %vm8062_vm0, %v9838_v1 }
 0x744   : > { %v7875_v26 = vpop.eup %7874  ;;  %2491 = vadd.xlane.f32.xlu1 %v2490_v24 }
 0x745   : > { %v8701_v30 = vmul.f32 %v7875_v26, %v7873_v18  ;;  %v3346_v18 = vsel %vm2061_vm6, %v3322_v5, 0.0 }
 0x746   : > { %v2471_v33 = vpop.permute.xlu1 %2470 }
 0x747   : > { %7489 = vmatmul.mubr.msk.f32.vlgmr.msra.gmra.mxu0 %vm1204_vm2, %v8701_v30  ;;  %v2496_v7 = vsel %vm2061_vm6, %v2471_v33, 0.0 }
 0x748   : > { %7492 = vmatpush3.xpose.msk.msra.mxu0 %vm2061_vm6, %v2517_v10  ;;  %2500 = vadd.xlane.f32.xlu1 %v2499_v34  ;;  %v3324_v10 = vpop.permute.xlu0 %3323 }
 0x749   : > { %2497 = vadd.xlane.f32.xlu0 %v2496_v7  ;;  %7493 = vmatprep.mubr.msk.f32.mxu0 %vm8062_vm0, %v9838_v1  ;;  %v3349_v40 = vsel %vm2061_vm6, %v3324_v10, 0.0 }
 0x74a   : > { %v2475_v39 = vpop.permute.xlu1 %2474  ;;  %7496 = vmatprep.subr.mxu0 %v9838_v1 }
 0x74b   : > { %7494 = vmatmul.mubr.msk.f32.vlgmr.msra.gmra.mxu0 %vm2061_vm6, %v2515_v31  ;;  %v2502_v41 = vsel %vm2061_vm6, %v2475_v39, 0.0 }
 0x74c   : > { %2506 = vadd.xlane.f32.xlu1 %v2505_v38  ;;  %7498 = vmatprep.mubr.msk.f32.mxu0 %vm8062_vm0, %v9838_v1  ;;  %v3326_v19 = vpop.permute.xlu0 %3325 }
 0x74d   : > { %2503 = vadd.xlane.f32.xlu0 %v2502_v41  ;;  %v3352_v23 = vsel %vm2061_vm6, %v3326_v19, 0.0 }
 0x74e   : > { %v2894_v49 = vpop.permute.xlu1 %2893 }
 0x74f   : > { %v2917_v60 = vsel %vm2061_vm6, %v2894_v49, 0.0 }
 0x750   : > { %2921 = vadd.xlane.f32.xlu1 %v2920_v57  ;;  %v3330_v21 = vpop.permute.xlu0 %3329 }
 0x751   : > { %2918 = vadd.xlane.f32.xlu0 %v2917_v60  ;;  %v3358_v24 = vsel %vm2061_vm6, %v3330_v21, 0.0 }
 0x752   : > { %v2479_v62 = vpop.permute.xlu1 %2478 }
 0x753   : > { %v2508_v55 = vsel %vm2061_vm6, %v2479_v62, 0.0 }
 0x754   : > { %2924 = vadd.xlane.f32.xlu1 %v2923_v2  ;;  %v3334_v33 = vpop.permute.xlu0 %3333 }
 0x755   : > { %2509 = vadd.xlane.f32.xlu0 %v2508_v55  ;;  %v3364_v7 = vsel %vm2061_vm6, %v3334_v33, 0.0 }
 0x756   : > { %v2481_v27 = vpop.permute.xlu1 %2480 }
 0x757   : > { %v2511_v16 = vsel %vm2061_vm6, %v2481_v27, 0.0 }
 0x758   : > { %2927 = vadd.xlane.f32.xlu1 %v2926_v6  ;;  %v2495_v38 = vpop.xlane.xlu0 %2494 }
 0x759   : > { %2512 = vadd.xlane.f32.xlu0 %v2511_v16 }
 0x75a   : > { %v2902_v11 = vpop.permute.xlu1 %2901 }
 0x75b   : > { %v2929_v35 = vsel %vm2061_vm6, %v2902_v11, 0.0 }
 0x75c   : > { %2933 = vadd.xlane.f32.xlu1 %v2932_v15 }
 0x75d   : > { %2930 = vadd.xlane.f32.xlu0 %v2929_v35 }
 0x75e   : > { %v3320_v20 = vpop.permute.xlu1 %3319 }
 0x75f   : > { %v3343_v4 = vsel %vm2061_vm6, %v3320_v20, 0.0 }
 0x760   : > { %3347 = vadd.xlane.f32.xlu1 %v3346_v18 }
 0x761   : > { %3344 = vadd.xlane.f32.xlu0 %v3343_v4 }
 0x762   : > { %v2906_v31 = vpop.permute.xlu1 %2905 }
 0x763   : > { %v2935_v52 = vsel %vm2061_vm6, %v2906_v31, 0.0 }
 0x764   : > { %3350 = vadd.xlane.f32.xlu1 %v3349_v40 }
 0x765   : > { %2936 = vadd.xlane.f32.xlu0 %v2935_v52 }
 0x766   : > { %v2908_v50 = vpop.permute.xlu1 %2907 }
 0x767   : > { %v2938_v46 = vsel %vm2061_vm6, %v2908_v50, 0.0 }
 0x768   : > { %3353 = vadd.xlane.f32.xlu1 %v3352_v23 }
 0x769   : > { %2939 = vadd.xlane.f32.xlu0 %v2938_v46 }
 0x76a   : > { %v3328_v51 = vpop.permute.xlu1 %3327 }
 0x76b   : > { %v3355_v26 = vsel %vm2061_vm6, %v3328_v51, 0.0 }
 0x76c   : > { %3359 = vadd.xlane.f32.xlu1 %v3358_v24 }
 0x76d   : > { %3356 = vadd.xlane.f32.xlu0 %v3355_v26 }
 0x76e   : > { %v3332_v34 = vpop.permute.xlu1 %3331 }
 0x76f   : > { %v3361_v58 = vsel %vm2061_vm6, %v3332_v34, 0.0 }
 0x770   : > { %3365 = vadd.xlane.f32.xlu1 %v3364_v7 }
 0x771   : > { %3362 = vadd.xlane.f32.xlu0 %v3361_v58 }
 0x7cd   : > { %v2492_v39 = vpop.xlane.xlu1 %2491 }
 0x7ce   : > { %v2529_v58 = vrot.slane %v2492_v39, %v8605_v9 }
 0x7d1   : > { %v8734_v41 = vpop.xlane.xlu1 %2500 }
 0x7d2   : > { %v2498_v45 = vpop.xlane.xlu0 %2497 }
 0x7d5   : > { %v8736_v49 = vpop.xlane.xlu1 %2506 }
 0x7d6   : > { %v8738_v57 = vpop.xlane.xlu0 %2503 }
 0x7d9   : > { %v2922_v60 = vpop.xlane.xlu1 %2921 }
 0x7da   : > { %v2919_v62 = vpop.xlane.xlu0 %2918  ;;  %v2960_v18 = vrot.slane %v2922_v60, %v8605_v9 }
 0x7db   : > { %v2956_v20 = vrot.slane %v2919_v62, %v8605_v9 }
 0x7dd   : > { %v2925_v2 = vpop.xlane.xlu1 %2924  ;;  %v2985_v52 = vsel %vm2131_vm7, %v2960_v18, %v2956_v20 }
 0x7de   : > { %v8740_v55 = vpop.xlane.xlu0 %2509  ;;  %v2964_v4 = vrot.slane %v2925_v2, %v8605_v9 }
 0x7e0   : > { %v2986_v50 = vsel %vm2133_vm8, %v2964_v4, %v2985_v52 }
 0x7e1   : > { %v2928_v5 = vpop.xlane.xlu1 %2927 }
 0x7e2   : > { %v8742_v27 = vpop.xlane.xlu0 %2512  ;;  %v2968_v31 = vrot.slane %v2928_v5, %v8605_v9 }
 0x7e4   : > { %v2987_v23 = vsel %vm2135_vm9, %v2968_v31, %v2986_v50  ;;  %v2545_v50 = vrot.slane %v8738_v57, %v8605_v9 }
 0x7e5   : > { %v2934_v6 = vpop.xlane.xlu1 %2933 }
 0x7e6   : > { %v2931_v16 = vpop.xlane.xlu0 %2930  ;;  %v2976_v46 = vrot.slane %v2934_v6, %v8605_v9 }
 0x7e7   : > { %v2972_v40 = vrot.slane %v2931_v16, %v8605_v9  ;;  %v2533_v16 = vrot.slane %v2495_v38, %v8605_v9 }
 0x7e9   : > { %v3348_v11 = vpop.xlane.xlu1 %3347  ;;  %v2988_v51 = vsel %vm2137_vm10, %v2972_v40, %v2987_v23  ;;  %v2558_v4 = vsel %vm2131_vm7, %v2533_v16, %v2529_v58  ;;  %v2541_v40 = vrot.slane %v8734_v41, %v8605_v9 }
 0x7ea   : > { %v3345_v10 = vpop.xlane.xlu0 %3344  ;;  %v3386_v7 = vrot.slane %v3348_v11, %v8605_v9  ;;  %v2989_v2 = vsel %vm2139_vm11, %v2976_v46, %v2988_v51 }
 0x7eb   : > { %v3382_v34 = vrot.slane %v3345_v10, %v8605_v9 }
 0x7ed   : > { %v3351_v35 = vpop.xlane.xlu1 %3350  ;;  %v3411_v39 = vsel %vm2131_vm7, %v3386_v7, %v3382_v34  ;;  %v2549_v7 = vrot.slane %v8736_v49, %v8605_v9 }
 0x7ee   : > { %v2937_v15 = vpop.xlane.xlu0 %2936  ;;  %v3390_v60 = vrot.slane %v3351_v35, %v8605_v9 }
 0x7ef   : > { %v2980_v24 = vrot.slane %v2937_v15, %v8605_v9  ;;  %v2537_v15 = vrot.slane %v2498_v45, %v8605_v9 }
 0x7f1   : > { %v3354_v21 = vpop.xlane.xlu1 %3353  ;;  %v2990_v6 = vsel %vm2141_vm12, %v2980_v24, %v2989_v2 }
 0x7f2   : > { %v2940_v19 = vpop.xlane.xlu0 %2939  ;;  %v3394_v5 = vrot.slane %v3354_v21, %v8605_v9  ;;  %v2559_v21 = vsel %vm2133_vm8, %v2537_v15, %v2558_v4 }
 0x7f3   : > { %v2984_v33 = vrot.slane %v2940_v19, %v8605_v9  ;;  %v3412_v19 = vsel %vm2133_vm8, %v3390_v60, %v3411_v39  ;;  %v2560_v34 = vsel %vm2135_vm9, %v2541_v40, %v2559_v21 }
 0x7f4   : > { %v3413_v38 = vsel %vm2135_vm9, %v3394_v5, %v3412_v19  ;;  %v2561_v60 = vsel %vm2137_vm10, %v2545_v50, %v2560_v34  ;;  %v2557_v5 = vrot.slane %v8742_v27, %v8605_v9 }
 0x7f5   : > { %v3360_v62 = vpop.xlane.xlu1 %3359  ;;  %v2991_v10 = vsel %vm2143_vm13, %v2984_v33, %v2990_v6  ;;  %v2562_v15 = vsel %vm2139_vm11, %v2549_v7, %v2561_v60 }
 0x7f6   : > { %v3357_v26 = vpop.xlane.xlu0 %3356  ;;  %v3402_v45 = vrot.slane %v3360_v62, %v8605_v9  ;;  %v2553_v62 = vrot.slane %v8740_v55, %v8605_v9 }
 0x7f7   : > { %v3398_v20 = vrot.slane %v3357_v26, %v8605_v9 }
 0x7f9   : > { %v3414_v23 = vsel %vm2137_vm10, %v3398_v20, %v3413_v38  ;;  %v3366_v51 = vpop.xlane.xlu1 %3365 }
 0x7fa   : > { %v3363_v18 = vpop.xlane.xlu0 %3362  ;;  %v3410_v58 = vrot.slane %v3366_v51, %v8605_v9  ;;  %v3415_v57 = vsel %vm2139_vm11, %v3402_v45, %v3414_v23 }
 0x7fb   : > { %v3406_v46 = vrot.slane %v3363_v18, %v8605_v9 }
 0x7fd   : > { %v3416_v2 = vsel %vm2141_vm12, %v3406_v46, %v3415_v57 }
 0x7fe   : > { %v3063_v11 = vpop.f32.mrf.mxu1  ;;  %v3417_v16 = vsel %vm2143_vm13, %v3410_v58, %v3416_v2 }
 0x7ff   : > { %v3064_v35 = vadd.f32 %v3063_v11, %v2991_v10  ;;  %v2563_v10 = vsel %vm2141_vm12, %v2553_v62, %v2562_v15  ;;  %v8818_v15 = vsub.s32 2, %v8411_v53 }
 0x800   : > { %v7505_v31 = vpop.f32.mrf.mxu1  ;;  %v2564_v11 = vsel %vm2143_vm13, %v2557_v5, %v2563_v10 }
 0x801   : > { %v3067_v52 = vmul.f32 0.25, %v3064_v35 }
 0x802   : > { %v3489_v24 = vpop.f32.mrf.mxu1 }
 0x803   : > { %v3068_v26 = vsel %vm1512_vm14, %v3067_v52, -1e+30  ;;  %v3490_v20 = vadd.f32 %v3489_v24, %v3417_v16 }
 0x804   : > { %v7515_v41 = vpop.f32.mrf.mxu1  ;;  %v3069_v33 = vsel %vm1204_vm2, %v3068_v26, -inf }
 0x805   : > { %3070 = vmax.xlane.f32.xlu1 %v3069_v33  ;;  %v3493_v35 = vmul.f32 0.25, %v3490_v20 }
 0x807   : > { %v8793_v6 = vpop.f32.mrf.mxu0  ;;  %v3494_v31 = vsel %vm1512_vm14, %v3493_v35, -1e+30 }
 0x808   : > { %v3495_v40 = vsel %vm1204_vm2, %v3494_v31, -inf }
 0x809   : > { %v7490_v49 = vpop.f32.mrf.mxu0 }
 0x80b   : > { %v2636_v39 = vpop.f32.mrf.mxu0 }
 0x80c   : > { %v2637_v18 = vadd.f32 %v2636_v39, %v2564_v11 }
 0x80d   : > { %v7495_v55 = vpop.f32.mrf.mxu0 }
 0x80e   : > { %v2640_v4 = vmul.f32 0.25, %v2637_v18  ;;  %v8828_v18 = vsub.s32 3, %v8411_v53 }
 0x810   : > { %v2641_v27 = vsel %vm1512_vm14, %v2640_v4, -1e+30  ;;  %v8834_v4 = vsub.s32 4, %v8411_v53 }
 0x811   : > { %v2642_v19 = vsel %vm1204_vm2, %v2641_v27, -inf }
 0x812   : > { %2643 = vmax.xlane.f32.xlu0 %v2642_v19  ;;  %9929 = vst [vmem:[#allocation46_spill] sm:$0xff] %v8834_v4 }
 0x816   : > { %3496 = vmax.xlane.f32.xlu0 %v3495_v40 }
 0x88e   : > { %v3071_v38 = vpop.xlane.xlu1 %3070 }
 0x88f   : > { %v3072_v45 = vsub.f32 %v3068_v26, %v3071_v38 }
 0x891   : > { %v3073_v52 = vmul.f32 1.442695, %v3072_v45  ;;  %v8846_v45 = vsub.s32 6, %v8411_v53 }
 0x893   : > { %7876 = vpow2.f32 %v3073_v52  ;;  %9930 = vst [vmem:[#allocation47_spill] sm:$0xff] %v8846_v45 }
 0x89b   : > { %v2644_v21 = vpop.xlane.xlu0 %2643 }
 0x89c   : > { %v2645_v26 = vsub.f32 %v2641_v27, %v2644_v21 }
 0x89e   : > { %v2646_v34 = vmul.f32 1.442695, %v2645_v26 }
 0x89f   : > { %v3497_v50 = vpop.xlane.xlu0 %3496 }
 0x8a0   : > { %v7877_v23 = vpop.eup %7876  ;;  %v3498_v46 = vsub.f32 %v3494_v31, %v3497_v50  ;;  %v8840_v31 = vsub.s32 5, %v8411_v53  ;;  %v8852_v50 = vsub.s32 7, %v8411_v53 }
 0x8a1   : > { %v3075_v51 = vsel %vm1204_vm2, %v7877_v23, 0.0 }
 0x8a2   : > { %v3499_v24 = vmul.f32 1.442695, %v3498_v46  ;;  %3076 = vadd.xlane.f32.xlu0 %v3075_v51 }
 0x8a4   : > { %7878 = vpow2.f32 %v3499_v24 }
 0x8a5   : > { %7880 = vpow2.f32 %v2646_v34 }
 0x8b1   : > { %v7879_v41 = vpop.eup %7878 }
 0x8b2   : > { %v3501_v33 = vsel %vm1204_vm2, %v7879_v41, 0.0  ;;  %v7881_v7 = vpop.eup %7880 }
 0x8b3   : > { %3502 = vadd.xlane.f32.xlu1 %v3501_v33  ;;  %v2648_v58 = vsel %vm1204_vm2, %v7881_v7, 0.0 }
 0x8b8   : > { %2775 = vrot.lane.b32.xlu0 %v8595_v63, %s9852_s26 }
 0x8c4   : > { %3201 = vrot.lane.b32.xlu1 %v8595_v63, %s9850_s8 }
 0x8e8   : > { %2649 = vadd.xlane.f32.xlu1 %v2648_v58 }
 0x8f9   : > { %3627 = vrot.lane.b32.xlu1 %v8595_v63, %s9928_s15 }
 0x92b   : > { %v3077_v57 = vpop.xlane.xlu0 %3076 }
 0x92c   : > { %7882 = vrcp.f32 %v3077_v57 }
 0x92f   : > { %v2776_v60 = vpop.permute.xlu0 %2775 }
 0x930   : > { %7497 = vmatpush3.msra.mxu0 %v2776_v60 }
 0x931   : > { %7506 = vmatprep.subr.mxu0 %v9838_v1 }
 0x939   : > { %v7883_v62 = vpop.eup %7882 }
 0x93a   : > { %v3079_v2 = vmul.f32 %v7883_v62, %v7877_v23 }
 0x93c   : > { %v3503_v5 = vpop.xlane.xlu1 %3502  ;;  %v3090_v16 = vrot.slane %v3079_v2, %v8588_v59  ;;  %v3083_v49 = vrot.slane %v3079_v2, %v8414_v54  ;;  %v3097_v63 = vrot.slane %v3079_v2, %v8818_v15  ;;  %v3104_v55 = vrot.slane %v3079_v2, %v8828_v18 }
 0x93d   : > { %7884 = vrcp.f32 %v3503_v5  ;;  %v3111_v19 = vrot.slane %v3079_v2, %v8834_v4  ;;  %v3118_v40 = vrot.slane %v3079_v2, %v8840_v31  ;;  %v3125_v21 = vrot.slane %v3079_v2, %v8846_v45 }
 0x93e   : > { %3092 = vbcast.lane.b32.xlu0 %v3090_v16, 256  ;;  %3085 = vbcast.lane.b32.xlu1 %v3083_v49, 256  ;;  %v3132_v23 = vrot.slane %v3079_v2, %v8852_v50 }
 0x940   : > { %v3202_v46 = vpop.permute.xlu1 %3201 }
 0x942   : > { %3099 = vbcast.lane.b32.xlu0 %v3097_v63, 256 }
 0x94a   : > { %v7885_v20 = vpop.eup %7884 }
 0x94b   : > { %v8821_v10 = vmul.f32 %v7885_v20, %v7879_v41 }
 0x94d   : > { %v3516_v11 = vrot.slane %v8821_v10, %v8588_v59  ;;  %v3509_v39 = vrot.slane %v8821_v10, %v8414_v54  ;;  %v3523_v35 = vrot.slane %v8821_v10, %v8818_v15  ;;  %v3530_v27 = vrot.slane %v8821_v10, %v8828_v18 }
 0x94e   : > { %v3537_v38 = vrot.slane %v8821_v10, %v8834_v4  ;;  %v3544_v52 = vrot.slane %v8821_v10, %v8840_v31  ;;  %v3551_v5 = vrot.slane %v8821_v10, %v8846_v45 }
 0x94f   : > { %3518 = vbcast.lane.b32.xlu0 %v3516_v11, 256  ;;  %3511 = vbcast.lane.b32.xlu1 %v3509_v39, 256 }
 0x953   : > { %3106 = vbcast.lane.b32.xlu0 %v3104_v55, 256  ;;  %3525 = vbcast.lane.b32.xlu1 %v3523_v35, 256 }
 0x957   : > { %3532 = vbcast.lane.b32.xlu0 %v3530_v27, 256  ;;  %3113 = vbcast.lane.b32.xlu1 %v3111_v19, 256 }
 0x95b   : > { %3120 = vbcast.lane.b32.xlu0 %v3118_v40, 256  ;;  %3539 = vbcast.lane.b32.xlu1 %v3537_v38, 256 }
 0x95f   : > { %3546 = vbcast.lane.b32.xlu0 %v3544_v52, 256  ;;  %3127 = vbcast.lane.b32.xlu1 %v3125_v21, 256 }
 0x963   : > { %3134 = vbcast.lane.b32.xlu1 %v3132_v23, 256 }
 0x971   : > { %v2650_v51 = vpop.xlane.xlu1 %2649 }
 0x972   : > { %7886 = vrcp.f32 %v2650_v51 }
 0x975   : > { %v3628_v53 = vpop.permute.xlu1 %3627 }
 0x97f   : > { %v7887_v24 = vpop.eup %7886 }
 0x980   : > { %v2652_v41 = vmul.f32 %v7887_v24, %v7881_v7 }
 0x982   : > { %7499 = vmatmul.mubr.msk.f32.vlgmr.msra.gmra.mxu0 %vm1204_vm2, %v2652_v41  ;;  %v2663_v33 = vrot.slane %v2652_v41, %v8588_v59  ;;  %v2656_v26 = vrot.slane %v2652_v41, %v8414_v54  ;;  %v2677_v34 = vrot.slane %v2652_v41, %v8828_v18  ;;  %v2670_v7 = vrot.slane %v2652_v41, %v8818_v15 }
 0x983   : > { %7507 = vmatpush3.msra.mxu0 %v3202_v46  ;;  %7508 = vmatprep.mubr.msk.f32.mxu0 %vm8062_vm0, %v9838_v1  ;;  %v2684_v58 = vrot.slane %v2652_v41, %v8834_v4  ;;  %v2691_v57 = vrot.slane %v2652_v41, %v8840_v31  ;;  %v2698_v60 = vrot.slane %v2652_v41, %v8846_v45 }
 0x984   : > { %2665 = vbcast.lane.b32.xlu1 %v2663_v33, 256  ;;  %2658 = vbcast.lane.b32.xlu0 %v2656_v26, 256  ;;  %v2705_v62 = vrot.slane %v2652_v41, %v8852_v50 }
 0x985   : > { %7516 = vmatprep.subr.mxu0 %v9838_v1 }
 0x986   : > { %7509 = vmatmul.mubr.msk.f32.vlgmr.msra.gmra.mxu0 %vm1204_vm2, %v3079_v2  ;;  %v3558_v2 = vrot.slane %v8821_v10, %v8852_v50 }
 0x987   : > { %7517 = vmatpush3.msra.mxu0 %v3628_v53  ;;  %7518 = vmatprep.mubr.msk.f32.mxu0 %vm8062_vm0, %v9838_v1 }
 0x988   : > { %2679 = vbcast.lane.b32.xlu1 %v2677_v34, 256  ;;  %2672 = vbcast.lane.b32.xlu0 %v2670_v7, 256 }
 0x989   : > { %7540 = vmatprep.subr.mxu0 %v9838_v1 }
 0x98a   : > { %7519 = vmatmul.mubr.msk.f32.vlgmr.msra.gmra.mxu0 %vm1204_vm2, %v8821_v10 }
 0x98b   : > { %7548 = vmatprep.mubr.msk.f32.mxu0 %vm8062_vm0, %v9838_v1 }
 0x98c   : > { %2686 = vbcast.lane.b32.xlu1 %v2684_v58, 256  ;;  %2693 = vbcast.lane.b32.xlu0 %v2691_v57, 256 }
 0x990   : > { %2700 = vbcast.lane.b32.xlu1 %v2698_v60, 256  ;;  %2707 = vbcast.lane.b32.xlu0 %v2705_v62, 256 }
 0x994   : > { %3560 = vbcast.lane.b32.xlu1 %v3558_v2, 256  ;;  %3553 = vbcast.lane.b32.xlu0 %v3551_v5, 256 }
 0x9b0   : > { %v3093_v16 = vpop.permute.xlu0 %3092  ;;  %v3086_v49 = vpop.permute.xlu1 %3085 }
 0x9b1   : > { %v3137_v20 = vmul.f32 %v3093_v16, %v8554_v32  ;;  %v3136_v11 = vmul.f32 %v3086_v49, %v8507_v48 }
 0x9b3   : > { %v3152_v27 = vsel %vm3144_vm15, %v3137_v20, 0.0  ;;  %v3145_v10 = vsel %vm3144_vm15, %v3136_v11, 0.0 }
 0x9b4   : > { %v3100_v63 = vpop.permute.xlu0 %3099  ;;  %v3153_v21 = vrot.slane %v3152_v27, 4  ;;  %v3146_v23 = vrot.slane %v3145_v10, 4 }
 0x9b5   : > { %v3138_v35 = vmul.f32 %v3100_v63, %v8560_v37 }
 0x9b6   : > { %v3154_v26 = vadd.f32 %v3153_v21, %v3152_v27  ;;  %v3147_v53 = vadd.f32 %v3146_v23, %v3145_v10 }
 0x9b7   : > { %v3159_v38 = vsel %vm3144_vm15, %v3138_v35, 0.0 }
 0x9b8   : > { %v3160_v46 = vrot.slane %v3159_v38, 4  ;;  %v3155_v2 = vrot.slane %v3154_v26, 2  ;;  %v3148_v5 = vrot.slane %v3147_v53, 2 }
 0x9ba   : > { %v3161_v7 = vadd.f32 %v3160_v46, %v3159_v38  ;;  %v3156_v27 = vadd.f32 %v3155_v2, %v3154_v26 }
 0x9bc   : > { %v3162_v63 = vrot.slane %v3161_v7, 2 }
 0x9be   : > { %v3163_v21 = vadd.f32 %v3162_v63, %v3161_v7 }
 0x9c0   : > { %v3164_v26 = vrot.slane %v3163_v21, 1 }
 0x9c1   : > { %v8881_v39 = vpop.permute.xlu0 %3518  ;;  %v8883_v55 = vpop.permute.xlu1 %3511 }
 0x9c5   : > { %v3107_v19 = vpop.permute.xlu0 %3106  ;;  %v8888_v40 = vpop.permute.xlu1 %3525 }
 0x9c6   : > { %v3139_v52 = vmul.f32 %v3107_v19, %v8519_v3 }
 0x9c8   : > { %v3166_v48 = vsel %vm3144_vm15, %v3139_v52, 0.0  ;;  %v3149_v52 = vadd.f32 %v3148_v5, %v3147_v53 }
 0x9c9   : > { %v8893_v51 = vpop.permute.xlu0 %3532  ;;  %v3114_v24 = vpop.permute.xlu1 %3113  ;;  %v3167_v41 = vrot.slane %v3166_v48, 4 }
 0x9ca   : > { %v3140_v33 = vmul.f32 %v3114_v24, %v8569_v43 }
 0x9cb   : > { %v3168_v3 = vadd.f32 %v3167_v41, %v3166_v48  ;;  %v3157_v41 = vrot.slane %v3156_v27, 1 }
 0x9cc   : > { %v3173_v34 = vsel %vm3144_vm15, %v3140_v33, 0.0 }
 0x9cd   : > { %v3121_v58 = vpop.permute.xlu0 %3120  ;;  %v8897_v57 = vpop.permute.xlu1 %3539  ;;  %v3174_v60 = vrot.slane %v3173_v34, 4  ;;  %v3169_v35 = vrot.slane %v3168_v3, 2  ;;  %v3158_v7 = vadd.f32 %v3157_v41, %v3156_v27  ;;  %v8909_v27 = vld [vmem:[#allocation2] sm:$0xff] }
 0x9ce   : > { %v3141_v62 = vmul.f32 %v3121_v58, %v8527_v13  ;;  %v3150_v58 = vrot.slane %v3149_v52, 1 }
 0x9cf   : > { %v3175_v16 = vadd.f32 %v3174_v60, %v3173_v34  ;;  %v3170_v46 = vadd.f32 %v3169_v35, %v3168_v3  ;;  %v3165_v35 = vadd.f32 %v3164_v26, %v3163_v21 }
 0x9d0   : > { %v3180_v49 = vsel %vm3144_vm15, %v3141_v62, 0.0  ;;  %v3151_v63 = vadd.f32 %v3150_v58, %v3149_v52  ;;  %v3562_v52 = vmul.f32 %v8909_v27, %v8883_v55 }
 0x9d1   : > { %v3181_v20 = vrot.slane %v3180_v49, 4  ;;  %v3128_v11 = vpop.permute.xlu1 %3127  ;;  %v3176_v10 = vrot.slane %v3175_v16, 2 }
 0x9d2   : > { %v3142_v38 = vmul.f32 %v3128_v11, %v8577_v42 }
 0x9d3   : > { %v3182_v19 = vadd.f32 %v3181_v20, %v3180_v49  ;;  %v3177_v33 = vadd.f32 %v3176_v10, %v3175_v16  ;;  %v3171_v49 = vrot.slane %v3170_v46, 1 }
 0x9d4   : > { %v3187_v48 = vsel %vm3144_vm15, %v3142_v38, 0.0 }
 0x9d5   : > { %v3183_v23 = vrot.slane %v3182_v19, 2  ;;  %v3135_v13 = vpop.permute.xlu1 %3134  ;;  %v3188_v24 = vrot.slane %v3187_v48, 4  ;;  %v3178_v5 = vrot.slane %v3177_v33, 1  ;;  %v3172_v38 = vadd.f32 %v3171_v49, %v3170_v46  ;;  %v8923_v49 = vld [vmem:[#allocation2 + $0x18] sm:$0xff] }
 0x9d6   : > { %v3143_v34 = vmul.f32 %v3135_v13, %v8537_v22 }
 0x9d7   : > { %v3184_v60 = vadd.f32 %v3183_v23, %v3182_v19  ;;  %v3189_v62 = vadd.f32 %v3188_v24, %v3187_v48  ;;  %v3179_v22 = vadd.f32 %v3178_v5, %v3177_v33  ;;  %v3212_v19 = vsel %vm2131_vm7, %v3158_v7, %v3151_v63  ;;  %v3547_v7 = vpop.permute.xlu0 %3546 }
 0x9d8   : > { %v3194_v2 = vsel %vm3144_vm15, %v3143_v34, 0.0  ;;  %v3213_v13 = vsel %vm2133_vm8, %v3165_v35, %v3212_v19  ;;  %v3563_v24 = vmul.f32 %v8881_v39, %v8554_v32 }
 0x9d9   : > { %v3190_v42 = vrot.slane %v3189_v62, 2  ;;  %v3195_v53 = vrot.slane %v3194_v2, 4  ;;  %v3185_v20 = vrot.slane %v3184_v60, 1  ;;  %v3214_v46 = vsel %vm2135_vm9, %v3172_v38, %v3213_v13 }
 0x9da   : > { %v3215_v33 = vsel %vm2137_vm10, %v3179_v22, %v3214_v46  ;;  %v2264_v22 = vrot.slane %v8701_v30, %v8834_v4 }
 0x9db   : > { %v3191_v11 = vadd.f32 %v3190_v42, %v3189_v62  ;;  %v3196_v3 = vadd.f32 %v3195_v53, %v3194_v2  ;;  %v3186_v23 = vadd.f32 %v3185_v20, %v3184_v60  ;;  %v3578_v60 = vsel %vm9856_vm1, %v3563_v24, 0.0 }
 0x9dc   : > { %v3571_v62 = vsel %vm9856_vm1, %v3562_v52, 0.0  ;;  %v3579_v55 = vrot.slane %v3578_v60, 4  ;;  %v3564_v2 = vmul.f32 %v8888_v40, %v8560_v37  ;;  %v3565_v42 = vmul.f32 %v8923_v49, %v8893_v51  ;;  %v8935_v40 = vld [vmem:[#allocation2 + $0x28] sm:$0xff] }
 0x9dd   : > { %v3192_v16 = vrot.slane %v3191_v11, 1  ;;  %v3197_v10 = vrot.slane %v3196_v3, 2  ;;  %v3216_v58 = vsel %vm2139_vm11, %v3186_v23, %v3215_v33  ;;  %v3572_v26 = vrot.slane %v3571_v62, 4 }
 0x9de   : > { %v2236_v53 = vrot.slane %v8701_v30, %v8414_v54  ;;  %v3580_v5 = vadd.f32 %v3579_v55, %v3578_v60  ;;  %v3585_v20 = vsel %vm9856_vm1, %v3564_v2, 0.0  ;;  %v3566_v37 = vmul.f32 %v8897_v57, %v8569_v43  ;;  %v8945_v60 = vld [vmem:[#allocation2 + $0x8] sm:$0xff] }
 0x9df   : > { %v3198_v48 = vadd.f32 %v3197_v10, %v3196_v3  ;;  %v3193_v41 = vadd.f32 %v3192_v16, %v3191_v11  ;;  %v3573_v63 = vadd.f32 %v3572_v26, %v3571_v62  ;;  %v3592_v11 = vsel %vm9856_vm1, %v3565_v42, 0.0 }
 0x9e0   : > { %v2250_v3 = vrot.slane %v8701_v30, %v8818_v15  ;;  %v3567_v51 = vmul.f32 %v8935_v40, %v3547_v7  ;;  %v3586_v35 = vrot.slane %v3585_v20, 4  ;;  %v3593_v38 = vrot.slane %v3592_v11, 4 }
 0x9e1   : > { %v3199_v21 = vrot.slane %v3198_v48, 1  ;;  %v3217_v32 = vsel %vm2141_vm12, %v3193_v41, %v3216_v58  ;;  %v3581_v16 = vrot.slane %v3580_v5, 2  ;;  %v3574_v10 = vrot.slane %v3573_v63, 2 }
 0x9e2   : > { %v3599_v19 = vsel %vm9856_vm1, %v3566_v37, 0.0  ;;  %v3606_v23 = vsel %vm9856_vm1, %v3567_v51, 0.0  ;;  %v3594_v13 = vadd.f32 %v3593_v38, %v3592_v11  ;;  %v2278_v41 = vrot.slane %v8701_v30, %v8846_v45 }
 0x9e3   : > { %v3200_v34 = vadd.f32 %v3199_v21, %v3198_v48  ;;  %v3587_v48 = vadd.f32 %v3586_v35, %v3585_v20  ;;  %v3582_v43 = vadd.f32 %v3581_v16, %v3580_v5  ;;  %v3575_v57 = vadd.f32 %v3574_v10, %v3573_v63 }
 0x9e4   : > { %v3600_v24 = vrot.slane %v3599_v19, 4  ;;  %v3607_v52 = vrot.slane %v3606_v23, 4 }
 0x9e5   : > { %v3218_v39 = vsel %vm2143_vm13, %v3200_v34, %v3217_v32  ;;  %v3588_v33 = vrot.slane %v3587_v48, 2  ;;  %v3595_v34 = vrot.slane %v3594_v13, 2  ;;  %v3583_v32 = vrot.slane %v3582_v43, 1 }
 0x9e6   : > { %3219 = vrot.lane.b32.xlu1 %v3218_v39, %s9850_s8  ;;  %v3576_v39 = vrot.slane %v3575_v57, 1  ;;  %v3601_v55 = vadd.f32 %v3600_v24, %v3599_v19  ;;  %v3608_v26 = vadd.f32 %v3607_v52, %v3606_v23  ;;  %s9932_s8 = sld [smem:[#allocation21_spill]] }
 0x9e7   : > { %v8950_v20 = vadd.f32 %v3588_v33, %v3587_v48  ;;  %v8952_v11 = vadd.f32 %v3595_v34, %v3594_v13  ;;  %v8958_v35 = vadd.f32 %v3583_v32, %v3582_v43  ;;  %v8967_v34 = vld [vmem:[#allocation2 + $0x20] sm:$0xff] }
 0x9e8   : > { %v8960_v38 = vadd.f32 %v3576_v39, %v3575_v57  ;;  %v3609_v19 = vrot.slane %v3608_v26, 2 }
 0x9e9   : > { %v3590_v33 = vrot.slane %v8950_v20, 1 }
 0x9ea   : > { %2238 = vbcast.lane.b32.xlu1 %v2236_v53, 256 }
 0x9ee   : > { %2252 = vbcast.lane.b32.xlu1 %v2250_v3, 256  ;;  %v8954_v3 = vld [vmem:[#allocation2 + $0x10] sm:$0xff] }
 0x9f2   : > { %2266 = vbcast.lane.b32.xlu1 %v2264_v22, 256  ;;  %v3602_v22 = vrot.slane %v3601_v55, 2 }
 0x9f6   : > { %v2659_v21 = vpop.permute.xlu0 %2658  ;;  %v2666_v46 = vpop.permute.xlu1 %2665  ;;  %2280 = vbcast.lane.b32.xlu1 %v2278_v41, 256 }
 0x9f7   : > { %v2709_v58 = vmul.f32 %v8909_v27, %v2659_v21  ;;  %v2710_v62 = vmul.f32 %v8945_v60, %v2666_v46 }
 0x9f9   : > { %v2718_v2 = vsel %vm2717_vm3, %v2709_v58, 0.0  ;;  %v2725_v42 = vsel %vm2717_vm3, %v2710_v62, 0.0 }
 0x9fa   : > { %v2719_v53 = vrot.slane %v2718_v2, 4  ;;  %v2726_v7 = vrot.slane %v2725_v42, 4  ;;  %v2673_v5 = vpop.permute.xlu0 %2672  ;;  %v2680_v63 = vpop.permute.xlu1 %2679 }
 0x9fb   : > { %v2711_v37 = vmul.f32 %v8954_v3, %v2673_v5  ;;  %v2712_v51 = vmul.f32 %v8923_v49, %v2680_v63 }
 0x9fc   : > { %v2720_v16 = vadd.f32 %v2719_v53, %v2718_v2  ;;  %v2727_v10 = vadd.f32 %v2726_v7, %v2725_v42  ;;  %v8970_v42 = vadd.f32 %v3602_v22, %v3601_v55  ;;  %v8972_v53 = vadd.f32 %v3609_v19, %v3608_v26  ;;  %v8979_v55 = vld [vmem:[#allocation2 + $0x30] sm:$0xff] }
 0x9fd   : > { %v2732_v23 = vsel %vm2717_vm3, %v2711_v37, 0.0  ;;  %v2739_v48 = vsel %vm2717_vm3, %v2712_v51, 0.0 }
 0x9fe   : > { %v2721_v13 = vrot.slane %v2720_v16, 2  ;;  %v2728_v24 = vrot.slane %v2727_v10, 2  ;;  %v2733_v52 = vrot.slane %v2732_v23, 4  ;;  %v2740_v41 = vrot.slane %v2739_v48, 4  ;;  %v2694_v21 = vpop.permute.xlu0 %2693  ;;  %v2687_v46 = vpop.permute.xlu1 %2686 }
 0x9ff   : > { %v2714_v57 = vmul.f32 %v8935_v40, %v2694_v21  ;;  %v2713_v58 = vmul.f32 %v8967_v34, %v2687_v46 }
 0xa00   : > { %v2722_v62 = vadd.f32 %v2721_v13, %v2720_v16  ;;  %v2729_v32 = vadd.f32 %v2728_v24, %v2727_v10  ;;  %v2734_v39 = vadd.f32 %v2733_v52, %v2732_v23  ;;  %v2741_v2 = vadd.f32 %v2740_v41, %v2739_v48  ;;  %v8976_v16 = vld [vmem:[#allocation2 + $0x38] sm:$0xff] }
 0xa01   : > { %v2753_v7 = vsel %vm2717_vm3, %v2714_v57, 0.0  ;;  %v2746_v5 = vsel %vm2717_vm3, %v2713_v58, 0.0 }
 0xa02   : > { %v2723_v63 = vrot.slane %v2722_v62, 1  ;;  %v2730_v37 = vrot.slane %v2729_v32, 1  ;;  %v2735_v51 = vrot.slane %v2734_v39, 2  ;;  %v2742_v21 = vrot.slane %v2741_v2, 2  ;;  %v2708_v1 = vpop.permute.xlu0 %2707  ;;  %v2701_v43 = vpop.permute.xlu1 %2700 }
 0xa03   : > { %v2754_v14 = vrot.slane %v2753_v7, 4  ;;  %v2747_v46 = vrot.slane %v2746_v5, 4  ;;  %v2716_v10 = vmul.f32 %v8976_v16, %v2708_v1  ;;  %v2715_v26 = vmul.f32 %v8979_v55, %v2701_v43 }
 0xa04   : > { %v2724_v22 = vadd.f32 %v2723_v63, %v2722_v62  ;;  %v2731_v19 = vadd.f32 %v2730_v37, %v2729_v32  ;;  %v2736_v23 = vadd.f32 %v2735_v51, %v2734_v39  ;;  %v2743_v48 = vadd.f32 %v2742_v21, %v2741_v2 }
 0xa05   : > { %v2755_v13 = vadd.f32 %v2754_v14, %v2753_v7  ;;  %v2748_v24 = vadd.f32 %v2747_v46, %v2746_v5  ;;  %v2767_v52 = vsel %vm2717_vm3, %v2716_v10, 0.0  ;;  %v2760_v41 = vsel %vm2717_vm3, %v2715_v26, 0.0 }
 0xa06   : > { %v2786_v57 = vsel %vm2131_vm7, %v2731_v19, %v2724_v22  ;;  %v2737_v58 = vrot.slane %v2736_v23, 1  ;;  %v2744_v45 = vrot.slane %v2743_v48, 1  ;;  %v2768_v4 = vrot.slane %v2767_v52, 4  ;;  %v3554_v1 = vpop.permute.xlu0 %3553  ;;  %v3561_v47 = vpop.permute.xlu1 %3560 }
 0xa07   : > { %v2756_v9 = vrot.slane %v2755_v13, 2  ;;  %v2749_v25 = vrot.slane %v2748_v24, 2  ;;  %v2761_v43 = vrot.slane %v2760_v41, 4  ;;  %v3568_v62 = vmul.f32 %v8979_v55, %v3554_v1 }
 0xa08   : > { %v2738_v32 = vadd.f32 %v2737_v58, %v2736_v23  ;;  %v2745_v39 = vadd.f32 %v2744_v45, %v2743_v48  ;;  %v2769_v14 = vadd.f32 %v2768_v4, %v2767_v52  ;;  %v3569_v2 = vmul.f32 %v8976_v16, %v3561_v47 }
 0xa09   : > { %v2757_v7 = vadd.f32 %v2756_v9, %v2755_v13  ;;  %v2750_v5 = vadd.f32 %v2749_v25, %v2748_v24  ;;  %v2762_v63 = vadd.f32 %v2761_v43, %v2760_v41  ;;  %v3613_v37 = vsel %vm9856_vm1, %v3568_v62, 0.0 }
 0xa0a   : > { %v2787_v51 = vsel %vm2133_vm8, %v2738_v32, %v2786_v57  ;;  %v2770_v21 = vrot.slane %v2769_v14, 2  ;;  %v3614_v46 = vrot.slane %v3613_v37, 4  ;;  %v3620_v10 = vsel %vm9856_vm1, %v3569_v2, 0.0 }
 0xa0b   : > { %v2758_v26 = vrot.slane %v2757_v7, 1  ;;  %v2751_v22 = vrot.slane %v2750_v5, 1  ;;  %v2763_v19 = vrot.slane %v2762_v63, 2  ;;  %v3621_v1 = vrot.slane %v3620_v10, 4 }
 0xa0c   : > { %v3591_v45 = vadd.f32 %v3590_v33, %v8950_v20  ;;  %v3604_v4 = vrot.slane %v8970_v42, 1  ;;  %v2771_v47 = vadd.f32 %v2770_v21, %v2769_v14  ;;  %v3615_v9 = vadd.f32 %v3614_v46, %v3613_v37 }
 0xa0d   : > { %v3611_v25 = vrot.slane %v8972_v53, 1  ;;  %v2752_v23 = vadd.f32 %v2751_v22, %v2750_v5  ;;  %v2764_v48 = vadd.f32 %v2763_v19, %v2762_v63  ;;  %v3622_v13 = vadd.f32 %v3621_v1, %v3620_v10 }
 0xa0e   : > { %v2759_v24 = vadd.f32 %v2758_v26, %v2757_v7  ;;  %v2772_v52 = vrot.slane %v2771_v47, 1  ;;  %v3616_v41 = vrot.slane %v3615_v9, 2  ;;  %v2788_v57 = vsel %vm2135_vm9, %v2745_v39, %v2787_v51 }
 0xa0f   : > { %v9931_v58 = vrot.slane %v8952_v11, 1  ;;  %v2765_v62 = vrot.slane %v2764_v48, 1  ;;  %v3623_v20 = vrot.slane %v3622_v13, 2  ;;  %v2789_v33 = vsel %vm2137_vm10, %v2752_v23, %v2788_v57 }
 0xa10   : > { %v3605_v32 = vadd.f32 %v3604_v4, %v8970_v42  ;;  %v3617_v14 = vadd.f32 %v3616_v41, %v3615_v9  ;;  %v2773_v2 = vadd.f32 %v2772_v52, %v2771_v47  ;;  %v3638_v7 = vsel %vm2131_vm7, %v8958_v35, %v8960_v38  ;;  %v3744_v52 = vld [vmem:[%s9932_s8 + $0x38] sm:$0xff]  ;;  %v3743_v41 = vld [vmem:[%s9932_s8 + $0x30] sm:$0xff] }
 0xa11   : > { %v3598_v43 = vadd.f32 %v9931_v58, %v8952_v11  ;;  %v3612_v5 = vadd.f32 %v3611_v25, %v8972_v53  ;;  %v2766_v63 = vadd.f32 %v2765_v62, %v2764_v48  ;;  %v3624_v39 = vadd.f32 %v3623_v20, %v3622_v13  ;;  %7522 = vmatpush3.msra.mxu1 %v3744_v52  ;;  %v3742_v58 = vld [vmem:[%s9932_s8 + $0x28] sm:$0xff] }
 0xa12   : > { %v3639_v37 = vsel %vm2133_vm8, %v3591_v45, %v3638_v7  ;;  %v3618_v51 = vrot.slane %v3617_v14, 1  ;;  %v2790_v11 = vsel %vm2139_vm11, %v2759_v24, %v2789_v33  ;;  %v2243_v1 = vrot.slane %v8701_v30, %v8588_v59  ;;  %v3739_v33 = vld [vmem:[%s9932_s8 + $0x10] sm:$0xff] }
 0xa13   : > { %v3625_v21 = vrot.slane %v3624_v39, 1  ;;  %v2791_v46 = vsel %vm2141_vm12, %v2766_v63, %v2790_v11  ;;  %v3640_v42 = vsel %vm2135_vm9, %v3598_v43, %v3639_v37  ;;  %v2257_v45 = vrot.slane %v8701_v30, %v8828_v18  ;;  %v3740_v43 = vld [vmem:[%s9932_s8 + $0x18] sm:$0xff] }
 0xa14   : > { %v3619_v10 = vadd.f32 %v3618_v51, %v3617_v14  ;;  %v2792_v26 = vsel %vm2143_vm13, %v2773_v2, %v2791_v46  ;;  %v3641_v22 = vsel %vm2137_vm10, %v3605_v32, %v3640_v42  ;;  %v2271_v4 = vrot.slane %v8701_v30, %v8840_v31  ;;  %v3738_v32 = vld [vmem:[%s9932_s8 + $0x8] sm:$0xff]  ;;  %v3737_v14 = vld [vmem:[%s9932_s8] sm:$0xff] }
 0xa15   : > { %2793 = vrot.lane.b32.xlu0 %v2792_v26, %s9852_s26  ;;  %v3626_v35 = vadd.f32 %v3625_v21, %v3624_v39  ;;  %v3642_v38 = vsel %vm2139_vm11, %v3612_v5, %v3641_v22  ;;  %v2285_v47 = vrot.slane %v8701_v30, %v8852_v50  ;;  %v9933_v57 = vmov 0.0   ;;  %v3741_v30 = vld [vmem:[%s9932_s8 + $0x20] sm:$0xff]  ;;  %s9934_s26 = smov 16  }
 0xa16   : > { %v3643_v53 = vsel %vm2141_vm12, %v3619_v10, %v3642_v38  ;;  %7523 = vmatprep.subr.mxu1 %v9933_v57  ;;  %vm3735_vm1 = vcmask 392192  }
 0xa17   : > { %v3644_v19 = vsel %vm2143_vm13, %v3626_v35, %v3643_v53  ;;  %7524 = vmatpush3.msra.mxu1 %v3743_v41 }
 0xa18   : > { %7525 = vmatprep.subr.mxu1 %v9933_v57 }
 0xa19   : > { %3645 = vrot.lane.b32.xlu0 %v3644_v19, %s9928_s15  ;;  %7526 = vmatpush3.msra.mxu1 %v3742_v58 }
 0xa1a   : > { %7527 = vmatprep.subr.mxu1 %v9933_v57 }
 0xa1b   : > { %7528 = vmatpush3.msra.mxu1 %v3741_v30 }
 0xa1c   : > { %7529 = vmatprep.subr.mxu1 %v9933_v57 }
 0xa1d   : > { %2245 = vbcast.lane.b32.xlu0 %v2243_v1, 256  ;;  %7530 = vmatpush3.msra.mxu1 %v3740_v43 }
 0xa1e   : > { %7531 = vmatprep.subr.mxu1 %v9933_v57 }
 0xa1f   : > { %7532 = vmatpush3.msra.mxu1 %v3739_v33 }
 0xa20   : > { %7533 = vmatprep.subr.mxu1 %v9933_v57 }
 0xa21   : > { %2259 = vbcast.lane.b32.xlu0 %v2257_v45, 256  ;;  %7534 = vmatpush3.msra.mxu1 %v3738_v32 }
 0xa22   : > { %7535 = vmatprep.subr.mxu1 %v9933_v57 }
 0xa23   : > { %7536 = vmatpush3.msra.mxu1 %v3737_v14 }
 0xa25   : > { %2273 = vbcast.lane.b32.xlu0 %v2271_v4, 256 }
 0xa29   : > { %2287 = vbcast.lane.b32.xlu0 %v2285_v47, 256 }
 0xa42   : > { %v2865_v9 = vpop.f32.mrf.mxu0 }
 0xa44   : > { %v7500_v25 = vpop.f32.mrf.mxu0 }
 0xa46   : > { %v3291_v23 = vpop.f32.mrf.mxu0 }
 0xa48   : > { %v7510_v48 = vpop.f32.mrf.mxu0 }
 0xa4a   : > { %v3717_v13 = vpop.f32.mrf.mxu0 }
 0xa4c   : > { %v7520_v24 = vpop.f32.mrf.mxu0 }
 0xa58   : > { %v3220_v62 = vpop.permute.xlu1 %3219 }
 0xa59   : > { %v3292_v20 = vadd.f32 %v3291_v23, %v3220_v62 }
 0xa5b   : > { %3726 = vrot.lane.b32.xlu0 %v3292_v20, %s9854_s10  ;;  %s9936_s10 = sld [smem:[#allocation23_spill]] }
 0xa5c   : > { %v2239_v37 = vpop.permute.xlu1 %2238 }
 0xa5d   : > { %v2289_v46 = vmul.f32 %v8909_v27, %v2239_v37 }
 0xa5f   : > { %v2297_v38 = vsel %vm2061_vm6, %v2289_v46, 0.0 }
 0xa60   : > { %v2253_v11 = vpop.permute.xlu1 %2252  ;;  %v2298_v45 = vrot.slane %v2297_v38, 4 }
 0xa61   : > { %v2291_v35 = vmul.f32 %v8954_v3, %v2253_v11 }
 0xa62   : > { %v2299_v48 = vadd.f32 %v2298_v45, %v2297_v38 }
 0xa64   : > { %v2267_v10 = vpop.permute.xlu1 %2266  ;;  %v2300_v43 = vrot.slane %v2299_v48, 2 }
 0xa65   : > { %v2293_v27 = vmul.f32 %v8967_v34, %v2267_v10 }
 0xa68   : > { %v2281_v47 = vpop.permute.xlu1 %2280 }
 0xa69   : > { %v2295_v24 = vmul.f32 %v8979_v55, %v2281_v47 }
 0xa6b   : > { %v2339_v62 = vsel %vm2061_vm6, %v2295_v24, 0.0 }
 0xa87   : > { %v2794_v2 = vpop.permute.xlu0 %2793 }
 0xa88   : > { %v2866_v7 = vadd.f32 %v2865_v9, %v2794_v2 }
 0xa8a   : > { %3722 = vrot.lane.b32.xlu1 %v2866_v7, %s9934_s26  ;;  %v2340_v7 = vrot.slane %v2339_v62, 4 }
 0xa8b   : > { %v3646_v5 = vpop.permute.xlu0 %3645 }
 0xa8c   : > { %v3718_v63 = vadd.f32 %v3717_v13, %v3646_v5  ;;  %v2325_v13 = vsel %vm2061_vm6, %v2293_v27, 0.0  ;;  %v2301_v5 = vadd.f32 %v2300_v43, %v2299_v48 }
 0xa8d   : > { %v2326_v30 = vrot.slane %v2325_v13, 4 }
 0xa8e   : > { %3730 = vrot.lane.b32.xlu1 %v3718_v63, %s9935_s9  ;;  %v2302_v46 = vrot.slane %v2301_v5, 1 }
 0xa8f   : > { %v2246_v39 = vpop.permute.xlu0 %2245  ;;  %v2327_v2 = vadd.f32 %v2326_v30, %v2325_v13 }
 0xa90   : > { %v2290_v21 = vmul.f32 %v8945_v60, %v2246_v39  ;;  %v2311_v60 = vsel %vm2061_vm6, %v2291_v35, 0.0 }
 0xa91   : > { %v2312_v23 = vrot.slane %v2311_v60, 4  ;;  %v2328_v11 = vrot.slane %v2327_v2, 2 }
 0xa92   : > { %v2304_v26 = vsel %vm2061_vm6, %v2290_v21, 0.0  ;;  %v2341_v21 = vadd.f32 %v2340_v7, %v2339_v62 }
 0xa93   : > { %v2260_v51 = vpop.permute.xlu0 %2259  ;;  %v2305_v53 = vrot.slane %v2304_v26, 4  ;;  %v2313_v58 = vadd.f32 %v2312_v23, %v2311_v60  ;;  %v2329_v38 = vadd.f32 %v2328_v11, %v2327_v2  ;;  %v7119_v2 = vld [vmem:[%s9937_s13] ss:$0 sm:$0xff] }
 0xa94   : > { %v2292_v22 = vmul.f32 %v8923_v49, %v2260_v51 }
 0xa95   : > { %v2306_v9 = vadd.f32 %v2305_v53, %v2304_v26  ;;  %v2342_v53 = vrot.slane %v2341_v21, 2  ;;  %v2330_v47 = vrot.slane %v2329_v38, 1 }
 0xa96   : > { %v2318_v19 = vsel %vm2061_vm6, %v2292_v22, 0.0 }
 0xa97   : > { %v2274_v42 = vpop.permute.xlu0 %2273  ;;  %v2319_v25 = vrot.slane %v2318_v19, 4  ;;  %v2331_v48 = vadd.f32 %v2330_v47, %v2329_v38 }
 0xa98   : > { %v2294_v1 = vmul.f32 %v8935_v40, %v2274_v42  ;;  %v2307_v40 = vrot.slane %v2306_v9, 2 }
 0xa99   : > { %v2320_v52 = vadd.f32 %v2319_v25, %v2318_v19  ;;  %v2303_v19 = vadd.f32 %v2302_v46, %v2301_v5 }
 0xa9a   : > { %v2332_v49 = vsel %vm2061_vm6, %v2294_v1, 0.0  ;;  %v2308_v20 = vadd.f32 %v2307_v40, %v2306_v9  ;;  %v2343_v9 = vadd.f32 %v2342_v53, %v2341_v21 }
 0xa9b   : > { %v2288_v4 = vpop.permute.xlu0 %2287  ;;  %v2333_v41 = vrot.slane %v2332_v49, 4  ;;  %v2321_v33 = vrot.slane %v2320_v52, 2 }
 0xa9c   : > { %v2296_v3 = vmul.f32 %v8976_v16, %v2288_v4  ;;  %v2314_v16 = vrot.slane %v2313_v58, 2  ;;  %v2309_v63 = vrot.slane %v2308_v20, 1  ;;  %v2344_v13 = vrot.slane %v2343_v9, 1 }
 0xa9d   : > { %v2334_v32 = vadd.f32 %v2333_v41, %v2332_v49  ;;  %v2322_v55 = vadd.f32 %v2321_v33, %v2320_v52 }
 0xa9e   : > { %v2346_v34 = vsel %vm2061_vm6, %v2296_v3, 0.0  ;;  %v2315_v51 = vadd.f32 %v2314_v16, %v2313_v58  ;;  %v2310_v42 = vadd.f32 %v2309_v63, %v2308_v20  ;;  %v2345_v41 = vadd.f32 %v2344_v13, %v2343_v9  ;;  %v3825_v16 = vld [vmem:[%s9936_s10] sm:$0x7] }
 0xa9f   : > { %v2347_v14 = vrot.slane %v2346_v34, 4  ;;  %v2335_v39 = vrot.slane %v2334_v32, 2  ;;  %v2323_v10 = vrot.slane %v2322_v55, 1  ;;  %v3829_v7 = vrot.slane %v3825_v16, %v8414_v54 }
 0xaa0   : > { %v2316_v35 = vrot.slane %v2315_v51, 1  ;;  %v2361_v1 = vsel %vm2131_vm7, %v2310_v42, %v2303_v19 }
 0xaa1   : > { %v2348_v37 = vadd.f32 %v2347_v14, %v2346_v34  ;;  %v2336_v26 = vadd.f32 %v2335_v39, %v2334_v32  ;;  %v2324_v45 = vadd.f32 %v2323_v10, %v2322_v55  ;;  %v3841_v55 = vrot.slane %v3825_v16, %v8818_v15 }
 0xaa2   : > { %v2317_v4 = vadd.f32 %v2316_v35, %v2315_v51 }
 0xaa3   : > { %v2349_v22 = vrot.slane %v2348_v37, 2  ;;  %v2337_v60 = vrot.slane %v2336_v26, 1 }
 0xaa4   : > { %v2362_v25 = vsel %vm2133_vm8, %v2317_v4, %v2361_v1 }
 0xaa5   : > { %v2350_v27 = vadd.f32 %v2349_v22, %v2348_v37  ;;  %v2363_v23 = vsel %vm2135_vm9, %v2324_v45, %v2362_v25  ;;  %v2338_v49 = vadd.f32 %v2337_v60, %v2336_v26 }
 0xaa6   : > { %v2364_v24 = vsel %vm2137_vm10, %v2331_v48, %v2363_v23  ;;  %v3886_v48 = vld [vmem:[%s9938_s14] sm:$0xff] }
 0xaa7   : > { %v2351_v3 = vrot.slane %v2350_v27, 1  ;;  %v2365_v52 = vsel %vm2139_vm11, %v2338_v49, %v2364_v24  ;;  %v3889_v49 = vld [vmem:[%s9938_s14 + $0x18] sm:$0xff] }
 0xaa8   : > { %v2366_v58 = vsel %vm2141_vm12, %v2345_v41, %v2365_v52  ;;  %7541 = vmatpush3.msra.mxu0 %v3889_v49  ;;  %v7122_v41 = vld [vmem:[%s9939_s17] ss:$0 sm:$0xff]  ;;  %v7150_v49 = vld [vmem:[%s9923_s16 + $0x1] ss:$0 sm:$0xff] }
 0xaa9   : > { %v2352_v40 = vadd.f32 %v2351_v3, %v2350_v27  ;;  %v3888_v3 = vld [vmem:[%s9938_s14 + $0x10] sm:$0xff]  ;;  %7542 = vmatprep.subr.mxu0 %v9933_v57 }
 0xaaa   : > { %7543 = vmatpush3.msra.mxu0 %v3888_v3 }
 0xaab   : > { %v2367_v30 = vsel %vm2143_vm13, %v2352_v40, %v2366_v58  ;;  %7544 = vmatprep.subr.mxu0 %v9933_v57 }
 0xaac   : > { %v2439_v34 = vadd.f32 %v8793_v6, %v2367_v30  ;;  %v3834_v6 = vrot.slane %v3825_v16, %v8588_v59  ;;  %v7123_v30 = vld [vmem:[%s9940_s18] ss:$0 sm:$0xff]  ;;  %v3987_v16 = vld [vmem:[%s9942_s11 + $0x50] sm:$0xff] }
 0xaae   : > { %v3835_v11 = vmul.f32 %v3834_v6, %v8355_v17  ;;  %v3984_v6 = vld [vmem:[%s9942_s11 + $0x38] sm:$0xff] }
 0xacd   : > { %v3727_v20 = vpop.permute.xlu0 %3726 }
 0xafc   : > { %v3723_v43 = vpop.permute.xlu1 %3722 }
 0xafd   : > { %v3733_v62 = vsel %vm2061_vm6, %v2439_v34, %v3723_v43 }
 0xafe   : > { %v3734_v33 = vsel %vm1515_vm4, %v3733_v62, %v3727_v20  ;;  %v3992_v62 = vld [vmem:[%s9941_s2 + $0x78] sm:$0xff]  ;;  %v3991_v20 = vld [vmem:[%s9942_s11 + $0x70] sm:$0xff]  ;;  %s9943_s2 = sld [smem:[#allocation27_spill]] }
 0xb00   : > { %v3731_v32 = vpop.permute.xlu1 %3730 }
 0xb01   : > { %v3736_v14 = vsel %vm3735_vm1, %v3734_v33, %v3731_v32  ;;  %v3990_v33 = vld [vmem:[%s9942_s11 + $0x68] sm:$0xff]  ;;  %v3989_v32 = vld [vmem:[%s9942_s11 + $0x60] sm:$0xff] }
 0xb02   : > { %7538 = vmatmul.mubr.msk.f32.vlgmr.msra.gmra.mxu1 %vm1639_vm5, %v3736_v14  ;;  %v3988_v14 = vld [vmem:[%s9942_s11 + $0x58] sm:$0xff] }
 0xb03   : > { %4222 = vmatprep.mubr.f32.mxu1 %v9933_v57 }
 0xb04   : > { %s9944_s23 = smov %s9943_s2 }
 0xbc2   : > { %v3821_v5 = vpop.f32.mrf.mxu1 }
 0xbc3   : > { %v3822_v63 = vadd.f32 %v7119_v2, %v3821_v5  ;;  %v3986_v2 = vld [vmem:[%s9942_s11 + $0x48] sm:$0xff]  ;;  %v3983_v5 = vld [vmem:[%s9942_s11 + $0x30] sm:$0xff] }
 0xbc4   : > { %v7539_v39 = vpop.f32.mrf.mxu1 }
 0xbc5   : > { %v3830_v37 = vmul.f32 %v3829_v7, %v3822_v63  ;;  %v3837_v51 = vsub.f32 %v3822_v63, %v8355_v17  ;;  %v3985_v7 = vld [vmem:[%s9942_s11 + $0x40] sm:$0xff]  ;;  %v3980_v39 = vld [vmem:[%s9942_s11 + $0x18] sm:$0xff] }
 0xbc7   : > { %v3836_v21 = vadd.f32 %v3835_v11, %v3830_v37  ;;  %v3842_v46 = vmul.f32 %v3841_v55, %v3837_v51  ;;  %v3981_v55 = vld [vmem:[%s9942_s11 + $0x20] sm:$0xff]  ;;  %v3979_v37 = vld [vmem:[%s9942_s11 + $0x10] sm:$0xff]  ;;  %v3978_v51 = vld [vmem:[%s9942_s11 + $0x8] sm:$0xff] }
 0xbc8   : > { %v3977_v11 = vld [vmem:[%s9942_s11] sm:$0xff] }
 0xbc9   : > { %v3843_v42 = vadd.f32 %v3842_v46, %v3836_v21  ;;  %v7148_v21 = vld [vmem:[%s8171_s21 + $0x38] sm:$0xff]  ;;  %v7124_v46 = vld [vmem:[%s9943_s2] ss:$0 sm:$0xff]  ;;  %s9945_s2 = sld [smem:[#allocation30_spill]] }
 0xbcb   : > { %v3844_v10 = vsel %vm1515_vm4, %v3843_v42, 0.0 }
 0xbcc   : > { %3845 = vadd.xlane.f32.xlu0 %v3844_v10 }
 0xbcf   : > { %s9946_s22 = smov %s9945_s2 }
 0xc55   : > { %v3846_v26 = vpop.xlane.xlu0 %3845 }
 0xc56   : > { %v7121_v22 = vmul.f32 -1.442695, %v3846_v26 }
 0xc58   : > { %7888 = vpow2.f32 %v7121_v22 }
 0xc65   : > { %v7889_v35 = vpop.eup %7888 }
 0xc66   : > { %v3850_v38 = vadd.f32 1.0, %v7889_v35 }
 0xc68   : > { %7890 = vrcp.f32 %v3850_v38 }
 0xc75   : > { %v7891_v53 = vpop.eup %7890 }
 0xc76   : > { %v3854_v19 = vsub.f32 1.0, %v7891_v53  ;;  %v3853_v1 = vmul.f32 %v7891_v53, %v3822_v63  ;;  %v3982_v63 = vld [vmem:[%s9942_s11 + $0x28] sm:$0xff] }
 0xc78   : > { %v3855_v45 = vmul.f32 %v3854_v19, %v8355_v17  ;;  %v3887_v17 = vld [vmem:[%s9938_s14 + $0x8] sm:$0xff] }
 0xc79   : > { %7545 = vmatpush3.msra.mxu0 %v3887_v17 }
 0xc7a   : > { %v9078_v60 = vadd.f32 %v3855_v45, %v3853_v1  ;;  %7546 = vmatprep.subr.mxu0 %v9933_v57  ;;  %v7147_v1 = vld [vmem:[%s8171_s21 + $0x30] sm:$0xff]  ;;  %v7146_v45 = vld [vmem:[%s8171_s21 + $0x28] sm:$0xff] }
 0xc7b   : > { %7547 = vmatpush3.msra.mxu0 %v3886_v48 }
 0xc7c   : > { %v3859_v27 = vsel %vm1515_vm4, %v9078_v60, 0.0  ;;  %7551 = vmatprep.subr.mxu0 %v9933_v57 }
 0xc7d   : > { %3860 = vadd.xlane.f32.xlu1 %v3859_v27  ;;  %v7145_v27 = vld [vmem:[%s8171_s21 + $0x20] sm:$0xff] }
 0xd06   : > { %v3861_v4 = vpop.xlane.xlu1 %3860 }
 0xd07   : > { %v3862_v47 = vmul.f32 0.03125, %v3861_v4 }
 0xd09   : > { %v3863_v9 = vsub.f32 %v9078_v60, %v3862_v47 }
 0xd0b   : > { %v3864_v25 = vmul.f32 %v3863_v9, %v3863_v9 }
 0xd0d   : > { %v3865_v23 = vsel %vm1515_vm4, %v3864_v25, 0.0 }
 0xd0e   : > { %3866 = vadd.xlane.f32.xlu0 %v3865_v23 }
 0xd97   : > { %v3867_v13 = vpop.xlane.xlu0 %3866 }
 0xd98   : > { %v3868_v24 = vmul.f32 0.03125, %v3867_v13 }
 0xd9a   : > { %v3869_v40 = vadd.f32 1e-05, %v3868_v24 }
 0xd9c   : > { %7892 = vrsqrt.f32 %v3869_v40 }
 0xda9   : > { %v7893_v52 = vpop.eup %7892 }
 0xdaa   : > { %v3871_v58 = vmul.f32 %v7893_v52, %v3863_v9 }
 0xdac   : > { %v3878_v34 = vmul.f32 %v7122_v41, %v3871_v58 }
 0xdae   : > { %v3885_v43 = vadd.f32 %v7123_v30, %v3878_v34 }
 0xdb0   : > { %7549 = vmatmul.mubr.msk.f32.vlgmr.msra.gmra.mxu0 %vm1515_vm4, %v3885_v43 }
 0xdb1   : > { %7583 = vmatprep.mubr.msk.f32.mxu0 %vm8062_vm0, %v9933_v57  ;;  %7552 = vmatpush3.msra.mxu0 %v3992_v62 }
 0xdb2   : > { %7553 = vmatprep.subr.mxu0 %v9933_v57 }
 0xdb3   : > { %7554 = vmatpush3.msra.mxu0 %v3991_v20 }
 0xdb4   : > { %7555 = vmatprep.subr.mxu0 %v9933_v57 }
 0xdb5   : > { %7556 = vmatpush3.msra.mxu0 %v3990_v33 }
 0xdb6   : > { %7557 = vmatprep.subr.mxu0 %v9933_v57 }
 0xdb7   : > { %7558 = vmatpush3.msra.mxu0 %v3989_v32 }
 0xdb8   : > { %7559 = vmatprep.subr.mxu0 %v9933_v57 }
 0xdb9   : > { %7560 = vmatpush3.msra.mxu0 %v3988_v14 }
 0xdba   : > { %7561 = vmatprep.subr.mxu0 %v9933_v57 }
 0xdbb   : > { %7562 = vmatpush3.msra.mxu0 %v3987_v16 }
 0xdbc   : > { %7563 = vmatprep.subr.mxu0 %v9933_v57 }
 0xdbd   : > { %7564 = vmatpush3.msra.mxu0 %v3986_v2 }
 0xdbe   : > { %7565 = vmatprep.subr.mxu0 %v9933_v57 }
 0xdbf   : > { %7566 = vmatpush3.msra.mxu0 %v3985_v7 }
 0xdc0   : > { %7567 = vmatprep.subr.mxu0 %v9933_v57 }
 0xdc1   : > { %7568 = vmatpush3.msra.mxu0 %v3984_v6 }
 0xdc2   : > { %7569 = vmatprep.subr.mxu0 %v9933_v57 }
 0xdc3   : > { %7570 = vmatpush3.msra.mxu0 %v3983_v5 }
 0xdc4   : > { %7571 = vmatprep.subr.mxu0 %v9933_v57 }
 0xdc5   : > { %7572 = vmatpush3.msra.mxu0 %v3982_v63 }
 0xdc6   : > { %7573 = vmatprep.subr.mxu0 %v9933_v57 }
 0xdc7   : > { %7574 = vmatpush3.msra.mxu0 %v3981_v55 }
 0xdc8   : > { %7575 = vmatprep.subr.mxu0 %v9933_v57 }
 0xdc9   : > { %7576 = vmatpush3.msra.mxu0 %v3980_v39 }
 0xdca   : > { %7577 = vmatprep.subr.mxu0 %v9933_v57 }
 0xdcb   : > { %7578 = vmatpush3.msra.mxu0 %v3979_v37 }
 0xdcc   : > { %7579 = vmatprep.subr.mxu0 %v9933_v57 }
 0xdcd   : > { %7580 = vmatpush3.msra.mxu0 %v3978_v51 }
 0xdce   : > { %7581 = vmatprep.subr.mxu0 %v9933_v57 }
 0xdcf   : > { %7582 = vmatpush3.msra.mxu0 %v3977_v11 }
 0xdd0   : > { %7624 = vmatprep.subr.mxu0 %v7148_v21 }
 0xe70   : > { %v3966_v42 = vpop.f32.mrf.mxu0 }
 0xe71   : > { %v3967_v10 = vadd.f32 %v7124_v46, %v3966_v42 }
 0xe72   : > { %v7550_v26 = vpop.f32.mrf.mxu0 }
 0xe73   : > { %v7126_v22 = vmul.f32 -1.442695, %v3967_v10 }
 0xe75   : > { %7894 = vpow2.f32 %v7126_v22  ;;  %v7140_v22 = vld [vmem:[%s8161_s27 + $0x78] sm:$0xff] }
 0xe76   : > { %4182 = vmatprep.subr.mxu1 %v7140_v22 }
 0xe82   : > { %v7895_v35 = vpop.eup %7894 }
 0xe83   : > { %v3973_v38 = vadd.f32 1.0, %v7895_v35  ;;  %v7138_v35 = vld [vmem:[%s8161_s27 + $0x68] sm:$0xff] }
 0xe85   : > { %7896 = vrcp.f32 %v3973_v38  ;;  %v7137_v38 = vld [vmem:[%s8161_s27 + $0x60] sm:$0xff] }
 0xe92   : > { %v7897_v53 = vpop.eup %7896 }
 0xe93   : > { %v3976_v19 = vmul.f32 %v7897_v53, %v3967_v10  ;;  %v7136_v53 = vld [vmem:[%s8161_s27 + $0x58] sm:$0xff] }
 0xe95   : > { %7584 = vmatmul.mubr.f32.vlgmr.msra.gmra.mxu0 %v3976_v19  ;;  %v7135_v19 = vld [vmem:[%s8161_s27 + $0x50] sm:$0xff] }
 0xe96   : > { %7625 = vmatpush3.msra.mxu0 %v7148_v21  ;;  %7632 = vmatprep.mubr.msk.f32.mxu0 %vm1515_vm4, %v8450_v28  ;;  %v4070_v28 = vld [vmem:[%s9945_s2] sm:$0x7]  ;;  %s9950_s2 = smov 112  }
 0xe97   : > { %7626 = vmatprep.subr.mxu0 %v7147_v1 }
 0xe98   : > { %7627 = vmatpush3.msra.mxu0 %v7147_v1  ;;  %v7134_v1 = vld [vmem:[%s8161_s27 + $0x48] sm:$0xff] }
 0xe99   : > { %7628 = vmatprep.subr.mxu0 %v7146_v45 }
 0xe9a   : > { %7629 = vmatpush3.msra.mxu0 %v7146_v45  ;;  %v7133_v45 = vld [vmem:[%s8161_s27 + $0x40] sm:$0xff] }
 0xe9b   : > { %7630 = vmatprep.subr.mxu0 %v7145_v27 }
 0xe9c   : > { %7631 = vmatpush3.msra.mxu0 %v7145_v27 }
 0xe9d   : > { %7633 = vmatmul.mubr.msk.f32.vlgmr.msra.gmra.mxu0 %vm1515_vm4, %v8454_v36  ;;  %7654 = vmatprep.subr.mxu0 %v9933_v57  ;;  %v7127_v36 = vld [vmem:[%s9947_s28] ss:$0 sm:$0xff]  ;;  %s9949_s28 = smov 64  }
 0xe9e   : > { %7635 = vmatprep.mubr.msk.f32.mxu0 %vm1515_vm4, %v8458_v44  ;;  %v4074_v44 = vrot.slane %v4070_v28, %v8414_v54 }
 0xea1   : > { %7636 = vmatmul.mubr.msk.f32.gmra.mxu0 %vm1515_vm4, %v8462_v56  ;;  %v4079_v56 = vrot.slane %v4070_v28, %v8588_v59 }
 0xea2   : > { %7638 = vmatprep.mubr.msk.f32.mxu0 %vm1515_vm4, %v8464_v61 }
 0xea3   : > { %v4080_v25 = vmul.f32 %v4079_v56, %v9078_v60  ;;  %v7131_v56 = vld [vmem:[%s8151_s12 + $0x1] ss:$0 sm:$0xff] }
 0xea5   : > { %7639 = vmatmul.mubr.msk.f32.gmra.mxu0 %vm1515_vm4, %v8470_v0  ;;  %v4086_v0 = vrot.slane %v4070_v28, %v8818_v15 }
 0xea6   : > { %7641 = vmatprep.mubr.msk.f32.mxu0 %vm1515_vm4, %v8474_v8 }
 0xea9   : > { %7642 = vmatmul.mubr.msk.f32.gmra.mxu0 %vm1515_vm4, %v8478_v12 }
 0xeaa   : > { %7656 = vmatprep.mubr.msk.f32.mxu0 %vm8062_vm0, %v9933_v57 }
 0xf55   : > { %v4066_v61 = vpop.f32.mrf.mxu0 }
 0xf56   : > { %v4067_v4 = vadd.f32 %v7127_v36, %v4066_v61 }
 0xf57   : > { %v7585_v47 = vpop.f32.mrf.mxu0 }
 0xf58   : > { %v4075_v9 = vmul.f32 %v4074_v44, %v4067_v4  ;;  %v4082_v8 = vsub.f32 %v4067_v4, %v9078_v60 }
 0xf5a   : > { %v4081_v12 = vadd.f32 %v4080_v25, %v4075_v9  ;;  %v4087_v23 = vmul.f32 %v4086_v0, %v4082_v8  ;;  %v7944_v9 = vld [vmem:[%s9902_s3 + $0x38] sm:$0xff]  ;;  %v7945_v8 = vld [vmem:[%s9902_s3 + $0x30] sm:$0xff]  ;;  %v7946_v25 = vld [vmem:[%s9902_s3 + $0x28] sm:$0xff] }
 0xf5c   : > { %v4088_v3 = vadd.f32 %v4087_v23, %v4081_v12  ;;  %v7947_v12 = vld [vmem:[%s9902_s3 + $0x20] sm:$0xff]  ;;  %v7948_v23 = vld [vmem:[%s9902_s3 + $0x18] sm:$0xff] }
 0xf5d   : > { %v7634_v17 = vpop.f32.mrf.mxu0 }
 0xf5e   : > { %v4471_v48 = vadd.f32 %v7634_v17, %v7150_v49  ;;  %v4089_v13 = vsel %vm1515_vm4, %v4088_v3, 0.0  ;;  %v7950_v3 = vld [vmem:[%s9902_s3 + $0x8] sm:$0xff]  ;;  %v7951_v17 = vld [vmem:[%s9902_s3] sm:$0xff] }
 0xf5f   : > { %v4465_v24 = vpop.f32.mrf.mxu0  ;;  %4090 = vadd.xlane.f32.xlu0 %v4089_v13 }
 0xf60   : > { %4505 = vst.msk [vmem:[#allocation2 + $0x8] sm:$0xff] %vm1639_vm5, %v4471_v48  ;;  %v4466_v40 = vadd.f32 %v7150_v49, %v4465_v24  ;;  %v9207_v48 = vld [vmem:[%s9901_s4 + $0x2] sm:$0x3]  ;;  %s9953_s4 = smov 32  }
 0xf61   : > { %v7637_v52 = vpop.f32.mrf.mxu0  ;;  %v4148_v13 = vrot.slane %v9207_v48, %v8414_v54 }
 0xf62   : > { %4504 = vst.msk [vmem:[#allocation2] sm:$0xff] %vm1639_vm5, %v4466_v40  ;;  %v4481_v41 = vadd.f32 %v7637_v52, %v7150_v49 }
 0xf63   : > { %v4475_v58 = vpop.f32.mrf.mxu0 }
 0xf64   : > { %4507 = vst.msk [vmem:[#allocation2 + $0x18] sm:$0xff] %vm1639_vm5, %v4481_v41  ;;  %v4476_v30 = vadd.f32 %v7150_v49, %v4475_v58 }
 0xf65   : > { %v7640_v34 = vpop.f32.mrf.mxu0 }
 0xf66   : > { %4506 = vst.msk [vmem:[#allocation2 + $0x10] sm:$0xff] %vm1639_vm5, %v4476_v30  ;;  %v4491_v43 = vadd.f32 %v7640_v34, %v7150_v49  ;;  %v7952_v30 = vld [vmem:[%s8106_s25] sm:$0xff] }
 0xf67   : > { %v4485_v62 = vpop.f32.mrf.mxu0 }
 0xf68   : > { %4509 = vst.msk [vmem:[#allocation2 + $0x28] sm:$0xff] %vm1639_vm5, %v4491_v43  ;;  %v4486_v20 = vadd.f32 %v7150_v49, %v4485_v62  ;;  %v7953_v43 = vld [vmem:[%s9922_s5] sm:$0xff] }
 0xf69   : > { %v7643_v33 = vpop.f32.mrf.mxu0 }
 0xf6a   : > { %4508 = vst.msk [vmem:[#allocation2 + $0x20] sm:$0xff] %vm1639_vm5, %v4486_v20  ;;  %v4501_v32 = vadd.f32 %v7643_v33, %v7150_v49 }
 0xf6b   : > { %v4495_v14 = vpop.f32.mrf.mxu0 }
 0xf6c   : > { %4511 = vst.msk [vmem:[#allocation2 + $0x38] sm:$0xff] %vm1639_vm5, %v4501_v32  ;;  %v4496_v16 = vadd.f32 %v7150_v49, %v4495_v14  ;;  %v7949_v49 = vld [vmem:[%s9902_s3 + $0x10] sm:$0xff]  ;;  %s9951_s3 = smov 96  }
 0xf6e   : > { %4510 = vst.msk [vmem:[#allocation2 + $0x30] sm:$0xff] %vm1639_vm5, %v4496_v16 }
 0xfe8   : > { %v4091_v2 = vpop.xlane.xlu0 %4090 }
 0xfe9   : > { %v7128_v7 = vmul.f32 -1.442695, %v4091_v2 }
 0xfeb   : > { %7898 = vpow2.f32 %v7128_v7 }
 0xff8   : > { %v7899_v6 = vpop.eup %7898 }
 0xff9   : > { %v4095_v5 = vadd.f32 1.0, %v7899_v6 }
 0xffb   : > { %7900 = vrcp.f32 %v4095_v5 }
0x1008   : > { %v7901_v63 = vpop.eup %7900 }
0x1009   : > { %v4099_v55 = vsub.f32 1.0, %v7901_v63  ;;  %v4098_v39 = vmul.f32 %v7901_v63, %v4067_v4  ;;  %v7132_v4 = vld [vmem:[%s8156_s20 + $0x1] ss:$0 sm:$0xff] }
0x100b   : > { %v4100_v37 = vmul.f32 %v4099_v55, %v9078_v60  ;;  %v7139_v60 = vld [vmem:[%s8161_s27 + $0x70] sm:$0xff] }
0x100c   : > { %4183 = vmatpush1.msra.mxu1 %v7139_v60 }
0x100d   : > { %v9170_v51 = vadd.f32 %v4100_v37, %v4098_v39  ;;  %4184 = vmatprep.subr.mxu1 %v7138_v35  ;;  %v9266_v35 = vld [vmem:[#allocation2 + $0x28] sm:$0xff] }
0x100e   : > { %4185 = vmatpush1.msra.mxu1 %v7137_v38 }
0x100f   : > { %v4106_v11 = vsel %vm1515_vm4, %v9170_v51, 0.0  ;;  %4186 = vmatprep.subr.mxu1 %v7136_v53 }
0x1010   : > { %4107 = vadd.xlane.f32.xlu1 %v4106_v11  ;;  %4187 = vmatpush1.msra.mxu1 %v7135_v19  ;;  %v9251_v11 = vld [vmem:[#allocation2 + $0x8] sm:$0xff] }
0x1011   : > { %4188 = vmatprep.subr.mxu1 %v7134_v1  ;;  %v9272_v1 = vld [vmem:[#allocation2 + $0x10] sm:$0xff] }
0x1012   : > { %4189 = vmatpush1.msra.mxu1 %v7133_v45 }
0x1013   : > { %7586 = vmatprep.subr.mxu1 %v9933_v57 }
0x1099   : > { %v4108_v21 = vpop.xlane.xlu1 %4107 }
0x109a   : > { %v4109_v46 = vmul.f32 0.03125, %v4108_v21 }
0x109c   : > { %v4110_v42 = vsub.f32 %v9170_v51, %v4109_v46 }
0x109e   : > { %v4111_v10 = vmul.f32 %v4110_v42, %v4110_v42 }
0x10a0   : > { %v4112_v26 = vsel %vm1515_vm4, %v4111_v10, 0.0  ;;  %v9257_v10 = vld [vmem:[#allocation2 + $0x18] sm:$0xff] }
0x10a1   : > { %4113 = vadd.xlane.f32.xlu0 %v4112_v26 }
0x112a   : > { %v4114_v27 = vpop.xlane.xlu0 %4113 }
0x112b   : > { %v4115_v28 = vmul.f32 0.03125, %v4114_v27 }
0x112d   : > { %v4116_v36 = vadd.f32 1e-05, %v4115_v28 }
0x112f   : > { %7902 = vrsqrt.f32 %v4116_v36  ;;  %v9285_v36 = vld [vmem:[#allocation2 + $0x38] sm:$0xff] }
0x113c   : > { %v7903_v44 = vpop.eup %7902 }
0x113d   : > { %v4118_v61 = vmul.f32 %v7903_v44, %v4110_v42 }
0x113f   : > { %v4125_v0 = vmul.f32 %v7131_v56, %v4118_v61 }
0x1141   : > { %v4132_v47 = vadd.f32 %v7132_v4, %v4125_v0  ;;  %v9295_v0 = vld [vmem:[#allocation2 + $0x20] sm:$0xff] }
0x1143   : > { %7142 = vmatmul.mubr.msk.f32.vlgmr.msra.gmra.mxu1 %vm1515_vm4, %v4132_v47 }
0x1144   : > { %7587 = vmatpush3.msra.mxu1 %v7944_v9  ;;  %7602 = vmatprep.mubr.msk.f32.mxu1 %vm8062_vm0, %v9933_v57 }
0x1145   : > { %7588 = vmatprep.subr.mxu1 %v9933_v57 }
0x1146   : > { %7589 = vmatpush3.msra.mxu1 %v7945_v8 }
0x1147   : > { %7590 = vmatprep.subr.mxu1 %v9933_v57 }
0x1148   : > { %7591 = vmatpush3.msra.mxu1 %v7946_v25 }
0x1149   : > { %7592 = vmatprep.subr.mxu1 %v9933_v57 }
0x114a   : > { %7593 = vmatpush3.msra.mxu1 %v7947_v12 }
0x114b   : > { %7594 = vmatprep.subr.mxu1 %v9933_v57 }
0x114c   : > { %7595 = vmatpush3.msra.mxu1 %v7948_v23 }
0x114d   : > { %7596 = vmatprep.subr.mxu1 %v9933_v57 }
0x114e   : > { %7597 = vmatpush3.msra.mxu1 %v7949_v49 }
0x114f   : > { %7598 = vmatprep.subr.mxu1 %v9933_v57 }
0x1150   : > { %7599 = vmatpush3.msra.mxu1 %v7950_v3 }
0x1151   : > { %7600 = vmatprep.subr.mxu1 %v9933_v57 }
0x1152   : > { %7601 = vmatpush3.msra.mxu1 %v7951_v17 }
0x1153   : > { %7605 = vmatprep.subr.mxu1 %v9933_v57 }
0x1203   : > { %v4224_v24 = vpop.f32.mrf.mxu1 }
0x1204   : > { %v9211_v40 = vadd.f32 %v4224_v24, %v4148_v13 }
0x1205   : > { %v9230_v41 = vpop.f32.mrf.mxu1 }
0x1206   : > { %4306 = vrot.lane.b32.xlu1 %v9211_v40, %s9949_s28  ;;  %7603 = vmatmul.mubr.msk.f32.vlgmr.msra.gmra.mxu1 %vm1639_vm5, %v9211_v40  ;;  %v4229_v34 = vmul.f32 %v7952_v30, %v9211_v40 }
0x1207   : > { %7606 = vmatpush3.msra.mxu1 %v7944_v9  ;;  %7621 = vmatprep.mubr.msk.f32.mxu1 %vm8062_vm0, %v9933_v57 }
0x1208   : > { %7607 = vmatprep.subr.mxu1 %v9933_v57 }
0x1209   : > { %7608 = vmatpush3.msra.mxu1 %v7945_v8 }
0x120a   : > { %7609 = vmatprep.subr.mxu1 %v9933_v57 }
0x120b   : > { %7610 = vmatpush3.msra.mxu1 %v7946_v25  ;;  %v9952_v25 = vld [vmem:[#allocation43_spill] sm:$0xff] }
0x120c   : > { %7611 = vmatprep.subr.mxu1 %v9933_v57 }
0x120d   : > { %7612 = vmatpush3.msra.mxu1 %v7947_v12  ;;  %v4305_v12 = vmul.f32 %v9211_v40, %v9952_v25  ;;  %v9315_v40 = vld [vmem:[#allocation2 + $0x30] sm:$0xff] }
0x120e   : > { %7613 = vmatprep.subr.mxu1 %v9933_v57 }
0x120f   : > { %7614 = vmatpush3.msra.mxu1 %v7948_v23 }
0x1210   : > { %7615 = vmatprep.subr.mxu1 %v9933_v57 }
0x1211   : > { %7616 = vmatpush3.msra.mxu1 %v7949_v49 }
0x1212   : > { %7617 = vmatprep.subr.mxu1 %v9933_v57 }
0x1213   : > { %7618 = vmatpush3.msra.mxu1 %v7950_v3  ;;  %v9307_v3 = vld [vmem:[#allocation2] sm:$0xff] }
0x1214   : > { %7619 = vmatprep.subr.mxu1 %v9933_v57 }
0x1215   : > { %7620 = vmatpush3.msra.mxu1 %v7951_v17 }
0x1216   : > { %7644 = vmatprep.subr.mxu1 %v9933_v57 }
0x1278   : > { %v4307_v52 = vpop.permute.xlu1 %4306 }
0x1279   : > { %7622 = vmatmul.mubr.msk.f32.vlgmr.msra.gmra.mxu1 %vm1639_vm5, %v4307_v52 }
0x127a   : > { %7646 = vmatprep.mubr.msk.f32.mxu1 %vm8062_vm0, %v9933_v57 }
0x12c6   : > { %v4299_v58 = vpop.f32.mrf.mxu1 }
0x12c7   : > { %v4303_v62 = vmul.f32 %v7953_v43, %v4299_v58 }
0x12c8   : > { %v7604_v20 = vpop.f32.mrf.mxu1 }
0x12c9   : > { %v9235_v33 = vadd.f32 %v4303_v62, %v4229_v34 }
0x12cb   : > { %v4528_v14 = vrot.slane %v9235_v33, %v8493_v29  ;;  %v4521_v7 = vcombine.high %v9235_v33, %v9235_v33 }
0x12cd   : > { %v4536_v6 = vcombine.high %v4528_v14, %v4528_v14  ;;  %v4535_v63 = vrot.slane %v4521_v7, %v8493_v29  ;;  %v4544_v60 = vrot.slane %v4528_v14, %v8493_v29 }
0x12cf   : > { %v4558_v5 = vrot.slane %v4536_v6, %v8493_v29  ;;  %v4537_v37 = vcombine.high %v4535_v63, %v4535_v63  ;;  %v4566_v53 = vcombine.high %v4544_v60, %v4544_v60  ;;  %v4551_v56 = vrot.slane %v4535_v63, %v8493_v29 }
0x12d0   : > { %v4573_v49 = vrot.slane %v4544_v60, %v8414_v54 }
0x12d1   : > { %v4577_v55 = vrot.slane %v4558_v5, %v8414_v54  ;;  %v4568_v39 = vcombine.high %v4558_v5, %v4558_v5  ;;  %v4565_v42 = vrot.slane %v4537_v37, %v8493_v29  ;;  %v4581_v19 = vrot.slane %v4566_v53, %v8414_v54 }
0x12d2   : > { %v4589_v4 = vrot.slane %v4551_v56, %v8414_v54  ;;  %v4997_v17 = vmul.f32 %v9307_v3, %v4573_v49  ;;  %v4567_v13 = vcombine.high %v4551_v56, %v4551_v56 }
0x12d3   : > { %v4998_v21 = vmul.f32 %v9251_v11, %v4577_v55  ;;  %v4585_v46 = vrot.slane %v4568_v39, %v8414_v54  ;;  %v4593_v22 = vrot.slane %v4565_v42, %v8414_v54  ;;  %v5425_v45 = vmul.f32 %v9272_v1, %v4581_v19 }
0x12d4   : > { %v4569_v27 = vcombine.high %v4565_v42, %v4565_v42  ;;  %v4614_v9 = vmul.f32 %v4589_v4, %v9295_v0  ;;  %v4597_v24 = vrot.slane %v4567_v13, %v8414_v54  ;;  %v4618_v34 = vsel %vm2061_vm6, %v4997_v17, 0.0 }
0x12d5   : > { %v9260_v26 = vmul.f32 %v9257_v10, %v4585_v46  ;;  %v5002_v38 = vmul.f32 %v9266_v35, %v4593_v22  ;;  %v4621_v61 = vsel %vm2061_vm6, %v4998_v21, 0.0  ;;  %v4624_v47 = vsel %vm2061_vm6, %v5425_v45, 0.0 }
0x12d6   : > { %v4601_v28 = vrot.slane %v4569_v27, %v8414_v54  ;;  %v4630_v8 = vsel %vm2061_vm6, %v4614_v9, 0.0  ;;  %v5003_v52 = vmul.f32 %v9315_v40, %v4597_v24 }
0x12d7   : > { %v4627_v62 = vsel %vm2061_vm6, %v9260_v26, 0.0  ;;  %v4633_v20 = vsel %vm2061_vm6, %v5002_v38, 0.0 }
0x12d8   : > { %v9288_v44 = vmul.f32 %v9285_v36, %v4601_v28  ;;  %v4636_v46 = vsel %vm2061_vm6, %v5003_v52, 0.0 }
0x12da   : > { %v4639_v60 = vsel %vm2061_vm6, %v9288_v44, 0.0 }
0x1339   : > { %v4376_v32 = vpop.f32.mrf.mxu1 }
0x133a   : > { %v4380_v16 = vmul.f32 %v7953_v43, %v4376_v32 }
0x133b   : > { %v7623_v2 = vpop.f32.mrf.mxu1 }
0x133c   : > { %4382 = vrot.lane.b32.xlu0 %v4380_v16, %s9949_s28  ;;  %v4152_v16 = vrot.slane %v9207_v48, %v8588_v59 }
0x133e   : > { %v9338_v6 = vadd.f32 %v9230_v41, %v4152_v16 }
0x1340   : > { %5061 = vrot.lane.b32.xlu0 %v9235_v33, %s9950_s2 }
0x1344   : > { %5487 = vrot.lane.b32.xlu0 %v9235_v33, %s9951_s3 }
0x1348   : > { %5912 = vrot.lane.b32.xlu0 %v9235_v33, %s9928_s15 }
0x134c   : > { %5015 = vrot.lane.b32.xlu0 %v4998_v21, %s9950_s2 }
0x1350   : > { %5019 = vrot.lane.b32.xlu0 %v9260_v26, %s9950_s2 }
0x1354   : > { %5023 = vrot.lane.b32.xlu0 %v5002_v38, %s9950_s2 }
0x1358   : > { %5441 = vrot.lane.b32.xlu0 %v4998_v21, %s9951_s3 }
0x135c   : > { %5443 = vrot.lane.b32.xlu0 %v5425_v45, %s9951_s3 }
0x1360   : > { %5445 = vrot.lane.b32.xlu0 %v9260_v26, %s9951_s3 }
0x1364   : > { %5449 = vrot.lane.b32.xlu0 %v5002_v38, %s9951_s3 }
0x1368   : > { %5866 = vrot.lane.b32.xlu0 %v4998_v21, %s9928_s15 }
0x136c   : > { %5868 = vrot.lane.b32.xlu0 %v5425_v45, %s9928_s15 }
0x1370   : > { %5870 = vrot.lane.b32.xlu0 %v9260_v26, %s9928_s15 }
0x1374   : > { %5874 = vrot.lane.b32.xlu0 %v5002_v38, %s9928_s15 }
0x1378   : > { %5878 = vrot.lane.b32.xlu0 %v9288_v44, %s9928_s15 }
0x1397   : > { %4622 = vadd.xlane.f32.xlu0 %v4621_v61 }
0x139b   : > { %4625 = vadd.xlane.f32.xlu0 %v4624_v47 }
0x139f   : > { %4631 = vadd.xlane.f32.xlu0 %v4630_v8 }
0x13ae   : > { %v4383_v23 = vpop.permute.xlu0 %4382 }
0x13af   : > { %v4385_v29 = vadd.f32 %v4383_v23, %v4305_v12 }
0x13b1   : > { %4643 = vrot.lane.b32.xlu1 %v4385_v29, %s9949_s28  ;;  %s7219_s28 = sshll.u32 %s8284_s0, 4 }
0x13b2   : > { %v5062_v58 = vpop.permute.xlu0 %5061 }
0x13b5   : > { %5063 = vrot.lane.b32.xlu1 %v4385_v29, %s9935_s9 }
0x13b6   : > { %v5488_v30 = vpop.permute.xlu0 %5487 }
0x13b9   : > { %5489 = vrot.lane.b32.xlu1 %v4385_v29, %s9953_s4 }
0x13ba   : > { %v5913_v43 = vpop.permute.xlu0 %5912 }
0x13bd   : > { %5914 = vrot.lane.b32.xlu1 %v4385_v29, %s9934_s26 }
0x13be   : > { %v5016_v32 = vpop.permute.xlu0 %5015 }
0x13bf   : > { %v5040_v14 = vsel %vm2061_vm6, %v5016_v32, 0.0 }
0x13c1   : > { %5013 = vrot.lane.b32.xlu1 %v4997_v17, %s9950_s2 }
0x13c2   : > { %v5020_v7 = vpop.permute.xlu0 %5019 }
0x13c3   : > { %v5046_v22 = vsel %vm2061_vm6, %v5020_v7, 0.0 }
0x13c5   : > { %5017 = vrot.lane.b32.xlu1 %v5425_v45, %s9950_s2 }
0x13c6   : > { %v5024_v48 = vpop.permute.xlu0 %5023 }
0x13c7   : > { %v5052_v19 = vsel %vm2061_vm6, %v5024_v48, 0.0 }
0x13c9   : > { %5021 = vrot.lane.b32.xlu1 %v4614_v9, %s9950_s2 }
0x13cd   : > { %5439 = vrot.lane.b32.xlu1 %v4997_v17, %s9951_s3 }
0x13d1   : > { %5025 = vrot.lane.b32.xlu1 %v5003_v52, %s9950_s2 }
0x13d5   : > { %5027 = vrot.lane.b32.xlu1 %v9288_v44, %s9950_s2 }
0x13d9   : > { %5447 = vrot.lane.b32.xlu1 %v4614_v9, %s9951_s3 }
0x13dd   : > { %5864 = vrot.lane.b32.xlu1 %v4997_v17, %s9928_s15 }
0x13e1   : > { %5451 = vrot.lane.b32.xlu1 %v5003_v52, %s9951_s3 }
0x13e5   : > { %5453 = vrot.lane.b32.xlu1 %v9288_v44, %s9951_s3 }
0x13e9   : > { %5872 = vrot.lane.b32.xlu1 %v4614_v9, %s9928_s15 }
0x13ed   : > { %5876 = vrot.lane.b32.xlu1 %v5003_v52, %s9928_s15 }
0x1411   : > { %4619 = vadd.xlane.f32.xlu1 %v4618_v34 }
0x1415   : > { %4628 = vadd.xlane.f32.xlu1 %v4627_v62 }
0x1419   : > { %4634 = vadd.xlane.f32.xlu1 %v4633_v20 }
0x141d   : > { %5041 = vadd.xlane.f32.xlu1 %v5040_v14 }
0x1423   : > { %v4644_v2 = vpop.permute.xlu1 %4643 }
0x1424   : > { %7645 = vmatpush3.xpose.msk.msra.mxu1 %vm2061_vm6, %v4644_v2 }
0x1425   : > { %7649 = vmatprep.subr.mxu1 %v9933_v57 }
0x1427   : > { %v5064_v5 = vpop.permute.xlu1 %5063  ;;  %7647 = vmatmul.mubr.msk.f32.vlgmr.msra.gmra.mxu1 %vm2061_vm6, %v9235_v33  ;;  %v5442_v33 = vpop.permute.xlu0 %5441 }
0x1428   : > { %7650 = vmatpush3.msra.mxu1 %v9338_v6  ;;  %7655 = vmatpush3.xpose.msk.msra.mxu0 %vm2061_vm6, %v5064_v5  ;;  %v5466_v56 = vsel %vm2061_vm6, %v5442_v33, 0.0 }
0x1429   : > { %7664 = vmatprep.subr.mxu0 %v9933_v57  ;;  %7651 = vmatprep.mubr.msk.f32.mxu1 %vm8062_vm0, %v9933_v57 }
0x142a   : > { %7659 = vmatprep.subr.mxu1 %v9933_v57 }
0x142b   : > { %v5490_v63 = vpop.permute.xlu1 %5489  ;;  %7657 = vmatmul.mubr.msk.f32.vlgmr.msra.gmra.mxu0 %vm2061_vm6, %v5062_v58  ;;  %v5444_v37 = vpop.permute.xlu0 %5443 }
0x142c   : > { %7665 = vmatpush3.xpose.msk.msra.mxu0 %vm2061_vm6, %v5490_v63  ;;  %7666 = vmatprep.mubr.msk.f32.mxu0 %vm8062_vm0, %v9933_v57  ;;  %v5469_v44 = vsel %vm2061_vm6, %v5444_v37, 0.0 }
0x142d   : > { %7674 = vmatprep.subr.mxu0 %v9933_v57 }
0x142f   : > { %v5915_v41 = vpop.permute.xlu1 %5914  ;;  %7667 = vmatmul.mubr.msk.f32.vlgmr.msra.gmra.mxu0 %vm2061_vm6, %v5488_v30  ;;  %v5446_v38 = vpop.permute.xlu0 %5445 }
0x1430   : > { %7675 = vmatpush3.xpose.msk.msra.mxu0 %vm2061_vm6, %v5915_v41  ;;  %7676 = vmatprep.mubr.msk.f32.mxu0 %vm8062_vm0, %v9933_v57  ;;  %v5472_v25 = vsel %vm2061_vm6, %v5446_v38, 0.0 }
0x1431   : > { %7684 = vmatprep.subr.mxu0 %v9933_v57 }
0x1433   : > { %7677 = vmatmul.mubr.msk.f32.vlgmr.msra.gmra.mxu0 %vm2061_vm6, %v5913_v43  ;;  %v5014_v55 = vpop.permute.xlu1 %5013  ;;  %v5450_v27 = vpop.permute.xlu0 %5449 }
0x1434   : > { %v5037_v39 = vsel %vm2061_vm6, %v5014_v55, 0.0  ;;  %7700 = vmatprep.mubr.msk.f32.mxu0 %vm8062_vm0, %v9933_v57  ;;  %v5478_v49 = vsel %vm2061_vm6, %v5450_v27, 0.0 }
0x1435   : > { %5038 = vadd.xlane.f32.xlu0 %v5037_v39 }
0x1437   : > { %v5018_v21 = vpop.permute.xlu1 %5017  ;;  %v5867_v9 = vpop.permute.xlu0 %5866 }
0x1438   : > { %v5043_v42 = vsel %vm2061_vm6, %v5018_v21, 0.0  ;;  %v5891_v24 = vsel %vm2061_vm6, %v5867_v9, 0.0 }
0x1439   : > { %4637 = vadd.xlane.f32.xlu0 %v4636_v46  ;;  %5044 = vadd.xlane.f32.xlu1 %v5043_v42 }
0x143b   : > { %v5022_v26 = vpop.permute.xlu1 %5021  ;;  %v5869_v23 = vpop.permute.xlu0 %5868 }
0x143c   : > { %v5049_v45 = vsel %vm2061_vm6, %v5022_v26, 0.0  ;;  %v5894_v34 = vsel %vm2061_vm6, %v5869_v23, 0.0 }
0x143d   : > { %5047 = vadd.xlane.f32.xlu1 %v5046_v22  ;;  %4640 = vadd.xlane.f32.xlu0 %v4639_v60 }
0x143f   : > { %v5440_v53 = vpop.permute.xlu1 %5439  ;;  %v5871_v58 = vpop.permute.xlu0 %5870 }
0x1440   : > { %v5463_v61 = vsel %vm2061_vm6, %v5440_v53, 0.0  ;;  %v5897_v32 = vsel %vm2061_vm6, %v5871_v58, 0.0 }
0x1441   : > { %5053 = vadd.xlane.f32.xlu1 %v5052_v19  ;;  %5050 = vadd.xlane.f32.xlu0 %v5049_v45 }
0x1443   : > { %v5026_v28 = vpop.permute.xlu1 %5025  ;;  %v5875_v62 = vpop.permute.xlu0 %5874 }
0x1444   : > { %v5055_v47 = vsel %vm2061_vm6, %v5026_v28, 0.0  ;;  %v5903_v16 = vsel %vm2061_vm6, %v5875_v62, 0.0 }
0x1445   : > { %5467 = vadd.xlane.f32.xlu1 %v5466_v56  ;;  %5464 = vadd.xlane.f32.xlu0 %v5463_v61 }
0x1447   : > { %v5028_v4 = vpop.permute.xlu1 %5027  ;;  %v5879_v7 = vpop.permute.xlu0 %5878 }
0x1448   : > { %v5058_v12 = vsel %vm2061_vm6, %v5028_v4, 0.0  ;;  %v5909_v48 = vsel %vm2061_vm6, %v5879_v7, 0.0 }
0x1449   : > { %5470 = vadd.xlane.f32.xlu1 %v5469_v44  ;;  %5056 = vadd.xlane.f32.xlu0 %v5055_v47  ;;  %v9954_v44 = vld [vmem:[#allocation44_spill] sm:$0xff] }
0x144b   : > { %v5448_v8 = vpop.permute.xlu1 %5447  ;;  %v4623_v33 = vpop.xlane.xlu0 %4622 }
0x144c   : > { %v5475_v17 = vsel %vm2061_vm6, %v5448_v8, 0.0 }
0x144d   : > { %5473 = vadd.xlane.f32.xlu1 %v5472_v25  ;;  %5059 = vadd.xlane.f32.xlu0 %v5058_v12  ;;  %v4660_v25 = vrot.slane %v4623_v33, %v9954_v44 }
0x144f   : > { %v5865_v29 = vpop.permute.xlu1 %5864  ;;  %v4626_v39 = vpop.xlane.xlu0 %4625 }
0x1450   : > { %v5888_v52 = vsel %vm2061_vm6, %v5865_v29, 0.0  ;;  %v4664_v29 = vrot.slane %v4626_v39, %v9954_v44 }
0x1451   : > { %5479 = vadd.xlane.f32.xlu1 %v5478_v49  ;;  %5476 = vadd.xlane.f32.xlu0 %v5475_v17 }
0x1453   : > { %v5452_v13 = vpop.permute.xlu1 %5451  ;;  %v4632_v21 = vpop.xlane.xlu0 %4631 }
0x1454   : > { %v5481_v43 = vsel %vm2061_vm6, %v5452_v13, 0.0 }
0x1455   : > { %5892 = vadd.xlane.f32.xlu1 %v5891_v24  ;;  %5889 = vadd.xlane.f32.xlu0 %v5888_v52 }
0x1457   : > { %v5454_v30 = vpop.permute.xlu1 %5453 }
0x1458   : > { %v5484_v14 = vsel %vm2061_vm6, %v5454_v30, 0.0 }
0x1459   : > { %5895 = vadd.xlane.f32.xlu1 %v5894_v34  ;;  %5482 = vadd.xlane.f32.xlu0 %v5481_v43 }
0x145b   : > { %v5873_v20 = vpop.permute.xlu1 %5872 }
0x145c   : > { %v5900_v2 = vsel %vm2061_vm6, %v5873_v20, 0.0  ;;  %v4672_v20 = vrot.slane %v4632_v21, %v9954_v44 }
0x145d   : > { %5898 = vadd.xlane.f32.xlu1 %v5897_v32  ;;  %5485 = vadd.xlane.f32.xlu0 %v5484_v14 }
0x145f   : > { %v5877_v5 = vpop.permute.xlu1 %5876 }
0x1460   : > { %v5906_v63 = vsel %vm2061_vm6, %v5877_v5, 0.0 }
0x1461   : > { %5904 = vadd.xlane.f32.xlu1 %v5903_v16  ;;  %5901 = vadd.xlane.f32.xlu0 %v5900_v2 }
0x1465   : > { %5910 = vadd.xlane.f32.xlu1 %v5909_v48  ;;  %5907 = vadd.xlane.f32.xlu0 %v5906_v63 }
0x149a   : > { %v4620_v41 = vpop.xlane.xlu1 %4619 }
0x149b   : > { %v4656_v47 = vrot.slane %v4620_v41, %v9954_v44 }
0x149d   : > { %v4685_v12 = vsel %vm2131_vm7, %v4660_v25, %v4656_v47 }
0x149e   : > { %v4629_v55 = vpop.xlane.xlu1 %4628  ;;  %v4686_v52 = vsel %vm2133_vm8, %v4664_v29, %v4685_v12 }
0x149f   : > { %v4668_v23 = vrot.slane %v4629_v55, %v9954_v44 }
0x14a1   : > { %v4687_v34 = vsel %vm2135_vm9, %v4668_v23, %v4686_v52 }
0x14a2   : > { %v4635_v37 = vpop.xlane.xlu1 %4634  ;;  %v4688_v41 = vsel %vm2137_vm10, %v4672_v20, %v4687_v34 }
0x14a3   : > { %v4676_v43 = vrot.slane %v4635_v37, %v9954_v44 }
0x14a5   : > { %v4689_v37 = vsel %vm2139_vm11, %v4676_v43, %v4688_v41 }
0x14a6   : > { %v5042_v46 = vpop.xlane.xlu1 %5041 }
0x14a7   : > { %v5080_v58 = vrot.slane %v5042_v46, %v9954_v44 }
0x14be   : > { %v5039_v42 = vpop.xlane.xlu0 %5038 }
0x14bf   : > { %v5076_v49 = vrot.slane %v5039_v42, %v9954_v44 }
0x14c1   : > { %v5105_v32 = vsel %vm2131_vm7, %v5080_v58, %v5076_v49 }
0x14c2   : > { %v4638_v26 = vpop.xlane.xlu0 %4637  ;;  %v5045_v22 = vpop.xlane.xlu1 %5044 }
0x14c3   : > { %v5084_v24 = vrot.slane %v5045_v22, %v9954_v44  ;;  %v4680_v14 = vrot.slane %v4638_v26, %v9954_v44 }
0x14c5   : > { %v5106_v7 = vsel %vm2133_vm8, %v5084_v24, %v5105_v32 }
0x14c6   : > { %v5048_v60 = vpop.xlane.xlu1 %5047  ;;  %v4641_v38 = vpop.xlane.xlu0 %4640 }
0x14c7   : > { %v5088_v30 = vrot.slane %v5048_v60, %v9954_v44  ;;  %v4684_v5 = vrot.slane %v4641_v38, %v9954_v44 }
0x14c9   : > { %v5107_v33 = vsel %vm2135_vm9, %v5088_v30, %v5106_v7 }
0x14ca   : > { %v5054_v53 = vpop.xlane.xlu1 %5053  ;;  %v5051_v19 = vpop.xlane.xlu0 %5050 }
0x14cb   : > { %v5092_v62 = vrot.slane %v5051_v19, %v9954_v44  ;;  %v5096_v55 = vrot.slane %v5054_v53, %v9954_v44  ;;  %v4690_v53 = vsel %vm2141_vm12, %v4680_v14, %v4689_v37 }
0x14cd   : > { %v5108_v21 = vsel %vm2137_vm10, %v5092_v62, %v5107_v33 }
0x14ce   : > { %v5468_v45 = vpop.xlane.xlu1 %5467  ;;  %v5465_v27 = vpop.xlane.xlu0 %5464  ;;  %v5109_v12 = vsel %vm2139_vm11, %v5096_v55, %v5108_v21 }
0x14cf   : > { %v5506_v48 = vrot.slane %v5468_v45, %v9954_v44  ;;  %v5502_v63 = vrot.slane %v5465_v27, %v9954_v44 }
0x14d1   : > { %v5531_v45 = vsel %vm2131_vm7, %v5506_v48, %v5502_v63 }
0x14d2   : > { %v5471_v28 = vpop.xlane.xlu1 %5470  ;;  %v5057_v56 = vpop.xlane.xlu0 %5056 }
0x14d3   : > { %v5510_v39 = vrot.slane %v5471_v28, %v9954_v44  ;;  %v5100_v46 = vrot.slane %v5057_v56, %v9954_v44  ;;  %v4691_v56 = vsel %vm2143_vm13, %v4684_v5, %v4690_v53 }
0x14d5   : > { %v5532_v47 = vsel %vm2133_vm8, %v5510_v39, %v5531_v45 }
0x14d6   : > { %v5474_v61 = vpop.xlane.xlu1 %5473  ;;  %v9387_v4 = vpop.xlane.xlu0 %5059 }
0x14d7   : > { %v5514_v42 = vrot.slane %v5474_v61, %v9954_v44  ;;  %v5104_v27 = vrot.slane %v9387_v4, %v9954_v44  ;;  %v5110_v4 = vsel %vm2141_vm12, %v5100_v46, %v5109_v12 }
0x14d9   : > { %v5533_v23 = vsel %vm2135_vm9, %v5514_v42, %v5532_v47 }
0x14da   : > { %v9390_v9 = vpop.xlane.xlu1 %5479  ;;  %v5477_v8 = vpop.xlane.xlu0 %5476 }
0x14db   : > { %v5518_v26 = vrot.slane %v5477_v8, %v9954_v44  ;;  %v5522_v29 = vrot.slane %v9390_v9, %v9954_v44  ;;  %v5111_v9 = vsel %vm2143_vm13, %v5104_v27, %v5110_v4 }
0x14de   : > { %v5893_v17 = vpop.xlane.xlu1 %5892  ;;  %v5890_v13 = vpop.xlane.xlu0 %5889 }
0x14df   : > { %v5931_v22 = vrot.slane %v5893_v17, %v9954_v44  ;;  %v5927_v60 = vrot.slane %v5890_v13, %v9954_v44  ;;  %v5534_v17 = vsel %vm2137_vm10, %v5518_v26, %v5533_v23 }
0x14e0   : > { %v5535_v41 = vsel %vm2139_vm11, %v5522_v29, %v5534_v17 }
0x14e1   : > { %v5956_v13 = vsel %vm2131_vm7, %v5931_v22, %v5927_v60 }
0x14e2   : > { %v5896_v16 = vpop.xlane.xlu1 %5895  ;;  %v5483_v2 = vpop.xlane.xlu0 %5482 }
0x14e3   : > { %v5935_v28 = vrot.slane %v5896_v16, %v9954_v44  ;;  %v5526_v24 = vrot.slane %v5483_v2, %v9954_v44 }
0x14e5   : > { %v5957_v34 = vsel %vm2133_vm8, %v5935_v28, %v5956_v13  ;;  %v5536_v37 = vsel %vm2141_vm12, %v5526_v24, %v5535_v41 }
0x14e6   : > { %v5899_v38 = vpop.xlane.xlu1 %5898  ;;  %v5486_v19 = vpop.xlane.xlu0 %5485 }
0x14e7   : > { %v4763_v61 = vpop.f32.mrf.mxu1  ;;  %v5939_v8 = vrot.slane %v5899_v38, %v9954_v44  ;;  %v5530_v43 = vrot.slane %v5486_v19, %v9954_v44 }
0x14e8   : > { %v4764_v25 = vadd.f32 %v4763_v61, %v4691_v56 }
0x14e9   : > { %v7648_v49 = vpop.f32.mrf.mxu1  ;;  %v5958_v32 = vsel %vm2135_vm9, %v5939_v8, %v5957_v34  ;;  %v5537_v42 = vsel %vm2143_vm13, %v5530_v43, %v5536_v37 }
0x14ea   : > { %v4767_v52 = vmul.f32 0.25, %v4764_v25  ;;  %v5905_v58 = vpop.xlane.xlu1 %5904  ;;  %v5902_v30 = vpop.xlane.xlu0 %5901 }
0x14eb   : > { %v5943_v62 = vrot.slane %v5902_v30, %v9954_v44  ;;  %v5183_v20 = vpop.f32.mrf.mxu0  ;;  %v5947_v14 = vrot.slane %v5905_v58, %v9954_v44 }
0x14ec   : > { %v5184_v16 = vadd.f32 %v5183_v20, %v5111_v9  ;;  %v4768_v2 = vsel %vm1512_vm14, %v4767_v52, -1e+30 }
0x14ed   : > { %v5959_v5 = vsel %vm2137_vm10, %v5943_v62, %v5958_v32  ;;  %v7658_v48 = vpop.f32.mrf.mxu0  ;;  %v4769_v63 = vsel %vm1204_vm2, %v4768_v2, -inf }
0x14ee   : > { %v5187_v33 = vmul.f32 0.25, %v5184_v16  ;;  %v5911_v55 = vpop.xlane.xlu1 %5910  ;;  %4770 = vmax.xlane.f32.xlu0 %v4769_v63  ;;  %v5908_v39 = vpop.xlane.xlu0 %5907  ;;  %v5960_v38 = vsel %vm2139_vm11, %v5947_v14, %v5959_v5 }
0x14ef   : > { %v5955_v21 = vrot.slane %v5911_v55, %v9954_v44  ;;  %v5951_v46 = vrot.slane %v5908_v39, %v9954_v44  ;;  %v5609_v26 = vpop.f32.mrf.mxu0 }
0x14f0   : > { %v5610_v22 = vadd.f32 %v5609_v26, %v5537_v42  ;;  %v5188_v60 = vsel %vm1512_vm14, %v5187_v33, -1e+30 }
0x14f1   : > { %v7668_v19 = vpop.f32.mrf.mxu0  ;;  %v5189_v53 = vsel %vm1204_vm2, %v5188_v60, -inf  ;;  %v5961_v45 = vsel %vm2141_vm12, %v5951_v46, %v5960_v38 }
0x14f2   : > { %v5613_v27 = vmul.f32 0.25, %v5610_v22  ;;  %5190 = vmax.xlane.f32.xlu1 %v5189_v53  ;;  %v5962_v28 = vsel %vm2143_vm13, %v5955_v21, %v5961_v45  ;;  %v9956_v19 = vld [vmem:[#allocation46_spill] sm:$0xff] }
0x14f3   : > { %v6034_v56 = vpop.f32.mrf.mxu0 }
0x14f4   : > { %v6035_v44 = vadd.f32 %v6034_v56, %v5962_v28  ;;  %v5614_v61 = vsel %vm1512_vm14, %v5613_v27, -1e+30  ;;  %v9957_v27 = vld [vmem:[#allocation47_spill] sm:$0xff] }
0x14f5   : > { %v7678_v47 = vpop.f32.mrf.mxu0  ;;  %v5615_v8 = vsel %vm1204_vm2, %v5614_v61, -inf }
0x14f6   : > { %v6038_v25 = vmul.f32 0.25, %v6035_v44  ;;  %5616 = vmax.xlane.f32.xlu0 %v5615_v8 }
0x14f8   : > { %v6039_v12 = vsel %vm1512_vm14, %v6038_v25, -1e+30 }
0x14f9   : > { %v6040_v23 = vsel %vm1204_vm2, %v6039_v12, -inf }
0x14fa   : > { %6041 = vmax.xlane.f32.xlu1 %v6040_v23 }
0x1577   : > { %v4771_v29 = vpop.xlane.xlu0 %4770 }
0x1578   : > { %v4772_v49 = vsub.f32 %v4768_v2, %v4771_v29 }
0x157a   : > { %v4773_v4 = vmul.f32 1.442695, %v4772_v49 }
0x157b   : > { %v5191_v17 = vpop.xlane.xlu1 %5190 }
0x157c   : > { %7904 = vpow2.f32 %v4773_v4  ;;  %v5192_v13 = vsub.f32 %v5188_v60, %v5191_v17 }
0x157e   : > { %v5193_v24 = vmul.f32 1.442695, %v5192_v13 }
0x157f   : > { %v5617_v52 = vpop.xlane.xlu0 %5616 }
0x1580   : > { %7906 = vpow2.f32 %v5193_v24  ;;  %v5618_v58 = vsub.f32 %v5614_v61, %v5617_v52 }
0x1582   : > { %v5619_v30 = vmul.f32 1.442695, %v5618_v58 }
0x1583   : > { %v6042_v14 = vpop.xlane.xlu1 %6041 }
0x1584   : > { %7908 = vpow2.f32 %v5619_v30  ;;  %v6043_v16 = vsub.f32 %v6039_v12, %v6042_v14 }
0x1586   : > { %v6044_v7 = vmul.f32 1.442695, %v6043_v16 }
0x1588   : > { %7910 = vpow2.f32 %v6044_v7 }
0x1589   : > { %v7905_v34 = vpop.eup %7904 }
0x158a   : > { %v4775_v43 = vsel %vm1204_vm2, %v7905_v34, 0.0 }
0x158b   : > { %4776 = vadd.xlane.f32.xlu0 %v4775_v43 }
0x158d   : > { %v7907_v62 = vpop.eup %7906 }
0x158e   : > { %v5195_v9 = vsel %vm1204_vm2, %v7907_v62, 0.0 }
0x158f   : > { %5196 = vadd.xlane.f32.xlu1 %v5195_v9 }
0x1591   : > { %v7909_v20 = vpop.eup %7908 }
0x1592   : > { %v5621_v32 = vsel %vm1204_vm2, %v7909_v20, 0.0 }
0x1593   : > { %5622 = vadd.xlane.f32.xlu0 %v5621_v32 }
0x1595   : > { %v9472_v2 = vpop.eup %7910 }
0x1596   : > { %v6046_v5 = vsel %vm1204_vm2, %v9472_v2, 0.0 }
0x15a0   : > { %5746 = vrot.lane.b32.xlu1 %v9338_v6, %s9951_s3 }
0x15a9   : > { %5321 = vrot.lane.b32.xlu0 %v9338_v6, %s9950_s2 }
0x15c4   : > { %6047 = vadd.xlane.f32.xlu1 %v6046_v5 }
0x15d5   : > { %6171 = vrot.lane.b32.xlu1 %v9338_v6, %s9928_s15 }
0x1614   : > { %v4777_v48 = vpop.xlane.xlu0 %4776 }
0x1615   : > { %7912 = vrcp.f32 %v4777_v48 }
0x1618   : > { %v5197_v63 = vpop.xlane.xlu1 %5196 }
0x1619   : > { %7914 = vrcp.f32 %v5197_v63 }
0x161c   : > { %v5623_v41 = vpop.xlane.xlu0 %5622  ;;  %v5747_v6 = vpop.permute.xlu1 %5746 }
0x161d   : > { %7916 = vrcp.f32 %v5623_v41 }
0x1620   : > { %v5322_v39 = vpop.permute.xlu0 %5321 }
0x1622   : > { %v7913_v33 = vpop.eup %7912 }
0x1623   : > { %v9478_v55 = vmul.f32 %v7913_v33, %v7905_v34 }
0x1625   : > { %7652 = vmatmul.mubr.msk.f32.vlgmr.msra.gmra.mxu1 %vm1204_vm2, %v9478_v55 }
0x1626   : > { %v7915_v37 = vpop.eup %7914  ;;  %7660 = vmatpush3.msra.mxu1 %v5322_v39  ;;  %7661 = vmatprep.mubr.msk.f32.mxu1 %vm8062_vm0, %v9933_v57 }
0x1627   : > { %v5199_v21 = vmul.f32 %v7915_v37, %v7907_v62  ;;  %7669 = vmatprep.subr.mxu1 %v9933_v57 }
0x1629   : > { %7662 = vmatmul.mubr.msk.f32.vlgmr.msra.gmra.mxu1 %vm1204_vm2, %v5199_v21  ;;  %v5210_v46 = vrot.slane %v5199_v21, %v8588_v59  ;;  %v5203_v42 = vrot.slane %v5199_v21, %v8414_v54  ;;  %v5224_v60 = vrot.slane %v5199_v21, %v8828_v18  ;;  %v5217_v38 = vrot.slane %v5199_v21, %v8818_v15 }
0x162a   : > { %v7917_v26 = vpop.eup %7916  ;;  %7670 = vmatpush3.msra.mxu1 %v5747_v6  ;;  %7671 = vmatprep.mubr.msk.f32.mxu1 %vm8062_vm0, %v9933_v57  ;;  %v5231_v53 = vrot.slane %v5199_v21, %v9956_v19  ;;  %v5238_v45 = vrot.slane %v5199_v21, %v8840_v31  ;;  %v5245_v28 = vrot.slane %v5199_v21, %v9957_v27 }
0x162b   : > { %v5625_v22 = vmul.f32 %v7917_v26, %v7909_v20  ;;  %5212 = vbcast.lane.b32.xlu1 %v5210_v46, 256  ;;  %5205 = vbcast.lane.b32.xlu0 %v5203_v42, 256  ;;  %v5252_v56 = vrot.slane %v5199_v21, %v8852_v50 }
0x162c   : > { %7679 = vmatprep.subr.mxu1 %v9933_v57 }
0x162d   : > { %7672 = vmatmul.mubr.msk.f32.vlgmr.msra.gmra.mxu1 %vm1204_vm2, %v5625_v22  ;;  %v5636_v44 = vrot.slane %v5625_v22, %v8588_v59  ;;  %v5629_v61 = vrot.slane %v5625_v22, %v8414_v54  ;;  %v5643_v47 = vrot.slane %v5625_v22, %v8818_v15  ;;  %v5657_v8 = vrot.slane %v5625_v22, %v9956_v19 }
0x162e   : > { %7681 = vmatprep.mubr.msk.f32.mxu1 %vm8062_vm0, %v9933_v57  ;;  %v5650_v25 = vrot.slane %v5625_v22, %v8828_v18  ;;  %v5671_v12 = vrot.slane %v5625_v22, %v9957_v27  ;;  %v5664_v23 = vrot.slane %v5625_v22, %v8840_v31  ;;  %v5678_v29 = vrot.slane %v5625_v22, %v8852_v50 }
0x162f   : > { %5226 = vbcast.lane.b32.xlu1 %v5224_v60, 256  ;;  %5219 = vbcast.lane.b32.xlu0 %v5217_v38, 256 }
0x1633   : > { %5233 = vbcast.lane.b32.xlu1 %v5231_v53, 256  ;;  %5240 = vbcast.lane.b32.xlu0 %v5238_v45, 256 }
0x1637   : > { %5247 = vbcast.lane.b32.xlu1 %v5245_v28, 256  ;;  %5254 = vbcast.lane.b32.xlu0 %v5252_v56, 256 }
0x163b   : > { %5638 = vbcast.lane.b32.xlu0 %v5636_v44, 256  ;;  %5631 = vbcast.lane.b32.xlu1 %v5629_v61, 256 }
0x163f   : > { %5645 = vbcast.lane.b32.xlu0 %v5643_v47, 256  ;;  %5659 = vbcast.lane.b32.xlu1 %v5657_v8, 256 }
0x1643   : > { %5652 = vbcast.lane.b32.xlu0 %v5650_v25, 256  ;;  %5673 = vbcast.lane.b32.xlu1 %v5671_v12, 256 }
0x1647   : > { %5666 = vbcast.lane.b32.xlu0 %v5664_v23, 256  ;;  %5680 = vbcast.lane.b32.xlu1 %v5678_v29, 256 }
0x164d   : > { %v6048_v49 = vpop.xlane.xlu1 %6047 }
0x164e   : > { %7918 = vrcp.f32 %v6048_v49 }
0x1651   : > { %v6172_v4 = vpop.permute.xlu1 %6171 }
0x1652   : > { %7680 = vmatpush3.msra.mxu1 %v6172_v4 }
0x1653   : > { %7703 = vmatprep.subr.mxu1 %v9933_v57 }
0x165b   : > { %v7919_v17 = vpop.eup %7918 }
0x165c   : > { %v6050_v13 = vmul.f32 %v7919_v17, %v9472_v2 }
0x165e   : > { %7682 = vmatmul.mubr.msk.f32.vlgmr.msra.gmra.mxu1 %vm1204_vm2, %v6050_v13  ;;  %v6061_v24 = vrot.slane %v6050_v13, %v8588_v59  ;;  %v6054_v52 = vrot.slane %v6050_v13, %v8414_v54  ;;  %v6075_v58 = vrot.slane %v6050_v13, %v8828_v18  ;;  %v6068_v30 = vrot.slane %v6050_v13, %v8818_v15 }
0x165f   : > { %7711 = vmatprep.mubr.msk.f32.mxu1 %vm8062_vm0, %v9933_v57  ;;  %v6089_v34 = vrot.slane %v6050_v13, %v8840_v31  ;;  %v6082_v43 = vrot.slane %v6050_v13, %v9956_v19  ;;  %v6096_v62 = vrot.slane %v6050_v13, %v9957_v27  ;;  %v6103_v9 = vrot.slane %v6050_v13, %v8852_v50 }
0x1660   : > { %6063 = vbcast.lane.b32.xlu0 %v6061_v24, 256  ;;  %6056 = vbcast.lane.b32.xlu1 %v6054_v52, 256  ;;  %vm9958_vm2 = vcmask 523648  }
0x1661   : > { %vm9959_vm14 = vmmov %vm9958_vm2 }
0x1664   : > { %6077 = vbcast.lane.b32.xlu0 %v6075_v58, 256  ;;  %6070 = vbcast.lane.b32.xlu1 %v6068_v30, 256 }
0x1668   : > { %6091 = vbcast.lane.b32.xlu0 %v6089_v34, 256  ;;  %6084 = vbcast.lane.b32.xlu1 %v6082_v43, 256 }
0x166c   : > { %6098 = vbcast.lane.b32.xlu0 %v6096_v62, 256  ;;  %6105 = vbcast.lane.b32.xlu1 %v6103_v9, 256 }
0x169d   : > { %v5213_v20 = vpop.permute.xlu1 %5212  ;;  %v5206_v32 = vpop.permute.xlu0 %5205 }
0x169e   : > { %v5257_v14 = vmul.f32 %v5213_v20, %v9251_v11  ;;  %v5256_v16 = vmul.f32 %v5206_v32, %v9307_v3 }
0x16a0   : > { %v5271_v7 = vsel %vm2717_vm3, %v5257_v14, 0.0  ;;  %v5264_v2 = vsel %vm2717_vm3, %v5256_v16, 0.0 }
0x16a1   : > { %v5272_v5 = vrot.slane %v5271_v7, 4  ;;  %v5265_v48 = vrot.slane %v5264_v2, 4  ;;  %v5227_v63 = vpop.permute.xlu1 %5226  ;;  %v5220_v41 = vpop.permute.xlu0 %5219 }
0x16a2   : > { %v5259_v33 = vmul.f32 %v5227_v63, %v9257_v10  ;;  %v5258_v39 = vmul.f32 %v9272_v1, %v5220_v41 }
0x16a3   : > { %v5273_v37 = vadd.f32 %v5272_v5, %v5271_v7  ;;  %v5266_v21 = vadd.f32 %v5265_v48, %v5264_v2 }
0x16a4   : > { %v5285_v6 = vsel %vm2717_vm3, %v5259_v33, 0.0  ;;  %v5278_v46 = vsel %vm2717_vm3, %v5258_v39, 0.0 }
0x16a5   : > { %v5274_v42 = vrot.slane %v5273_v37, 2  ;;  %v5267_v26 = vrot.slane %v5266_v21, 2  ;;  %v5286_v22 = vrot.slane %v5285_v6, 4  ;;  %v5279_v60 = vrot.slane %v5278_v46, 4  ;;  %v5234_v38 = vpop.permute.xlu1 %5233  ;;  %v5241_v53 = vpop.permute.xlu0 %5240 }
0x16a6   : > { %v5260_v45 = vmul.f32 %v5234_v38, %v9295_v0  ;;  %v5261_v28 = vmul.f32 %v5241_v53, %v9266_v35 }
0x16a7   : > { %v5275_v56 = vadd.f32 %v5274_v42, %v5273_v37  ;;  %v5268_v44 = vadd.f32 %v5267_v26, %v5266_v21  ;;  %v5287_v61 = vadd.f32 %v5286_v22, %v5285_v6  ;;  %v5280_v47 = vadd.f32 %v5279_v60, %v5278_v46 }
0x16a8   : > { %v5292_v8 = vsel %vm2717_vm3, %v5260_v45, 0.0  ;;  %v5299_v25 = vsel %vm2717_vm3, %v5261_v28, 0.0 }
0x16a9   : > { %v5276_v12 = vrot.slane %v5275_v56, 1  ;;  %v5269_v23 = vrot.slane %v5268_v44, 1  ;;  %v5288_v29 = vrot.slane %v5287_v61, 2  ;;  %v5281_v49 = vrot.slane %v5280_v47, 2  ;;  %v5248_v4 = vpop.permute.xlu1 %5247  ;;  %v5255_v17 = vpop.permute.xlu0 %5254 }
0x16aa   : > { %v5293_v13 = vrot.slane %v5292_v8, 4  ;;  %v5300_v24 = vrot.slane %v5299_v25, 4  ;;  %v5262_v52 = vmul.f32 %v5248_v4, %v9315_v40  ;;  %v5263_v35 = vmul.f32 %v9285_v36, %v5255_v17 }
0x16ab   : > { %v5277_v58 = vadd.f32 %v5276_v12, %v5275_v56  ;;  %v5289_v30 = vadd.f32 %v5288_v29, %v5287_v61  ;;  %v5282_v34 = vadd.f32 %v5281_v49, %v5280_v47  ;;  %v5270_v32 = vadd.f32 %v5269_v23, %v5268_v44 }
0x16ac   : > { %v5294_v43 = vadd.f32 %v5293_v13, %v5292_v8  ;;  %v5301_v62 = vadd.f32 %v5300_v24, %v5299_v25  ;;  %v5306_v9 = vsel %vm2717_vm3, %v5262_v52, 0.0  ;;  %v5313_v20 = vsel %vm2717_vm3, %v5263_v35, 0.0  ;;  %vm9961_vm3 = vmmov %vm9958_vm2 }
0x16ad   : > { %v5290_v14 = vrot.slane %v5289_v30, 1  ;;  %v5283_v16 = vrot.slane %v5282_v34, 1  ;;  %v5307_v7 = vrot.slane %v5306_v9, 4  ;;  %v5632_v2 = vpop.permute.xlu1 %5631  ;;  %v5639_v5 = vpop.permute.xlu0 %5638  ;;  %v5314_v41 = vrot.slane %v5313_v20, 4 }
0x16ae   : > { %v5295_v48 = vrot.slane %v5294_v43, 2  ;;  %v5302_v63 = vrot.slane %v5301_v62, 2  ;;  %v5682_v33 = vmul.f32 %v5632_v2, %v9307_v3  ;;  %v5683_v37 = vmul.f32 %v5639_v5, %v9251_v11 }
0x16af   : > { %v5308_v39 = vadd.f32 %v5307_v7, %v5306_v9  ;;  %v5315_v46 = vadd.f32 %v5314_v41, %v5313_v20  ;;  %v5332_v26 = vsel %vm2131_vm7, %v5277_v58, %v5270_v32  ;;  %v5291_v28 = vadd.f32 %v5290_v14, %v5289_v30 }
0x16b0   : > { %v5296_v21 = vadd.f32 %v5295_v48, %v5294_v43  ;;  %v5303_v6 = vadd.f32 %v5302_v63, %v5301_v62  ;;  %v5690_v42 = vsel %vm3144_vm15, %v5682_v33, 0.0  ;;  %v5697_v38 = vsel %vm3144_vm15, %v5683_v37, 0.0 }
0x16b1   : > { %v5309_v22 = vrot.slane %v5308_v39, 2  ;;  %v5691_v60 = vrot.slane %v5690_v42, 4  ;;  %v5660_v53 = vpop.permute.xlu1 %5659  ;;  %v5646_v45 = vpop.permute.xlu0 %5645  ;;  %v5284_v56 = vadd.f32 %v5283_v16, %v5282_v34  ;;  %v5316_v44 = vrot.slane %v5315_v46, 2 }
0x16b2   : > { %v5698_v3 = vrot.slane %v5697_v38, 4  ;;  %v5686_v11 = vmul.f32 %v5660_v53, %v9295_v0  ;;  %v5684_v8 = vmul.f32 %v5646_v45, %v9272_v1  ;;  %v5297_v25 = vrot.slane %v5296_v21, 1 }
0x16b3   : > { %v5310_v61 = vadd.f32 %v5309_v22, %v5308_v39  ;;  %v5692_v47 = vadd.f32 %v5691_v60, %v5690_v42  ;;  %v5304_v12 = vrot.slane %v5303_v6, 1  ;;  %v5317_v23 = vadd.f32 %v5316_v44, %v5315_v46 }
0x16b4   : > { %v5699_v29 = vadd.f32 %v5698_v3, %v5697_v38  ;;  %v5718_v17 = vsel %vm3144_vm15, %v5686_v11, 0.0  ;;  %v5704_v13 = vsel %vm3144_vm15, %v5684_v8, 0.0  ;;  %v5333_v0 = vsel %vm2133_vm8, %v5284_v56, %v5332_v26 }
0x16b5   : > { %v5311_v49 = vrot.slane %v5310_v61, 1  ;;  %v5693_v4 = vrot.slane %v5692_v47, 2  ;;  %v5674_v24 = vpop.permute.xlu1 %5673  ;;  %v5653_v52 = vpop.permute.xlu0 %5652  ;;  %v5318_v35 = vrot.slane %v5317_v23, 1  ;;  %v5719_v30 = vrot.slane %v5718_v17, 4 }
0x16b6   : > { %v5700_v58 = vrot.slane %v5699_v29, 2  ;;  %v5705_v34 = vrot.slane %v5704_v13, 4  ;;  %v5688_v1 = vmul.f32 %v5674_v24, %v9315_v40  ;;  %v5685_v62 = vmul.f32 %v5653_v52, %v9257_v10  ;;  %v9552_v10 = vld [vmem:[#allocation2 + $0x28] sm:$0xff] }
0x16b7   : > { %v5694_v43 = vadd.f32 %v5693_v4, %v5692_v47  ;;  %v5298_v9 = vadd.f32 %v5297_v25, %v5296_v21  ;;  %v5720_v32 = vadd.f32 %v5719_v30, %v5718_v17  ;;  %v5305_v16 = vadd.f32 %v5304_v12, %v5303_v6 }
0x16b8   : > { %v5701_v20 = vadd.f32 %v5700_v58, %v5699_v29  ;;  %v5706_v14 = vadd.f32 %v5705_v34, %v5704_v13  ;;  %v5312_v7 = vadd.f32 %v5311_v49, %v5310_v61  ;;  %v5732_v2 = vsel %vm3144_vm15, %v5688_v1, 0.0 }
0x16b9   : > { %v5711_v5 = vsel %vm3144_vm15, %v5685_v62, 0.0  ;;  %v5681_v48 = vpop.permute.xlu1 %5680  ;;  %v5667_v63 = vpop.permute.xlu0 %5666  ;;  %v5319_v41 = vadd.f32 %v5318_v35, %v5317_v23  ;;  %v5695_v33 = vrot.slane %v5694_v43, 1  ;;  %v5733_v37 = vrot.slane %v5732_v2, 4 }
0x16ba   : > { %v5707_v39 = vrot.slane %v5706_v14, 2  ;;  %v5712_v46 = vrot.slane %v5711_v5, 4  ;;  %v5689_v40 = vmul.f32 %v9285_v36, %v5681_v48  ;;  %v5687_v21 = vmul.f32 %v9552_v10, %v5667_v63 }
0x16bb   : > { %v5334_v6 = vsel %vm2135_vm9, %v5291_v28, %v5333_v0  ;;  %v5702_v42 = vrot.slane %v5701_v20, 1  ;;  %v5721_v26 = vrot.slane %v5720_v32, 2  ;;  %v5734_v60 = vadd.f32 %v5733_v37, %v5732_v2 }
0x16bc   : > { %v5708_v22 = vadd.f32 %v5707_v39, %v5706_v14  ;;  %v5713_v38 = vadd.f32 %v5712_v46, %v5711_v5  ;;  %v5739_v53 = vsel %vm3144_vm15, %v5689_v40, 0.0  ;;  %v5725_v45 = vsel %vm3144_vm15, %v5687_v21, 0.0  ;;  %v9573_v46 = vld [vmem:[#allocation2] sm:$0xff]  ;;  %v9576_v21 = vld [vmem:[#allocation2 + $0x8] sm:$0xff]  ;;  %vm9960_vm15 = vmmov %vm9958_vm2 }
0x16bd   : > { %v5335_v56 = vsel %vm2137_vm10, %v5298_v9, %v5334_v6  ;;  %v5735_v3 = vrot.slane %v5734_v60, 2  ;;  %v5740_v61 = vrot.slane %v5739_v53, 4  ;;  %v5726_v47 = vrot.slane %v5725_v45, 4 }
0x16be   : > { %v5709_v44 = vrot.slane %v5708_v22, 1  ;;  %v5714_v36 = vrot.slane %v5713_v38, 2  ;;  %v5336_v11 = vsel %vm2139_vm11, %v5305_v16, %v5335_v56  ;;  %v5696_v8 = vadd.f32 %v5695_v33, %v5694_v43  ;;  %v9583_v56 = vld [vmem:[#allocation2 + $0x10] sm:$0xff] }
0x16bf   : > { %v5703_v28 = vadd.f32 %v5702_v42, %v5701_v20  ;;  %v5722_v25 = vadd.f32 %v5721_v26, %v5720_v32  ;;  %v5337_v12 = vsel %vm2141_vm12, %v5312_v7, %v5336_v11  ;;  %v5741_v29 = vadd.f32 %v5740_v61, %v5739_v53 }
0x16c0   : > { %v5715_v23 = vadd.f32 %v5714_v36, %v5713_v38  ;;  %v5727_v49 = vadd.f32 %v5726_v47, %v5725_v45  ;;  %v5338_v4 = vsel %vm2143_vm13, %v5319_v41, %v5337_v12  ;;  %v5710_v17 = vadd.f32 %v5709_v44, %v5708_v22 }
0x16c1   : > { %v5736_v13 = vadd.f32 %v5735_v3, %v5734_v60  ;;  %5339 = vrot.lane.b32.xlu0 %v5338_v4, %s9950_s2  ;;  %v5742_v52 = vrot.slane %v5741_v29, 2  ;;  %v5723_v58 = vrot.slane %v5722_v25, 1  ;;  %v5757_v30 = vsel %vm2131_vm7, %v5703_v28, %v5696_v8  ;;  %v9586_v3 = vld [vmem:[#allocation2 + $0x18] sm:$0xff] }
0x16c2   : > { %v5716_v24 = vrot.slane %v5715_v23, 1  ;;  %v5728_v35 = vrot.slane %v5727_v49, 2  ;;  %v5758_v1 = vsel %vm2133_vm8, %v5710_v17, %v5757_v30  ;;  %v4783_v33 = vrot.slane %v9478_v55, %v8414_v54  ;;  %v9593_v17 = vld [vmem:[#allocation2 + $0x20] sm:$0xff] }
0x16c3   : > { %v5743_v0 = vadd.f32 %v5742_v52, %v5741_v29  ;;  %v5737_v62 = vrot.slane %v5736_v13, 1  ;;  %v5724_v14 = vadd.f32 %v5723_v58, %v5722_v25  ;;  %v4797_v42 = vrot.slane %v9478_v55, %v8818_v15 }
0x16c4   : > { %v5717_v34 = vadd.f32 %v5716_v24, %v5715_v23  ;;  %v5729_v43 = vadd.f32 %v5728_v35, %v5727_v49  ;;  %v4811_v11 = vrot.slane %v9478_v55, %v9956_v19  ;;  %v4825_v19 = vrot.slane %v9478_v55, %v9957_v27 }
0x16c5   : > { %v5744_v20 = vrot.slane %v5743_v0, 1  ;;  %v5738_v7 = vadd.f32 %v5737_v62, %v5736_v13 }
0x16c6   : > { %v5759_v9 = vsel %vm2135_vm9, %v5717_v34, %v5758_v1  ;;  %v5730_v32 = vrot.slane %v5729_v43, 1 }
0x16c7   : > { %v5760_v2 = vsel %vm2137_vm10, %v5724_v14, %v5759_v9  ;;  %v5745_v5 = vadd.f32 %v5744_v20, %v5743_v0 }
0x16c8   : > { %v5731_v16 = vadd.f32 %v5730_v32, %v5729_v43 }
0x16ca   : > { %v5761_v48 = vsel %vm2139_vm11, %v5731_v16, %v5760_v2  ;;  %v9604_v2 = vld [vmem:[#allocation2 + $0x30] sm:$0xff] }
0x16cb   : > { %v5762_v63 = vsel %vm2141_vm12, %v5738_v7, %v5761_v48  ;;  %v9601_v7 = vld [vmem:[#allocation2 + $0x38] sm:$0xff] }
0x16cc   : > { %v5763_v41 = vsel %vm2143_vm13, %v5745_v5, %v5762_v63 }
0x16cd   : > { %5764 = vrot.lane.b32.xlu1 %v5763_v41, %s9951_s3  ;;  %s9966_s3 = sld [smem:[#allocation33_spill]] }
0x16d1   : > { %4785 = vbcast.lane.b32.xlu1 %v4783_v33, 256 }
0x16d2   : > { %v6057_v39 = vpop.permute.xlu1 %6056  ;;  %v6064_v37 = vpop.permute.xlu0 %6063 }
0x16d3   : > { %v6107_v40 = vmul.f32 %v9573_v46, %v6057_v39  ;;  %v6108_v6 = vmul.f32 %v9576_v21, %v6064_v37 }
0x16d5   : > { %v6115_v26 = vsel %vm9958_vm2, %v6107_v40, 0.0  ;;  %v6122_v22 = vsel %vm9959_vm14, %v6108_v6, 0.0  ;;  %4799 = vbcast.lane.b32.xlu1 %v4797_v42, 256  ;;  %vm9962_vm14 = vmmov %vm9958_vm2 }
0x16d6   : > { %v6116_v60 = vrot.slane %v6115_v26, 4  ;;  %v6123_v38 = vrot.slane %v6122_v22, 4  ;;  %v6071_v53 = vpop.permute.xlu1 %6070  ;;  %v6078_v45 = vpop.permute.xlu0 %6077 }
0x16d7   : > { %v6109_v44 = vmul.f32 %v9583_v56, %v6071_v53  ;;  %v6110_v36 = vmul.f32 %v9586_v3, %v6078_v45 }
0x16d8   : > { %v6117_v61 = vadd.f32 %v6116_v60, %v6115_v26  ;;  %v6124_v47 = vadd.f32 %v6123_v38, %v6122_v22 }
0x16d9   : > { %v6129_v8 = vsel %vm9960_vm15, %v6109_v44, 0.0  ;;  %v6136_v28 = vsel %vm9961_vm3, %v6110_v36, 0.0  ;;  %4813 = vbcast.lane.b32.xlu1 %v4811_v11, 256  ;;  %vm9963_vm15 = vmmov %vm9958_vm2 }
0x16da   : > { %v6118_v25 = vrot.slane %v6117_v61, 2  ;;  %v6125_v12 = vrot.slane %v6124_v47, 2  ;;  %v6130_v23 = vrot.slane %v6129_v8, 4  ;;  %v6137_v29 = vrot.slane %v6136_v28, 4  ;;  %v6085_v49 = vpop.permute.xlu1 %6084  ;;  %v6092_v4 = vpop.permute.xlu0 %6091  ;;  %vm9964_vm3 = vmmov %vm9958_vm2 }
0x16db   : > { %v6111_v13 = vmul.f32 %v9593_v17, %v6085_v49  ;;  %v6112_v24 = vmul.f32 %v9552_v10, %v6092_v4 }
0x16dc   : > { %v6119_v52 = vadd.f32 %v6118_v25, %v6117_v61  ;;  %v6126_v35 = vadd.f32 %v6125_v12, %v6124_v47  ;;  %v6131_v58 = vadd.f32 %v6130_v23, %v6129_v8  ;;  %v6138_v30 = vadd.f32 %v6137_v29, %v6136_v28 }
0x16dd   : > { %v6143_v34 = vsel %vm9958_vm2, %v6111_v13, 0.0  ;;  %v6150_v0 = vsel %vm9962_vm14, %v6112_v24, 0.0  ;;  %4827 = vbcast.lane.b32.xlu1 %v4825_v19, 256 }
0x16de   : > { %v6120_v43 = vrot.slane %v6119_v52, 1  ;;  %v6127_v1 = vrot.slane %v6126_v35, 1  ;;  %v6132_v62 = vrot.slane %v6131_v58, 2  ;;  %v6139_v9 = vrot.slane %v6138_v30, 2  ;;  %v6106_v20 = vpop.permute.xlu1 %6105  ;;  %v6099_v32 = vpop.permute.xlu0 %6098 }
0x16df   : > { %v6144_v14 = vrot.slane %v6143_v34, 4  ;;  %v6151_v16 = vrot.slane %v6150_v0, 4  ;;  %v6114_v27 = vmul.f32 %v9601_v7, %v6106_v20  ;;  %v6113_v5 = vmul.f32 %v9604_v2, %v6099_v32 }
0x16e0   : > { %v6121_v48 = vadd.f32 %v6120_v43, %v6119_v52  ;;  %v6133_v63 = vadd.f32 %v6132_v62, %v6131_v58  ;;  %v6140_v41 = vadd.f32 %v6139_v9, %v6138_v30  ;;  %v6128_v6 = vadd.f32 %v6127_v1, %v6126_v35 }
0x16e1   : > { %v6145_v33 = vadd.f32 %v6144_v14, %v6143_v34  ;;  %v6152_v39 = vadd.f32 %v6151_v16, %v6150_v0  ;;  %v6164_v37 = vsel %vm9963_vm15, %v6114_v27, 0.0  ;;  %v6157_v40 = vsel %vm9964_vm3, %v6113_v5, 0.0 }
0x16e2   : > { %v6134_v42 = vrot.slane %v6133_v63, 1  ;;  %v6141_v26 = vrot.slane %v6140_v41, 1  ;;  %v6165_v22 = vrot.slane %v6164_v37, 4  ;;  %v6158_v53 = vrot.slane %v6157_v40, 4 }
0x16e3   : > { %v6146_v60 = vrot.slane %v6145_v33, 2  ;;  %v6153_v38 = vrot.slane %v6152_v39, 2  ;;  %v6182_v8 = vsel %vm2131_vm7, %v6128_v6, %v6121_v48  ;;  %v4790_v27 = vrot.slane %v9478_v55, %v8588_v59  ;;  %v7177_v6 = vld [vmem:[%s9932_s8 + $0x70] sm:$0xff] }
0x16e4   : > { %v6135_v45 = vadd.f32 %v6134_v42, %v6133_v63  ;;  %v6166_v44 = vadd.f32 %v6165_v22, %v6164_v37  ;;  %v6159_v47 = vadd.f32 %v6158_v53, %v6157_v40  ;;  %v6142_v28 = vadd.f32 %v6141_v26, %v6140_v41  ;;  %v7178_v40 = vld [vmem:[%s9932_s8 + $0x78] sm:$0xff]  ;;  %v7172_v26 = vld [vmem:[%s9932_s8 + $0x48] sm:$0xff] }
0x16e5   : > { %v6147_v36 = vadd.f32 %v6146_v60, %v6145_v33  ;;  %v6154_v61 = vadd.f32 %v6153_v38, %v6152_v39  ;;  %v9609_v11 = vpop.f32.mrf.mxu1  ;;  %v4804_v5 = vrot.slane %v9478_v55, %v8828_v18  ;;  %v4818_v48 = vrot.slane %v9478_v55, %v8840_v31  ;;  %7685 = vmatpush3.msra.mxu0 %v7178_v40  ;;  %v7176_v18 = vld [vmem:[%s9932_s8 + $0x68] sm:$0xff]  ;;  %v7175_v31 = vld [vmem:[%s9932_s8 + $0x60] sm:$0xff] }
0x16e6   : > { %v6167_v25 = vrot.slane %v6166_v44, 2  ;;  %v6183_v12 = vsel %vm2133_vm8, %v6135_v45, %v6182_v8  ;;  %v6160_v49 = vrot.slane %v6159_v47, 2  ;;  %v4832_v63 = vrot.slane %v9478_v55, %v8852_v50  ;;  %7686 = vmatprep.subr.mxu0 %v9933_v57  ;;  %v7174_v50 = vld [vmem:[%s9932_s8 + $0x58] sm:$0xff]  ;;  %v7173_v55 = vld [vmem:[%s9932_s8 + $0x50] sm:$0xff]  ;;  %v7171_v60 = vld [vmem:[%s9932_s8 + $0x40] sm:$0xff]  ;;  %s8072_s8 = smov [#allocation3]  }
0x16e7   : > { %v6148_v23 = vrot.slane %v6147_v36, 1  ;;  %v6155_v29 = vrot.slane %v6154_v61, 1  ;;  %v7653_v4 = vpop.f32.mrf.mxu1  ;;  %v6184_v35 = vsel %vm2135_vm9, %v6142_v28, %v6183_v12  ;;  %7687 = vmatpush3.msra.mxu0 %v7177_v6 }
0x16e8   : > { %v6168_v13 = vadd.f32 %v6167_v25, %v6166_v44  ;;  %v6161_v19 = vadd.f32 %v6160_v49, %v6159_v47  ;;  %7688 = vmatprep.subr.mxu0 %v9933_v57 }
0x16e9   : > { %v6149_v24 = vadd.f32 %v6148_v23, %v6147_v36  ;;  %v5411_v52 = vpop.f32.mrf.mxu1  ;;  %v6156_v58 = vadd.f32 %v6155_v29, %v6154_v61  ;;  %7689 = vmatpush3.msra.mxu0 %v7176_v18 }
0x16ea   : > { %v6169_v30 = vrot.slane %v6168_v13, 1  ;;  %v6162_v34 = vrot.slane %v6161_v19, 1  ;;  %7690 = vmatprep.subr.mxu0 %v9933_v57 }
0x16eb   : > { %v7663_v0 = vpop.f32.mrf.mxu1  ;;  %v6185_v43 = vsel %vm2137_vm10, %v6149_v24, %v6184_v35  ;;  %7691 = vmatpush3.msra.mxu0 %v7175_v31 }
0x16ec   : > { %v6170_v1 = vadd.f32 %v6169_v30, %v6168_v13  ;;  %v6163_v62 = vadd.f32 %v6162_v34, %v6161_v19  ;;  %v6186_v20 = vsel %vm2139_vm11, %v6156_v58, %v6185_v43  ;;  %7692 = vmatprep.subr.mxu0 %v9933_v57 }
0x16ed   : > { %v5836_v9 = vpop.f32.mrf.mxu1  ;;  %7693 = vmatpush3.msra.mxu0 %v7174_v50 }
0x16ee   : > { %v6187_v14 = vsel %vm2141_vm12, %v6163_v62, %v6186_v20  ;;  %7694 = vmatprep.subr.mxu0 %v9933_v57 }
0x16ef   : > { %v7673_v32 = vpop.f32.mrf.mxu1  ;;  %v6188_v16 = vsel %vm2143_vm13, %v6170_v1, %v6187_v14  ;;  %7695 = vmatpush3.msra.mxu0 %v7173_v55 }
0x16f0   : > { %6189 = vrot.lane.b32.xlu0 %v6188_v16, %s9928_s15  ;;  %7696 = vmatprep.subr.mxu0 %v9933_v57  ;;  %s1143_s15 = sand.u32 1, %s8015_s1  }
0x16f1   : > { %7697 = vmatpush3.msra.mxu0 %v7172_v26  ;;  %s1144_s2 = scalar_lea.vmem [#allocation3], %s1143_s15  ;;  %s6917_s5 = scalar_lea.sflag [#allocation4], %s1143_s15 }
0x16f2   : > { %7698 = vmatprep.subr.mxu0 %v9933_v57 }
0x16f3   : > { %7699 = vmatpush3.msra.mxu0 %v7171_v60 }
0x16f4   : > { %4792 = vbcast.lane.b32.xlu0 %v4790_v27, 256  ;;  %7749 = vmatprep.subr.mxu0 %v9933_v57 }
0x16f8   : > { %4806 = vbcast.lane.b32.xlu0 %v4804_v5, 256 }
0x16fc   : > { %4820 = vbcast.lane.b32.xlu0 %v4818_v48, 256 }
0x1700   : > { %4834 = vbcast.lane.b32.xlu0 %v4832_v63, 256 }
0x171e   : > { %v6261_v41 = vpop.f32.mrf.mxu1 }
0x1720   : > { %v7683_v33 = vpop.f32.mrf.mxu1 }
0x1733   : > { %v5340_v39 = vpop.permute.xlu0 %5339 }
0x1734   : > { %v5412_v37 = vadd.f32 %v5411_v52, %v5340_v39 }
0x1736   : > { %6266 = vrot.lane.b32.xlu1 %v5412_v37, %s9934_s26 }
0x173f   : > { %v5765_v42 = vpop.permute.xlu1 %5764 }
0x1740   : > { %v5837_v22 = vadd.f32 %v5836_v9, %v5765_v42 }
0x1742   : > { %6270 = vrot.lane.b32.xlu0 %v5837_v22, %s9953_s4  ;;  %s9970_s4 = sld [smem:[#allocation35_spill]] }
0x1743   : > { %v4786_v44 = vpop.permute.xlu1 %4785 }
0x1744   : > { %v4836_v8 = vmul.f32 %v9573_v46, %v4786_v44 }
0x1746   : > { %v4844_v49 = vsel %vm2061_vm6, %v4836_v8, 0.0 }
0x1747   : > { %v4800_v61 = vpop.permute.xlu1 %4799  ;;  %v4845_v19 = vrot.slane %v4844_v49, 4 }
0x1748   : > { %v4838_v29 = vmul.f32 %v9583_v56, %v4800_v61 }
0x1749   : > { %v4846_v0 = vadd.f32 %v4845_v19, %v4844_v49 }
0x174b   : > { %v4814_v25 = vpop.permute.xlu1 %4813  ;;  %v4847_v14 = vrot.slane %v4846_v0, 2 }
0x174c   : > { %v4840_v46 = vmul.f32 %v9593_v17, %v4814_v25 }
0x174d   : > { %v4848_v39 = vadd.f32 %v4847_v14, %v4846_v0 }
0x174e   : > { %v4872_v43 = vsel %vm2061_vm6, %v4840_v46, 0.0 }
0x174f   : > { %v4828_v35 = vpop.permute.xlu1 %4827  ;;  %v4873_v32 = vrot.slane %v4872_v43, 4  ;;  %v4849_v55 = vrot.slane %v4848_v39, 1 }
0x1750   : > { %v4842_v1 = vmul.f32 %v9604_v2, %v4828_v35 }
0x1751   : > { %v4850_v44 = vadd.f32 %v4849_v55, %v4848_v39 }
0x1752   : > { %v4886_v16 = vsel %vm2061_vm6, %v4842_v1, 0.0 }
0x1753   : > { %v4887_v33 = vrot.slane %v4886_v16, 4 }
0x1755   : > { %v4888_v50 = vadd.f32 %v4887_v33, %v4886_v16 }
0x1762   : > { %v6190_v38 = vpop.permute.xlu0 %6189 }
0x1763   : > { %v6262_v53 = vadd.f32 %v6261_v41, %v6190_v38  ;;  %v4874_v41 = vadd.f32 %v4873_v32, %v4872_v43 }
0x1765   : > { %6274 = vrot.lane.b32.xlu1 %v6262_v53, %s9935_s9  ;;  %v4875_v31 = vrot.slane %v4874_v41, 2  ;;  %s9965_s9 = sld [smem:[#allocation31_spill]] }
0x1766   : > { %v4793_v45 = vpop.permute.xlu0 %4792 }
0x1767   : > { %v4837_v47 = vmul.f32 %v9576_v21, %v4793_v45  ;;  %v4858_v21 = vsel %vm2061_vm6, %v4838_v29, 0.0  ;;  %v4876_v53 = vadd.f32 %v4875_v31, %v4874_v41  ;;  %v4889_v45 = vrot.slane %v4888_v50, 2 }
0x1768   : > { %v4859_v34 = vrot.slane %v4858_v21, 4 }
0x1769   : > { %v4851_v12 = vsel %vm2061_vm6, %v4837_v47, 0.0  ;;  %v4877_v25 = vrot.slane %v4876_v53, 1 }
0x176a   : > { %v4807_v36 = vpop.permute.xlu0 %4806  ;;  %v4852_v4 = vrot.slane %v4851_v12, 4  ;;  %v4860_v20 = vadd.f32 %v4859_v34, %v4858_v21 }
0x176b   : > { %v4839_v23 = vmul.f32 %v9586_v3, %v4807_v36 }
0x176c   : > { %v4853_v58 = vadd.f32 %v4852_v4, %v4851_v12  ;;  %v4890_v12 = vadd.f32 %v4889_v45, %v4888_v50 }
0x176d   : > { %v4865_v13 = vsel %vm2061_vm6, %v4839_v23, 0.0 }
0x176e   : > { %v4821_v28 = vpop.permute.xlu0 %4820  ;;  %v4866_v30 = vrot.slane %v4865_v13, 4 }
0x176f   : > { %v4841_v24 = vmul.f32 %v9552_v10, %v4821_v28  ;;  %v4854_v10 = vrot.slane %v4853_v58, 2 }
0x1770   : > { %v4867_v62 = vadd.f32 %v4866_v30, %v4865_v13  ;;  %v4878_v13 = vadd.f32 %v4877_v25, %v4876_v53 }
0x1771   : > { %v4879_v3 = vsel %vm2061_vm6, %v4841_v24, 0.0  ;;  %v4855_v27 = vadd.f32 %v4854_v10, %v4853_v58  ;;  %v4891_v24 = vrot.slane %v4890_v12, 1  ;;  %v7182_v10 = vld [vmem:[%s9936_s10 + $0x4] sm:$0x7] }
0x1772   : > { %v4835_v52 = vpop.permute.xlu0 %4834  ;;  %v4880_v9 = vrot.slane %v4879_v3, 4  ;;  %v4868_v5 = vrot.slane %v4867_v62, 2 }
0x1773   : > { %v4843_v56 = vmul.f32 %v9601_v7, %v4835_v52  ;;  %v4861_v7 = vrot.slane %v4860_v20, 2  ;;  %v4856_v37 = vrot.slane %v4855_v27, 1  ;;  %v4892_v52 = vadd.f32 %v4891_v24, %v4890_v12  ;;  %v7190_v12 = vld [vmem:[%s9938_s14 + $0x30] sm:$0xff] }
0x1774   : > { %v4881_v48 = vadd.f32 %v4880_v9, %v4879_v3  ;;  %v4869_v2 = vadd.f32 %v4868_v5, %v4867_v62  ;;  %v7180_v62 = vld [vmem:[%s9937_s13 + $0x1] ss:$0 sm:$0xff]  ;;  %v6375_v9 = vrot.slane %v7182_v10, %v8414_v54 }
0x1775   : > { %v4893_v17 = vsel %vm2061_vm6, %v4843_v56, 0.0  ;;  %v4862_v18 = vadd.f32 %v4861_v7, %v4860_v20  ;;  %v4857_v42 = vadd.f32 %v4856_v37, %v4855_v27  ;;  %v6380_v20 = vrot.slane %v7182_v10, %v8588_v59  ;;  %v7962_v37 = vld [vmem:[%s8337_s19] sm:$0xff]  ;;  %s9968_s19 = sld [smem:[#allocation32_spill]] }
0x1776   : > { %v4894_v63 = vrot.slane %v4893_v17, 4  ;;  %v4882_v40 = vrot.slane %v4881_v48, 2  ;;  %v4870_v26 = vrot.slane %v4869_v2, 1 }
0x1777   : > { %v4863_v38 = vrot.slane %v4862_v18, 1  ;;  %v4908_v36 = vsel %vm2131_vm7, %v4857_v42, %v4850_v44  ;;  %v6381_v5 = vmul.f32 %v6380_v20, %v9170_v51  ;;  %v7200_v20 = vld [vmem:[%s9942_s11 + $0xa0] sm:$0xff] }
0x1778   : > { %v4895_v6 = vadd.f32 %v4894_v63, %v4893_v17  ;;  %v4883_v22 = vadd.f32 %v4882_v40, %v4881_v48  ;;  %v4871_v61 = vadd.f32 %v4870_v26, %v4869_v2  ;;  %v6387_v17 = vrot.slane %v7182_v10, %v8818_v15  ;;  %v7203_v10 = vld [vmem:[%s9942_s11 + $0xb8] sm:$0xff] }
0x1779   : > { %v4864_v28 = vadd.f32 %v4863_v38, %v4862_v18 }
0x177a   : > { %v4896_v60 = vrot.slane %v4895_v6, 2  ;;  %v4884_v47 = vrot.slane %v4883_v22, 1 }
0x177b   : > { %v4909_v23 = vsel %vm2133_vm8, %v4864_v28, %v4908_v36 }
0x177c   : > { %v4897_v8 = vadd.f32 %v4896_v60, %v4895_v6  ;;  %v4910_v29 = vsel %vm2135_vm9, %v4871_v61, %v4909_v23  ;;  %v4885_v49 = vadd.f32 %v4884_v47, %v4883_v22  ;;  %v7189_v23 = vld [vmem:[%s9938_s14 + $0x28] sm:$0xff] }
0x177d   : > { %v4911_v19 = vsel %vm2137_vm10, %v4878_v13, %v4910_v29  ;;  %v7188_v29 = vld [vmem:[%s9938_s14 + $0x20] sm:$0xff] }
0x177e   : > { %v4898_v4 = vrot.slane %v4897_v8, 1  ;;  %v4912_v46 = vsel %vm2139_vm11, %v4885_v49, %v4911_v19  ;;  %v7186_v19 = vld [vmem:[%s9939_s17 + $0x1] ss:$0 sm:$0xff] }
0x177f   : > { %v4913_v35 = vsel %vm2141_vm12, %v4892_v52, %v4912_v46  ;;  %v7187_v46 = vld [vmem:[%s9940_s18 + $0x1] ss:$0 sm:$0xff] }
0x1780   : > { %v4899_v21 = vadd.f32 %v4898_v4, %v4897_v8 }
0x1782   : > { %v4914_v58 = vsel %vm2143_vm13, %v4899_v21, %v4913_v35 }
0x1783   : > { %v4986_v34 = vadd.f32 %v9609_v11, %v4914_v58  ;;  %v7211_v58 = vld [vmem:[%s9942_s11 + $0xf8] sm:$0xff] }
0x17a8   : > { %v6267_v30 = vpop.permute.xlu1 %6266 }
0x17a9   : > { %v6277_v56 = vsel %vm2061_vm6, %v4986_v34, %v6267_v30  ;;  %v7210_v30 = vld [vmem:[%s9942_s11 + $0xf0] sm:$0xff]  ;;  %v7209_v34 = vld [vmem:[%s9942_s11 + $0xe8] sm:$0xff] }
0x17b4   : > { %v6271_v3 = vpop.permute.xlu0 %6270 }
0x17b5   : > { %v6278_v0 = vsel %vm1515_vm4, %v6277_v56, %v6271_v3  ;;  %v7208_v3 = vld [vmem:[%s9942_s11 + $0xe0] sm:$0xff]  ;;  %v7207_v56 = vld [vmem:[%s9942_s11 + $0xd8] sm:$0xff] }
0x17d7   : > { %v6275_v43 = vpop.permute.xlu1 %6274 }
0x17d8   : > { %v6279_v1 = vsel %vm3735_vm1, %v6278_v0, %v6275_v43  ;;  %v7206_v0 = vld [vmem:[%s9942_s11 + $0xd0] sm:$0xff]  ;;  %v7205_v43 = vld [vmem:[%s9942_s11 + $0xc8] sm:$0xff] }
0x17d9   : > { %7701 = vmatmul.mubr.msk.f32.vlgmr.msra.gmra.mxu0 %vm1639_vm5, %v6279_v1  ;;  %vm6655_vm5 = vcmask 7168   ;;  %v7204_v1 = vld [vmem:[%s9942_s11 + $0xc0] sm:$0xff] }
0x17da   : > { %7757 = vmatprep.mubr.msk.f32.mxu0 %vm8062_vm0, %v9933_v57  ;;  %v6656_v2 = vsel %vm6655_vm5, %v7962_v37, 0.0  ;;  %v7214_v37 = vld [vmem:[%s9946_s22 + $0x4] sm:$0x7] }
0x17db   : > { %v6657_v6 = vrot.slane %v6656_v2, 4 }
0x17dd   : > { %v6658_v31 = vadd.f32 %v6657_v6, %v6656_v2  ;;  %v7213_v2 = vld [vmem:[%s9948_s30 + $0x1] ss:$0 sm:$0xff]  ;;  %v6632_v6 = vrot.slane %v7214_v37, %v8588_v59  ;;  %v6680_v59 = vld [vmem:[%s9965_s9 + $0x10] sm:$0xff] }
0x17df   : > { %v6659_v50 = vrot.slane %v6658_v31, 2 }
0x17e1   : > { %v6660_v55 = vadd.f32 %v6659_v50, %v6658_v31  ;;  %v6639_v50 = vrot.slane %v7214_v37, %v8818_v15  ;;  %v6678_v15 = vld [vmem:[%s9965_s9] sm:$0xff] }
0x17e3   : > { %v6661_v26 = vrot.slane %v6660_v55, 1 }
0x17e5   : > { %v6662_v53 = vadd.f32 %v6661_v26, %v6660_v55 }
0x1899   : > { %v6366_v11 = vpop.f32.mrf.mxu0 }
0x189a   : > { %v6367_v32 = vadd.f32 %v7180_v62, %v6366_v11  ;;  %v7202_v62 = vld [vmem:[%s9942_s11 + $0xb0] sm:$0xff]  ;;  %v7199_v11 = vld [vmem:[%s9942_s11 + $0x98] sm:$0xff] }
0x189b   : > { %v7702_v14 = vpop.f32.mrf.mxu0 }
0x189c   : > { %v6376_v16 = vmul.f32 %v6375_v9, %v6367_v32  ;;  %v6383_v27 = vsub.f32 %v6367_v32, %v9170_v51  ;;  %v7201_v9 = vld [vmem:[%s9942_s11 + $0xa8] sm:$0xff]  ;;  %v7196_v14 = vld [vmem:[%s9942_s11 + $0x80] sm:$0xff] }
0x189e   : > { %v6382_v48 = vadd.f32 %v6381_v5, %v6376_v16  ;;  %v6388_v63 = vmul.f32 %v6387_v17, %v6383_v27  ;;  %v7197_v17 = vld [vmem:[%s9942_s11 + $0x88] sm:$0xff]  ;;  %v7193_v16 = vld [vmem:[%s9944_s23 + $0x1] ss:$0 sm:$0xff] }
0x18a0   : > { %v6389_v7 = vadd.f32 %v6388_v63, %v6382_v48 }
0x18a2   : > { %v6390_v41 = vsel %vm1515_vm4, %v6389_v7, 0.0 }
0x18a3   : > { %6391 = vadd.xlane.f32.xlu0 %v6390_v41 }
0x192c   : > { %v6392_v33 = vpop.xlane.xlu0 %6391 }
0x192d   : > { %v7183_v39 = vmul.f32 -1.442695, %v6392_v33 }
0x192f   : > { %7920 = vpow2.f32 %v7183_v39 }
0x193c   : > { %v7921_v40 = vpop.eup %7920 }
0x193d   : > { %v6396_v18 = vadd.f32 1.0, %v7921_v40  ;;  %v6627_v40 = vrot.slane %v7214_v37, %v8414_v54  ;;  %v6681_v54 = vld [vmem:[%s9965_s9 + $0x18] sm:$0xff] }
0x193e   : > { %7750 = vmatpush3.msra.mxu0 %v6681_v54 }
0x193f   : > { %7922 = vrcp.f32 %v6396_v18  ;;  %7751 = vmatprep.subr.mxu0 %v9933_v57 }
0x1940   : > { %7924 = vrcp.f32 %v6662_v53  ;;  %7752 = vmatpush3.msra.mxu0 %v6680_v59 }
0x1941   : > { %7753 = vmatprep.subr.mxu0 %v9933_v57 }
0x194c   : > { %v7923_v42 = vpop.eup %7922 }
0x194d   : > { %v6400_v22 = vsub.f32 1.0, %v7923_v42  ;;  %v6399_v60 = vmul.f32 %v7923_v42, %v6367_v32  ;;  %v7925_v36 = vpop.eup %7924  ;;  %v7198_v32 = vld [vmem:[%s9942_s11 + $0x90] sm:$0xff] }
0x194f   : > { %v6401_v38 = vmul.f32 %v6400_v22, %v9170_v51  ;;  %v7191_v51 = vld [vmem:[%s9938_s14 + $0x38] sm:$0xff] }
0x1950   : > { %7704 = vmatpush3.msra.mxu1 %v7191_v51 }
0x1951   : > { %v9686_v45 = vadd.f32 %v6401_v38, %v6399_v60  ;;  %7705 = vmatprep.subr.mxu1 %v9933_v57 }
0x1952   : > { %7706 = vmatpush3.msra.mxu1 %v7190_v12 }
0x1953   : > { %v6407_v44 = vsel %vm1515_vm4, %v9686_v45, 0.0  ;;  %7707 = vmatprep.subr.mxu1 %v9933_v57  ;;  %v6633_v22 = vmul.f32 %v6632_v6, %v9686_v45 }
0x1954   : > { %6408 = vadd.xlane.f32.xlu1 %v6407_v44  ;;  %7708 = vmatpush3.msra.mxu1 %v7189_v23 }
0x1955   : > { %7709 = vmatprep.subr.mxu1 %v9933_v57 }
0x1956   : > { %7710 = vmatpush3.msra.mxu1 %v7188_v29 }
0x1957   : > { %7714 = vmatprep.subr.mxu1 %v9933_v57 }
0x1965   : > { %6674 = vperm.xlu1 %7869, %v7925_v36   ;;  %v6679_v36 = vld [vmem:[%s9965_s9 + $0x8] sm:$0xff]  ;;  %s7967_s9 = sshll.u32 %s8072_s8, 4  ;;  %s7968_s9 = int_to_ptr.vmem [resolvable:$false] %s7967_s9 }
0x1966   : > { %7754 = vmatpush3.msra.mxu0 %v6679_v36  ;;  %s7969_s0 = scalar_lea.vmem %s7968_s9, 32 }
0x1967   : > { %7755 = vmatprep.subr.mxu0 %v9933_v57 }
0x1968   : > { %7756 = vmatpush3.msra.mxu0 %v6678_v15 }
0x1969   : > { %7760 = vmatprep.subr.mxu0 %v9933_v57 }
0x19dd   : > { %v6409_v61 = vpop.xlane.xlu1 %6408 }
0x19de   : > { %v6410_v47 = vmul.f32 0.03125, %v6409_v61 }
0x19e0   : > { %v6411_v8 = vsub.f32 %v9686_v45, %v6410_v47 }
0x19e2   : > { %v6412_v28 = vmul.f32 %v6411_v8, %v6411_v8 }
0x19e4   : > { %v6413_v25 = vsel %vm1515_vm4, %v6412_v28, 0.0 }
0x19e5   : > { %6414 = vadd.xlane.f32.xlu0 %v6413_v25 }
0x1a6e   : > { %v6415_v49 = vpop.xlane.xlu0 %6414 }
0x1a6f   : > { %v6416_v4 = vmul.f32 0.03125, %v6415_v49  ;;  %v9967_v49 = vld [vmem:[#allocation42_spill] sm:$0xff] }
0x1a71   : > { %v6417_v13 = vadd.f32 1e-05, %v6416_v4 }
0x1a73   : > { %7926 = vrsqrt.f32 %v6417_v13 }
0x1a80   : > { %v7927_v24 = vpop.eup %7926 }
0x1a81   : > { %v6419_v21 = vmul.f32 %v7927_v24, %v6411_v8 }
0x1a83   : > { %v6426_v52 = vmul.f32 %v7186_v19, %v6419_v21 }
0x1a85   : > { %v6433_v35 = vadd.f32 %v7187_v46, %v6426_v52 }
0x1a87   : > { %7712 = vmatmul.mubr.msk.f32.vlgmr.msra.gmra.mxu1 %vm1515_vm4, %v6433_v35 }
0x1a88   : > { %7746 = vmatprep.mubr.msk.f32.mxu1 %vm8062_vm0, %v9933_v57  ;;  %7715 = vmatpush3.msra.mxu1 %v7211_v58  ;;  %v6675_v58 = vpop.permute.xlu1 %6674 }
0x1a89   : > { %7716 = vmatprep.subr.mxu1 %v9933_v57 }
0x1a8a   : > { %7717 = vmatpush3.msra.mxu1 %v7210_v30 }
0x1a8b   : > { %7718 = vmatprep.subr.mxu1 %v9933_v57 }
0x1a8c   : > { %7719 = vmatpush3.msra.mxu1 %v7209_v34  ;;  %v6760_v34 = vld [vmem:[%s9966_s3 + $0x18] sm:$0xff] }
0x1a8d   : > { %7720 = vmatprep.subr.mxu1 %v9933_v57 }
0x1a8e   : > { %7721 = vmatpush3.msra.mxu1 %v7208_v3  ;;  %v6758_v3 = vld [vmem:[%s9966_s3 + $0x8] sm:$0xff] }
0x1a8f   : > { %7722 = vmatprep.subr.mxu1 %v9933_v57 }
0x1a90   : > { %7723 = vmatpush3.msra.mxu1 %v7207_v56  ;;  %v6757_v56 = vld [vmem:[%s9966_s3] sm:$0xff] }
0x1a91   : > { %7724 = vmatprep.subr.mxu1 %v9933_v57 }
0x1a92   : > { %7725 = vmatpush3.msra.mxu1 %v7206_v0  ;;  %v6682_v0 = vld [vmem:[%s9968_s19] sm:$0x1]  ;;  %s6929_s19 = sshll.u32 %s1144_s2, 4  ;;  %s6930_s19 = int_to_ptr.vmem [resolvable:$true] %s6929_s19 }
0x1a93   : > { %7726 = vmatprep.subr.mxu1 %v9933_v57  ;;  %p7970_p0 = scmp.lt.s32.totalorder %s6930_s19, %s7968_s9 }
0x1a94   : > { %7727 = vmatpush3.msra.mxu1 %v7205_v43 }
0x1a95   : > { %7728 = vmatprep.subr.mxu1 %v9933_v57 }
0x1a96   : > { %7729 = vmatpush3.msra.mxu1 %v7204_v1 }
0x1a97   : > { %7730 = vmatprep.subr.mxu1 %v9933_v57 }
0x1a98   : > { %7731 = vmatpush3.msra.mxu1 %v7203_v10 }
0x1a99   : > { %7732 = vmatprep.subr.mxu1 %v9933_v57 }
0x1a9a   : > { %7733 = vmatpush3.msra.mxu1 %v7202_v62 }
0x1a9b   : > { %7734 = vmatprep.subr.mxu1 %v9933_v57 }
0x1a9c   : > { %7735 = vmatpush3.msra.mxu1 %v7201_v9  ;;  %v6839_v9 = vld [vmem:[%s8251_s24 + $0x18] sm:$0xff] }
0x1a9d   : > { %7736 = vmatprep.subr.mxu1 %v9933_v57 }
0x1a9e   : > { %7737 = vmatpush3.msra.mxu1 %v7200_v20  ;;  %v6838_v20 = vld [vmem:[%s8251_s24 + $0x10] sm:$0xff] }
0x1a9f   : > { %7738 = vmatprep.subr.mxu1 %v9933_v57 }
0x1aa0   : > { %7739 = vmatpush3.msra.mxu1 %v7199_v11  ;;  %v6837_v11 = vld [vmem:[%s8251_s24 + $0x8] sm:$0xff] }
0x1aa1   : > { %7740 = vmatprep.subr.mxu1 %v9933_v57 }
0x1aa2   : > { %7741 = vmatpush3.msra.mxu1 %v7198_v32  ;;  %v6836_v32 = vld [vmem:[%s8251_s24] sm:$0xff] }
0x1aa3   : > { %7742 = vmatprep.subr.mxu1 %v9933_v57 }
0x1aa4   : > { %7743 = vmatpush3.msra.mxu1 %v7197_v17  ;;  %v6761_v17 = vld [vmem:[%s9969_s6] sm:$0x1]  ;;  %s7963_s6 = scalar_lea.vmem %s6930_s19, 16 }
0x1aa5   : > { %7744 = vmatprep.subr.mxu1 %v9933_v57  ;;  %p7964_p11 = scmp.ne.s32.totalorder %s6930_s19, %s7963_s6  ;;  %p7971_p1 = scmp.lt.s32.totalorder %s7969_s0, %s7963_s6 }
0x1aa6   : > { %7745 = vmatpush3.msra.mxu1 %v7196_v14 }
0x1aa7   : > { %p7965_p12 = pnand %p7964_p11, %p8301_p5  ;;  %p7972_p2 = por %p7971_p1, %p7970_p0 }
0x1aa9   : > { %p7966_p13 = pneg %p7965_p12 }
0x1aab   : > { %p7973_p3 = pnand %p7972_p2, %p7966_p13 }
0x1b47   : > { %v6516_v27 = vpop.f32.mrf.mxu1 }
0x1b48   : > { %v6517_v5 = vadd.f32 %v7193_v16, %v6516_v27 }
0x1b49   : > { %v7713_v48 = vpop.f32.mrf.mxu1 }
0x1b4a   : > { %v7195_v63 = vmul.f32 -1.442695, %v6517_v5  ;;  %v6840_v48 = vld [vmem:[%s8256_s29] sm:$0x1] }
0x1b4c   : > { %7928 = vpow2.f32 %v7195_v63 }
0x1b59   : > { %v7929_v7 = vpop.eup %7928 }
0x1b5a   : > { %v6523_v41 = vadd.f32 1.0, %v7929_v7 }
0x1b5c   : > { %7930 = vrcp.f32 %v6523_v41 }
0x1b69   : > { %v7931_v33 = vpop.eup %7930 }
0x1b6a   : > { %v6526_v39 = vmul.f32 %v7931_v33, %v6517_v5 }
0x1b6c   : > { %7747 = vmatmul.mubr.f32.vlgmr.msra.gmra.mxu1 %v6526_v39 }
0x1c2c   : > { %v6618_v18 = vpop.f32.mrf.mxu1 }
0x1c2d   : > { %v6619_v31 = vadd.f32 %v7213_v2, %v6618_v18 }
0x1c2e   : > { %v7748_v55 = vpop.f32.mrf.mxu1 }
0x1c2f   : > { %v6628_v42 = vmul.f32 %v6627_v40, %v6619_v31  ;;  %v6635_v26 = vsub.f32 %v6619_v31, %v9686_v45 }
0x1c31   : > { %v6634_v60 = vadd.f32 %v6633_v22, %v6628_v42  ;;  %v6640_v38 = vmul.f32 %v6639_v50, %v6635_v26 }
0x1c33   : > { %v6641_v53 = vadd.f32 %v6640_v38, %v6634_v60 }
0x1c35   : > { %v6642_v44 = vsel %vm1515_vm4, %v6641_v53, 0.0 }
0x1c36   : > { %6643 = vadd.xlane.f32.xlu0 %v6642_v44 }
0x1cbf   : > { %v6644_v61 = vpop.xlane.xlu0 %6643 }
0x1cc0   : > { %v7215_v47 = vmul.f32 -1.442695, %v6644_v61 }
0x1cc2   : > { %7932 = vpow2.f32 %v7215_v47 }
0x1ccf   : > { %v7933_v8 = vpop.eup %7932 }
0x1cd0   : > { %v6648_v28 = vadd.f32 1.0, %v7933_v8 }
0x1cd2   : > { %7934 = vrcp.f32 %v6648_v28 }
0x1cdf   : > { %v7935_v25 = vpop.eup %7934 }
0x1ce0   : > { %v6652_v51 = vsub.f32 1.0, %v7935_v25  ;;  %v6651_v12 = vmul.f32 %v7935_v25, %v6619_v31 }
0x1ce2   : > { %v6653_v23 = vmul.f32 %v6652_v51, %v9686_v45  ;;  %v6759_v45 = vld [vmem:[%s9966_s3 + $0x10] sm:$0xff]  ;;  %s9784_s3 = scalar_lea.hbm %s9970_s4, %s7219_s28 }
0x1ce4   : > { %v6654_v29 = vadd.f32 %v6653_v23, %v6651_v12 }
0x1ce6   : > { %v6663_v4 = vmul.f32 %v6654_v29, %v9967_v49 }
0x1ce8   : > { %v6664_v13 = vsel %vm1515_vm4, %v6663_v4, 0.0 }
0x1ce9   : > { %v6665_v24 = vrot.slane %v6664_v13, 4 }
0x1ceb   : > { %v6666_v19 = vadd.f32 %v6665_v24, %v6664_v13 }
0x1ced   : > { %v6667_v21 = vrot.slane %v6666_v19, 2 }
0x1cef   : > { %v6668_v46 = vadd.f32 %v6667_v21, %v6666_v19 }
0x1cf1   : > { %v6669_v52 = vrot.slane %v6668_v46, 1 }
0x1cf3   : > { %v6670_v35 = vadd.f32 %v6669_v52, %v6668_v46 }
0x1cf5   : > { %v6677_v30 = vmul.f32 %v6675_v58, %v6670_v35 }
0x1cf7   : > { %7758 = vmatmul.mubr.msk.f32.vlgmr.msra.gmra.mxu0 %vm1515_vm4, %v6677_v30 }
0x1cf8   : > { %7761 = vmatpush3.msra.mxu0 %v6760_v34  ;;  %7768 = vmatprep.mubr.msk.f32.mxu0 %vm8062_vm0, %v9933_v57 }
0x1cf9   : > { %7762 = vmatprep.subr.mxu0 %v9933_v57 }
0x1cfa   : > { %7763 = vmatpush3.msra.mxu0 %v6759_v45 }
0x1cfb   : > { %7764 = vmatprep.subr.mxu0 %v9933_v57 }
0x1cfc   : > { %7765 = vmatpush3.msra.mxu0 %v6758_v3 }
0x1cfd   : > { %7766 = vmatprep.subr.mxu0 %v9933_v57 }
0x1cfe   : > { %7767 = vmatpush3.msra.mxu0 %v6757_v56 }
0x1cff   : > { %7771 = vmatprep.subr.mxu0 %v9933_v57 }
0x1db7   : > { %v6752_v43 = vpop.f32.mrf.mxu0 }
0x1db8   : > { %v6753_v1 = vadd.f32 %v6752_v43, %v6682_v0 }
0x1db9   : > { %v7759_v10 = vpop.f32.mrf.mxu0 }
0x1dba   : > { %v6756_v62 = vmax.f32 %v6753_v1, 0.0 }
0x1dbc   : > { %7769 = vmatmul.mubr.msk.f32.vlgmr.msra.gmra.mxu0 %vm1515_vm4, %v6756_v62 }
0x1dbd   : > { %7772 = vmatpush3.msra.mxu0 %v6839_v9  ;;  %7779 = vmatprep.mubr.msk.f32.mxu0 %vm8062_vm0, %v9933_v57  ;;  %vm6914_vm0 = vcmask 16384  }
0x1dbe   : > { %7773 = vmatprep.subr.mxu0 %v9933_v57 }
0x1dbf   : > { %7774 = vmatpush3.msra.mxu0 %v6838_v20 }
0x1dc0   : > { %7775 = vmatprep.subr.mxu0 %v9933_v57 }
0x1dc1   : > { %7776 = vmatpush3.msra.mxu0 %v6837_v11 }
0x1dc2   : > { %7777 = vmatprep.subr.mxu0 %v9933_v57 }
0x1dc3   : > { %7778 = vmatpush3.msra.mxu0 %v6836_v32 }
0x1e7c   : > { %v6831_v14 = vpop.f32.mrf.mxu0 }
0x1e7d   : > { %v6832_v16 = vadd.f32 %v6831_v14, %v6761_v17 }
0x1e7e   : > { %v7770_v27 = vpop.f32.mrf.mxu0 }
0x1e7f   : > { %v6835_v5 = vmax.f32 %v6832_v16, 0.0 }
0x1e81   : > { %7780 = vmatmul.mubr.msk.f32.vlgmr.msra.gmra.mxu0 %vm1515_vm4, %v6835_v5 }
0x1f41   : > { %v6910_v63 = vpop.f32.mrf.mxu0 }
0x1f42   : > { %v6911_v7 = vadd.f32 %v6910_v63, %v6840_v48 }
0x1f43   : > { %v7781_v57 = vpop.f32.mrf.mxu0 }
0x1f44   : > { %6915 = vst.msk [vmem:[%s1144_s2] sm:$0x1] %vm6914_vm0, %v6911_v7 }
0x1f45   : > { %7976 = shalt.err (!%p7973_p3)
}
0x1f46   : > { %s7977_s15 = scalar_lea.hbm %s9784_s3, 16  ;;  %s7981_s28 = scalar_lea.hbm %s9970_s4, 32 }
0x1f47   : > { %p7978_p4 = scmp.ne.s32.totalorder %s9784_s3, %s7977_s15  ;;  %p7982_p9 = scmp.lt.s32.totalorder %s9784_s3, %s9970_s4 }
0x1f48   : > { %p7983_p10 = scmp.lt.s32.totalorder %s7981_s28, %s7977_s15 }
0x1f49   : > { %p7979_p7 = pnand %p7978_p4, %p8301_p5 }
0x1f4a   : > { %p7984_p11 = por %p7983_p10, %p7982_p9 }
0x1f4b   : > { %p7980_p8 = pneg %p7979_p7 }
0x1f4d   : > { %p7985_p12 = pnand %p7984_p11, %p7980_p8 }
0x1f4f   : > { %7988 = shalt.err (!%p7985_p12)
}
0x1f50   : > { %7782 = dma.vmem_to_hbm [thread:$0]  (%p8301_p5), %s6930_s19, 16, %s9784_s3, %s6917_s5  }
0x1f51 PF: > { %s9972_s6 = sld [smem:[#allocation36_spill]]  ;;  %p7788_p13 = scmp.ge.s32.totalorder %s8023_s7, 2 }
0x1f53   : > { %p7785_p0 = pnand %p7788_p13, %p8305_p6 }
0x1f55   : > { %p7786_p1 = pneg %p7785_p0 }
0x1f57   : > { %s6941_s9 = sand.u32 1, %s9972_s6  }
0x1f58   : > { %s6942_s2 = scalar_lea.sflag [#allocation4], %s6941_s9 }
0x1f59   : > { %8006 = dma.done.wait (%p7786_p1), %s6942_s2, 16  }
0x1f5a   : > { %8008 = vsyncadd (%p7786_p1), %s6942_s2, 4294967280  ;;  %s9974_s7 = sld [smem:[#allocation38_spill]]  ;;  %s9977_s28 = smov %s8015_s1 }
0x1f5b   : > { %s9975_s0 = sld [smem:[#allocation37_spill]] }
0x1f5c   : > { %s9976_s2 = sld [smem:[#allocation39_spill]] }
0x1f60   : > { %p83_p2 = scmp.ge.s32.totalorder %s9974_s7, 4  }
0x1f61   : > { %s9978_s1 = smov %s9975_s0 }
0x1f62   :  { %85 = sbr.rel (!%p83_p2) target bundleno = 78 (0x4e), region = 270 }
0x1f67   :  { %6946 = vsyncpa [#allocation4], 1 }
0x1f68   :  { %6948 = vsyncpa [#allocation4 + $0x1], 1 }

</bundles_post_ra>
